<compile_context>
chip_gen: v6e
topology: v6e:2x2x1
jax: 0.10.0
libtpu: 0.0.40
codegen_flags: <defaults>
</compile_context>

<pallas_src>
import functools

import jax
import jax.numpy as jnp
from jax.experimental import pallas as pl
from jax.experimental.pallas import tpu as pltpu

LANE = 128
SUB = 8
EPS = 1e-5
SLOPE = 0.2


def _round_up(x, m):
    return (x + m - 1) // m * m


# ----------------------------- input pre-packing ----------------------------

def _im2col_s2(x, kin_pad, dtype):
    """NHWC x -> (N, H//2, W//2, kin_pad): all 16 taps of the 4x4/stride-2/
    pad-1 conv stacked along K.  Channel order: (a*4+b) tap blocks, then ci."""
    N, H, W, C = x.shape
    oh, ow = H // 2, W // 2
    xp = jnp.pad(x, ((0, 0), (1, 1), (1, 1), (0, 0)))
    taps = []
    for a in range(4):
        for b in range(4):
            taps.append(jax.lax.slice(
                xp, (0, a, b, 0),
                (N, a + 2 * (oh - 1) + 1, b + 2 * (ow - 1) + 1, C),
                (1, 2, 2, 1)))
    pat = jnp.concatenate(taps, axis=-1)                 # (N, oh, ow, 16*C)
    pat = jnp.pad(pat, ((0, 0), (0, 0), (0, 0), (0, kin_pad - 16 * C)))
    return pat.astype(dtype)


def _phase_concat_s2(x, kin_pad, w_pad, dtype):
    """NHWC x -> (N, H//2+1, w_pad, kin_pad): spatial zero-pad of 1, then the
    4 stride-2 phases concatenated along channels (block 2p+q), so each of the
    4 in-kernel taps (a,b in {0,1}^2) is a contiguous slice with K=4*C real."""
    N, H, W, C = x.shape
    xp = jnp.pad(x, ((0, 0), (1, 1), (1, 1), (0, 0)))
    Hh, Wh = (H + 2) // 2, (W + 2) // 2
    xp = xp.reshape(N, Hh, 2, Wh, 2, C).transpose(0, 1, 3, 2, 4, 5)
    xp = xp.reshape(N, Hh, Wh, 4 * C)
    xp = jnp.pad(xp, ((0, 0), (0, 0), (0, w_pad - Wh), (0, kin_pad - 4 * C)))
    return xp.astype(dtype)


def _pad_s1_input(x, cin_pad, w_pad, dtype):
    """NHWC x -> (N, H+2, w_pad, cin_pad): spatial zero-pad of 1 for a
    3x3/stride-1/pad-1 conv, W padded to a sublane multiple."""
    N, H, W, C = x.shape
    xp = jnp.pad(x, ((0, 0), (1, 1), (1, w_pad - W - 1), (0, cin_pad - C)))
    return xp.astype(dtype)


# ------------------------------ weight packing -------------------------------

def _prep_w_im2col(w, kin_pad, cout_pad, dtype):
    """torch (Cout,Cin,kh,kw) -> (1, kin_pad, cout_pad); row = (a*kw+b)*Cin+ci."""
    cout, cin, kh, kw = w.shape
    wt = jnp.transpose(w, (2, 3, 1, 0)).reshape(kh * kw * cin, cout)
    wt = jnp.pad(wt, ((0, kin_pad - kh * kw * cin), (0, cout_pad - cout)))
    return wt.reshape(1, kin_pad, cout_pad).astype(dtype)


def _prep_w_s2p(w, kin_pad, cout_pad, dtype):
    """torch (Cout,Cin,4,4) -> (4, kin_pad, cout_pad); tap t = 2a+b, row =
    (2p+q)*Cin + ci, with original kernel index (i,j) = (2a+p, 2b+q)."""
    cout, cin, _, _ = w.shape
    wt = jnp.transpose(w, (2, 3, 1, 0))                  # (i, j, ci, co)
    wt = wt.reshape(2, 2, 2, 2, cin, cout)               # (a, p, b, q, ci, co)
    wt = wt.transpose(0, 2, 1, 3, 4, 5)                  # (a, b, p, q, ci, co)
    wt = wt.reshape(4, 4 * cin, cout)
    wt = jnp.pad(wt, ((0, 0), (0, kin_pad - 4 * cin), (0, cout_pad - cout)))
    return wt.astype(dtype)


def _prep_w_s1(w, cin_pad, cout_pad, dtype):
    """torch (Cout,Cin,3,3) -> (9, cin_pad, cout_pad); tap t = 3a+b."""
    cout, cin, _, _ = w.shape
    wt = jnp.transpose(w, (2, 3, 1, 0))
    wt = jnp.pad(wt, ((0, 0), (0, 0), (0, cin_pad - cin), (0, cout_pad - cout)))
    return wt.reshape(9, cin_pad, cout_pad).astype(dtype)


def _prep_stage(kind, w, b, norm, P, n_group, dtype):
    """Pad one conv(+GroupNorm) stage's parameters to lane-dense shapes."""
    cout, cin = int(w.shape[0]), int(w.shape[1])
    cout_pad = _round_up(cout, LANE)
    st = {"kind": kind, "norm": norm is not None, "cout": cout,
          "cin": cin, "cout_pad": cout_pad}
    if kind == "im2col":
        st["kin_pad"] = _round_up(16 * cin, LANE)
        st["w"] = _prep_w_im2col(w, st["kin_pad"], cout_pad, dtype)
    elif kind == "s2":
        st["kin_pad"] = _round_up(4 * cin, LANE)
        st["w"] = _prep_w_s2p(w, st["kin_pad"], cout_pad, dtype)
    else:  # "s1"
        st["kin_pad"] = _round_up(cin, LANE)
        st["w"] = _prep_w_s1(w, st["kin_pad"], cout_pad, dtype)
    st["b"] = jnp.pad(b, (0, cout_pad - cout)).reshape(1, cout_pad).astype(jnp.float32)
    if norm is not None:
        g, bt = norm
        st["g"] = jnp.pad(g, (0, cout_pad - cout)).reshape(1, cout_pad).astype(jnp.float32)
        st["bt"] = jnp.pad(bt, (0, cout_pad - cout)).reshape(1, cout_pad).astype(jnp.float32)
        # Block-diagonal group-averaging matrix, value 1/(group_size*P).
        # Padded channels get zero rows/cols (and gamma=beta=0) so they stay
        # exactly zero through the norm and never pollute real groups.
        # Note: the torch module builds nn.GroupNorm(out_c // n_group, out_c),
        # i.e. groups of n_group consecutive channels -> gid = c // n_group.
        gid = jnp.arange(cout_pad) // n_group
        valid = jnp.arange(cout_pad) < cout
        same = (gid[:, None] == gid[None, :]) & valid[:, None] & valid[None, :]
        st["gm"] = same.astype(jnp.float32) / float(n_group * P)
    return st


# ------------------------------ fused Pallas kernel --------------------------

def _make_block_kernel(stage_cfgs, has_final, oh, ow):
    """Fused kernel for one block (one sample per grid step).

    Ref order: x, then per stage (w, b[, gamma, beta, gmat]),
    then (w_final, b_final) if has_final, then out, then one f32 VMEM staging
    scratch per chained 3x3 stage.
    """
    n_stages = len(stage_cfgs)
    P = oh * ow

    def kernel(*refs):
        it = iter(refs)
        x_ref = next(it)
        srefs = []
        for cfg in stage_cfgs:
            d = {"w": next(it), "b": next(it)}
            if cfg["norm"]:
                d["g"], d["bt"], d["gm"] = next(it), next(it), next(it)
            srefs.append(d)
        wf_ref = bf_ref = None
        if has_final:
            wf_ref, bf_ref = next(it), next(it)
        out_ref = next(it)
        pad_refs = [next(it) for _ in range(n_stages - 1)]

        act = None                                      # (P, cout_pad) f32
        for si, (cfg, d) in enumerate(zip(stage_cfgs, srefs)):
            kind = cfg["kind"]
            w_ref = d["w"]
            mdt = w_ref.dtype                           # MXU operand dtype

            if kind == "im2col":
                # l1: all 16 taps pre-stacked into K -> a single matmul.
                acc = jnp.dot(x_ref[...].reshape(P, -1), w_ref[0],
                              preferred_element_type=jnp.float32)
            elif kind == "s2":
                # 4x4 / stride-2 conv via phase-concat input: 4 taps, each a
                # contiguous (P, 4*Cin) x (4*Cin, Cout) MXU matmul.
                acc = None
                for a in range(2):
                    for b in range(2):
                        tap = x_ref[a:a + oh, b:b + ow, :].reshape(P, -1)
                        part = jnp.dot(tap, w_ref[2 * a + b],
                                       preferred_element_type=jnp.float32)
                        acc = part if acc is None else acc + part
            else:
                # 3x3 / stride-1 conv.  Chained stages stage the previous
                # activation through an f32 VMEM scratch with a 1-px halo;
                # only the halo is (re-)zeroed, the interior is overwritten.
                if si == 0:
                    src = x_ref                          # pre-padded in XLA
                else:
                    src = pad_refs[si - 1]
                    ws, cinp = src.shape[1], src.shape[2]
                    zrow = jnp.zeros((ws, cinp), src.dtype)
                    zcol = jnp.zeros((oh, 1, cinp), src.dtype)
                    src[0] = zrow                        # top halo row
                    src[oh + 1] = zrow                   # bottom halo row
                    src[1:1 + oh, 0:1, :] = zcol         # left halo column
                    src[1:1 + oh, ow + 1:ow + 2, :] = zcol   # right halo col
                    src[1:1 + oh, 1:1 + ow, :] = act.reshape(oh, ow, -1).astype(src.dtype)
                acc = None
                for a in range(3):
                    for b in range(3):
                        tap = src[a:a + oh, b:b + ow, :].reshape(P, -1).astype(mdt)
                        part = jnp.dot(tap, w_ref[3 * a + b],
                                       preferred_element_type=jnp.float32)
                        acc = part if acc is None else acc + part

            y = acc + d["b"][...]
            if cfg["norm"]:
                # GroupNorm: per-(sample, group) stats over group_size*P
                # elements, broadcast back via the block-diagonal gmat matmul.
                sum1 = jnp.sum(y, axis=0, keepdims=True)
                sum2 = jnp.sum(y * y, axis=0, keepdims=True)
                mean = jnp.dot(sum1, d["gm"][...],
                               preferred_element_type=jnp.float32)
                ex2 = jnp.dot(sum2, d["gm"][...],
                              preferred_element_type=jnp.float32)
                # TODO(synk): switch to a centered pass when a P-tile axis is
                # added (E[x^2]-mean^2 can cancel for large activation means).
                inv = jax.lax.rsqrt(ex2 - mean * mean + EPS)
                y = (y - mean) * inv * d["g"][...] + d["bt"][...]
            act = jnp.where(y >= 0.0, y, SLOPE * y)      # LeakyReLU(0.2), f32

        if has_final:
            # Final 1x1 conv folded as a VPU multiply + lane reduction.
            o = jnp.sum(act * wf_ref[...], axis=1, keepdims=True) + bf_ref[...]
            out_ref[...] = o.astype(out_ref.dtype)
        else:
            out_ref[...] = act.astype(out_ref.dtype)

    return kernel


def run_block(x_nhwc, stage_descs, final_wb=None, *, n_group=4,
              compute_dtype=jnp.bfloat16):
    """One fused pallas_call.

    stage_descs[0] consumes x ("im2col"/"s2": 4x4/s2/p1 conv, "s1": 3x3/s1/p1
    conv); later stages are 3x3/s1/p1 convs chained through VMEM.  Each desc
    is (kind, weight, bias, norm) with norm = (gamma, beta) or None.
    final_wb = (w_1x1, b_1x1) folds the trailing 1x1 conv into the kernel.
    Returns an NHWC activation (channel-padded, compute_dtype) or the
    (N, OH, OW, 1) f32 logits.
    """
    N, H, W, C = x_nhwc.shape
    kind0 = stage_descs[0][0]
    assert C == int(stage_descs[0][1].shape[1])
    if kind0 in ("im2col", "s2"):
        assert H % 2 == 0 and W % 2 == 0
        oh, ow = H // 2, W // 2
    else:
        oh, ow = H, W
    P = oh * ow

    stages = [_prep_stage(kind, w, b, norm, P, n_group, compute_dtype)
              for (kind, w, b, norm) in stage_descs]
    for i in range(1, len(stages)):
        assert stages[i]["kind"] == "s1"
        assert stages[i]["kin_pad"] == stages[i - 1]["cout_pad"]

    # Pre-pack the block input in XLA so every in-kernel tap is a contiguous
    # slice and the MXU K dimension is (mostly) real channels.
    st0 = stages[0]
    if kind0 == "im2col":
        xin = _im2col_s2(x_nhwc, st0["kin_pad"], compute_dtype)
    elif kind0 == "s2":
        xin = _phase_concat_s2(x_nhwc, st0["kin_pad"],
                               _round_up(W // 2 + 1, SUB), compute_dtype)
    else:
        xin = _pad_s1_input(x_nhwc, st0["kin_pad"],
                            _round_up(W + 2, SUB), compute_dtype)

    def _const_spec(a):
        return pl.BlockSpec(a.shape, lambda n, _nd=a.ndim: (0,) * _nd)

    inputs = [xin]
    in_specs = [pl.BlockSpec((None,) + xin.shape[1:],
                             lambda n, _nd=xin.ndim: (n,) + (0,) * (_nd - 1))]
    stage_cfgs = []
    flops = 0
    for st in stages:
        inputs += [st["w"], st["b"]]
        in_specs += [_const_spec(st["w"]), _const_spec(st["b"])]
        if st["norm"]:
            inputs += [st["g"], st["bt"], st["gm"]]
            in_specs += [_const_spec(st["g"]), _const_spec(st["bt"]),
                         _const_spec(st["gm"])]
        stage_cfgs.append({"kind": st["kind"], "norm": st["norm"]})
        flops += 2 * N * P * int(st["w"].shape[0]) * int(st["w"].shape[1]) * st["cout_pad"]

    has_final = final_wb is not None
    if has_final:
        wf, bf = final_wb
        c_last, cpad_last = stages[-1]["cout"], stages[-1]["cout_pad"]
        wf2 = jnp.pad(wf.reshape(-1), (0, cpad_last - c_last)
                      ).reshape(1, cpad_last).astype(jnp.float32)
        bf2 = jnp.asarray(bf, jnp.float32).reshape(1, 1)
        inputs += [wf2, bf2]
        in_specs += [_const_spec(wf2), _const_spec(bf2)]
        out_c, out_dt = 1, jnp.float32
    else:
        out_c, out_dt = stages[-1]["cout_pad"], compute_dtype

    # f32 staging scratch for chained 3x3 stages (taps cast to bf16 at load).
    scratch_shapes = [
        pltpu.VMEM((oh + 2, _round_up(ow + 2, SUB), stages[i]["kin_pad"]),
                   jnp.float32)
        for i in range(1, len(stages))]

    bytes_accessed = sum(int(a.size) * a.dtype.itemsize for a in inputs)
    bytes_accessed += N * P * out_c * jnp.dtype(out_dt).itemsize
    cost = pl.CostEstimate(flops=int(flops),
                           transcendentals=int(N * P * len(stages)),
                           bytes_accessed=int(bytes_accessed))

    kernel = _make_block_kernel(stage_cfgs, has_final, oh, ow)
    out = pl.pallas_call(
        kernel,
        out_shape=jax.ShapeDtypeStruct((N, P, out_c), out_dt),
        grid=(N,),
        in_specs=in_specs,
        out_specs=pl.BlockSpec((None, P, out_c), lambda n: (n, 0, 0)),
        scratch_shapes=scratch_shapes,
        compiler_params=pltpu.CompilerParams(
            dimension_semantics=("parallel",),
            vmem_limit_bytes=32 * 1024 * 1024),
        cost_estimate=cost,
    )(*inputs)
    return out.reshape(N, oh, ow, out_c)


# ------------------------------ model forward --------------------------------

def init_params(key, nc, ndf, n_layers, n_group):
    """Deterministic synthetic parameters with the same shapes as the module."""
    def conv_p(k, cin, cout, ks):
        k1, k2 = jax.random.split(k)
        w = 0.1 * jax.random.normal(k1, (cout, cin, ks, ks), jnp.float32)
        b = 0.1 * jax.random.normal(k2, (cout,), jnp.float32)
        return w, b

    def norm_p(k, c):
        k1, k2 = jax.random.split(k)
        g = 1.0 + 0.1 * jax.random.normal(k1, (c,), jnp.float32)
        bt = 0.1 * jax.random.normal(k2, (c,), jnp.float32)
        return g, bt

    keys = iter(jax.random.split(key, 64))
    params = {"n_group": n_group}
    params["l1"] = conv_p(next(keys), nc, ndf, 4)            # ConvUnit(nc,ndf,4,2,1)

    pairs = []
    c_in = ndf
    for _ in range(n_layers - 1):
        c_out = min(c_in * 2, 256)
        w2, b2 = conv_p(next(keys), c_in, c_out, 4)          # CNU(cin,cout,4,2,1)
        g2, bt2 = norm_p(next(keys), c_out)
        w3, b3 = conv_p(next(keys), c_out, c_out, 3)         # CNU(cout,cout,3,1,1)
        g3, bt3 = norm_p(next(keys), c_out)
        pairs.append(((w2, b2, g2, bt2), (w3, b3, g3, bt3)))
        c_in = c_out
    params["pairs"] = pairs

    c_out = min(c_in * 2, 256)
    params["prefinal"] = (conv_p(next(keys), c_in, c_out, 3),
                          norm_p(next(keys), c_out))         # CNU(c_in,c_out,3,1,1)
    params["final"] = conv_p(next(keys), c_out, 1, 1)        # Conv2d(c_out,1,1)
    return params


def discriminator_forward(params, x_nchw, compute_dtype=jnp.bfloat16):
    n_group = params["n_group"]
    x = jnp.transpose(x_nchw, (0, 2, 3, 1))                  # NCHW -> NHWC, once

    # Block 0: l1 = ConvUnit (4x4/s2, LeakyReLU, no norm) as one im2col matmul.
    w, b = params["l1"]
    x = run_block(x, [("im2col", w, b, None)], n_group=n_group,
                  compute_dtype=compute_dtype)
    x = x[..., :int(w.shape[0])]                             # drop channel pad

    (w_pf, b_pf), (g_pf, bt_pf) = params["prefinal"]
    wf, bf = params["final"]
    pairs = params["pairs"]

    if not pairs:
        # n_layers == 1: prefinal CNU + folded final 1x1 as one call.
        out = run_block(x, [("s1", w_pf, b_pf, (g_pf, bt_pf))],
                        final_wb=(wf, bf), n_group=n_group,
                        compute_dtype=compute_dtype)
    else:
        for i, ((w2, b2, g2, bt2), (w3, b3, g3, bt3)) in enumerate(pairs):
            descs = [("s2", w2, b2, (g2, bt2)), ("s1", w3, b3, (g3, bt3))]
            if i == len(pairs) - 1:
                # Fold prefinal CNU and the final 1x1 conv into the last call.
                descs.append(("s1", w_pf, b_pf, (g_pf, bt_pf)))
                out = run_block(x, descs, final_wb=(wf, bf), n_group=n_group,
                                compute_dtype=compute_dtype)
            else:
                x = run_block(x, descs, n_group=n_group,
                              compute_dtype=compute_dtype)
                x = x[..., :int(w3.shape[0])]

    # final_act is not configured for this module instantiation.
    return jnp.transpose(out, (0, 3, 1, 2))                  # NHWC -> NCHW


# ----------------------------- pure-JAX reference ----------------------------

def _ref_conv(x, w, b, s, p):
    y = jax.lax.conv_general_dilated(
        x, w, (s, s), [(p, p), (p, p)],
        dimension_numbers=("NCHW", "OIHW", "NCHW"))
    return y + b[None, :, None, None]


def _ref_gn(x, g, bt, n_group, eps=1e-5):
    N, C, H, W = x.shape
    G = C // n_group
    xg = x.reshape(N, G, n_group, H, W)
    mean = xg.mean(axis=(2, 3, 4), keepdims=True)
    var = xg.var(axis=(2, 3, 4), keepdims=True)
    xn = ((xg - mean) / jnp.sqrt(var + eps)).reshape(N, C, H, W)
    return xn * g[None, :, None, None] + bt[None, :, None, None]


def _leaky(x):
    return jnp.where(x >= 0, x, 0.2 * x)


def reference_forward(params, x):
    n_group = params["n_group"]
    w, b = params["l1"]
    t = _leaky(_ref_conv(x, w, b, 2, 1))
    for (w2, b2, g2, bt2), (w3, b3, g3, bt3) in params["pairs"]:
        t = _leaky(_ref_gn(_ref_conv(t, w2, b2, 2, 1), g2, bt2, n_group))
        t = _leaky(_ref_gn(_ref_conv(t, w3, b3, 1, 1), g3, bt3, n_group))
    (w, b), (g, bt) = params["prefinal"]
    t = _leaky(_ref_gn(_ref_conv(t, w, b, 1, 1), g, bt, n_group))
    w, b = params["final"]
    return _ref_conv(t, w, b, 1, 0)


# --------------------------------- main ---------------------------------------

if __name__ == "__main__":
    # args: nchannels=4, ndf=32, n_disc_layers=2, n_groupnorm=4, final_act=None
    NC, NDF, N_LAYERS, N_GROUP = 4, 32, 2, 4
    N, H, W = 2, 16, 16

    key = jax.random.PRNGKey(0)
    kx, kp = jax.random.split(key)
    x = jax.random.normal(kx, (N, NC, H, W), jnp.float32)
    params = init_params(kp, NC, NDF, N_LAYERS, N_GROUP)

    ref = jax.block_until_ready(reference_forward(params, x))
    assert ref.shape == (N, 1, 4, 4), ref.shape

    # Exactness check: the f32-operand path must match the conv reference.
    fwd_f32 = jax.jit(functools.partial(discriminator_forward, params,
                                        compute_dtype=jnp.float32))
    out_f32 = jax.block_until_ready(fwd_f32(x))
    assert out_f32.shape == ref.shape, (out_f32.shape, ref.shape)
    err32 = float(jnp.max(jnp.abs(out_f32 - ref)))
    assert err32 < 1e-4, err32

    # Fast path: bf16 MXU operands, f32 accumulation / GroupNorm statistics.
    fwd = jax.jit(functools.partial(discriminator_forward, params,
                                    compute_dtype=jnp.bfloat16))
    out = jax.block_until_ready(fwd(x))
    assert out.shape == ref.shape, (out.shape, ref.shape)
    scale = float(jnp.max(jnp.abs(ref)))
    err = float(jnp.max(jnp.abs(out.astype(jnp.float32) - ref)))
    assert err <= max(0.12 * scale, 0.06), (err, scale)

    print("KERNEL_OK")
</pallas_src>

<mosaic_0001>
module attributes {stable_mosaic.version = 11 : i64} {
  func.func @kernel(%arg0: i32, %arg1: memref<1x8x8x128xf32, #tpu.memory_space<vmem>>, %arg2: memref<1x128x128xf32, #tpu.memory_space<vmem>>, %arg3: memref<1x128xf32, #tpu.memory_space<vmem>>, %arg4: memref<1x64x128xf32, #tpu.memory_space<vmem>>) attributes {dimension_semantics = [#tpu.dimension_semantics<parallel>], iteration_bounds = array<i64: 2>, scalar_prefetch = 0 : i64, scratch_operands = 0 : i64, tpu.core_type = #tpu.core_type<tc>, window_params = [{transform_indices = @transform_0, window_bounds = array<i64: 1, 8, 8, 128>}, {pipeline_mode = #tpu.pipeline_mode<synchronous>, transform_indices = @transform_1, window_bounds = array<i64: 1, 128, 128>}, {pipeline_mode = #tpu.pipeline_mode<synchronous>, transform_indices = @transform_2, window_bounds = array<i64: 1, 128>}, {transform_indices = @transform_3, window_bounds = array<i64: 1, 64, 128>}]} {
    %c0 = arith.constant 0 : index
    %c0_0 = arith.constant 0 : index
    %c0_1 = arith.constant 0 : index
    %c0_2 = arith.constant 0 : index
    %0 = vector.load %arg1[%c0, %c0_0, %c0_1, %c0_2] : memref<1x8x8x128xf32, #tpu.memory_space<vmem>>, vector<1x8x8x128xf32>
    %1 = vector.shape_cast %0 : vector<1x8x8x128xf32> to vector<8x8x128xf32>
    %2 = vector.shape_cast %1 : vector<8x8x128xf32> to vector<64x128xf32>
    %c0_3 = arith.constant 0 : index
    %c0_4 = arith.constant 0 : index
    %c0_5 = arith.constant 0 : index
    %3 = vector.load %arg2[%c0_3, %c0_4, %c0_5] : memref<1x128x128xf32, #tpu.memory_space<vmem>>, vector<1x128x128xf32>
    %4 = vector.shape_cast %3 : vector<1x128x128xf32> to vector<128x128xf32>
    %cst = arith.constant dense<0.000000e+00> : vector<64x128xf32>
    %5 = tpu.matmul %2, %4, %cst {dimension_numbers = #tpu.dot_dimension_numbers<[1], [0], [0], [1], [0, 0, 1, 1], [], []>} : vector<64x128xf32>, vector<128x128xf32>, vector<64x128xf32> -> vector<64x128xf32>
    %c0_6 = arith.constant 0 : index
    %c0_7 = arith.constant 0 : index
    %6 = vector.load %arg3[%c0_6, %c0_7] : memref<1x128xf32, #tpu.memory_space<vmem>>, vector<1x128xf32>
    %7 = vector.broadcast %6 : vector<1x128xf32> to vector<64x128xf32>
    %8 = arith.addf %5, %7 : vector<64x128xf32>
    %cst_8 = arith.constant 0.000000e+00 : f32
    %9 = vector.broadcast %cst_8 : f32 to vector<64x128xf32>
    %10 = arith.cmpf oge, %8, %9 : vector<64x128xf32>
    %cst_9 = arith.constant 2.000000e-01 : f32
    %11 = vector.broadcast %cst_9 : f32 to vector<64x128xf32>
    %12 = arith.mulf %11, %8 : vector<64x128xf32>
    %13 = arith.select %10, %8, %12 : vector<64x128xi1>, vector<64x128xf32>
    %c0_10 = arith.constant 0 : index
    %c0_11 = arith.constant 0 : index
    %c0_12 = arith.constant 0 : index
    %14 = vector.load %arg4[%c0_10, %c0_11, %c0_12] : memref<1x64x128xf32, #tpu.memory_space<vmem>>, vector<1x64x128xf32>
    %15 = vector.shape_cast %14 : vector<1x64x128xf32> to vector<64x128xf32>
    %16 = vector.shape_cast %13 : vector<64x128xf32> to vector<1x64x128xf32>
    tpu.vector_store %arg4[%c0_10, %c0_11, %c0_12], %16 {strides = array<i32>} : memref<1x64x128xf32, #tpu.memory_space<vmem>>, vector<1x64x128xf32>,
    return
  }
  func.func @transform_0(%arg0: i32) -> (i32, i32, i32, i32) {
    %c0_i32 = arith.constant 0 : i32
    %c0_i32_0 = arith.constant 0 : i32
    %c0_i32_1 = arith.constant 0 : i32
    %c0_i32_2 = arith.constant 0 : i32
    return %arg0, %c0_i32, %c0_i32_0, %c0_i32_1 : i32, i32, i32, i32
  }
  func.func @transform_1(%arg0: i32) -> (i32, i32, i32) {
    %c0_i32 = arith.constant 0 : i32
    %c0_i32_0 = arith.constant 0 : i32
    %c0_i32_1 = arith.constant 0 : i32
    %c0_i32_2 = arith.constant 0 : i32
    return %c0_i32, %c0_i32_0, %c0_i32_1 : i32, i32, i32
  }
  func.func @transform_2(%arg0: i32) -> (i32, i32) {
    %c0_i32 = arith.constant 0 : i32
    %c0_i32_0 = arith.constant 0 : i32
    %c0_i32_1 = arith.constant 0 : i32
    return %c0_i32, %c0_i32_0 : i32, i32
  }
  func.func @transform_3(%arg0: i32) -> (i32, i32, i32) {
    %c0_i32 = arith.constant 0 : i32
    %c0_i32_0 = arith.constant 0 : i32
    %c0_i32_1 = arith.constant 0 : i32
    return %arg0, %c0_i32, %c0_i32_0 : i32, i32, i32
  }
}

module attributes {stable_mosaic.version = 11 : i64} {
  func.func @kernel(%arg0: i32, %arg1: memref<1x5x8x128xf32, #tpu.memory_space<vmem>>, %arg2: memref<4x128x128xf32, #tpu.memory_space<vmem>>, %arg3: memref<1x128xf32, #tpu.memory_space<vmem>>, %arg4: memref<1x128xf32, #tpu.memory_space<vmem>>, %arg5: memref<1x128xf32, #tpu.memory_space<vmem>>, %arg6: memref<128x128xf32, #tpu.memory_space<vmem>>, %arg7: memref<9x128x128xf32, #tpu.memory_space<vmem>>, %arg8: memref<1x128xf32, #tpu.memory_space<vmem>>, %arg9: memref<1x128xf32, #tpu.memory_space<vmem>>, %arg10: memref<1x128xf32, #tpu.memory_space<vmem>>, %arg11: memref<128x128xf32, #tpu.memory_space<vmem>>, %arg12: memref<9x128x128xf32, #tpu.memory_space<vmem>>, %arg13: memref<1x128xf32, #tpu.memory_space<vmem>>, %arg14: memref<1x128xf32, #tpu.memory_space<vmem>>, %arg15: memref<1x128xf32, #tpu.memory_space<vmem>>, %arg16: memref<128x128xf32, #tpu.memory_space<vmem>>, %arg17: memref<1x128xf32, #tpu.memory_space<vmem>>, %arg18: memref<1x1xf32, #tpu.memory_space<vmem>>, %arg19: memref<1x16x1xf32, #tpu.memory_space<vmem>>, %arg20: memref<6x8x128xf32, #tpu.memory_space<vmem>>, %arg21: memref<6x8x128xf32, #tpu.memory_space<vmem>>) attributes {dimension_semantics = [#tpu.dimension_semantics<parallel>], iteration_bounds = array<i64: 2>, scalar_prefetch = 0 : i64, scratch_operands = 2 : i64, tpu.core_type = #tpu.core_type<tc>, window_params = [{transform_indices = @transform_0, window_bounds = array<i64: 1, 5, 8, 128>}, {pipeline_mode = #tpu.pipeline_mode<synchronous>, transform_indices = @transform_1, window_bounds = array<i64: 4, 128, 128>}, {pipeline_mode = #tpu.pipeline_mode<synchronous>, transform_indices = @transform_2, window_bounds = array<i64: 1, 128>}, {pipeline_mode = #tpu.pipeline_mode<synchronous>, transform_indices = @transform_3, window_bounds = array<i64: 1, 128>}, {pipeline_mode = #tpu.pipeline_mode<synchronous>, transform_indices = @transform_4, window_bounds = array<i64: 1, 128>}, {pipeline_mode = #tpu.pipeline_mode<synchronous>, transform_indices = @transform_5, window_bounds = array<i64: 128, 128>}, {pipeline_mode = #tpu.pipeline_mode<synchronous>, transform_indices = @transform_6, window_bounds = array<i64: 9, 128, 128>}, {pipeline_mode = #tpu.pipeline_mode<synchronous>, transform_indices = @transform_7, window_bounds = array<i64: 1, 128>}, {pipeline_mode = #tpu.pipeline_mode<synchronous>, transform_indices = @transform_8, window_bounds = array<i64: 1, 128>}, {pipeline_mode = #tpu.pipeline_mode<synchronous>, transform_indices = @transform_9, window_bounds = array<i64: 1, 128>}, {pipeline_mode = #tpu.pipeline_mode<synchronous>, transform_indices = @transform_10, window_bounds = array<i64: 128, 128>}, {pipeline_mode = #tpu.pipeline_mode<synchronous>, transform_indices = @transform_11, window_bounds = array<i64: 9, 128, 128>}, {pipeline_mode = #tpu.pipeline_mode<synchronous>, transform_indices = @transform_12, window_bounds = array<i64: 1, 128>}, {pipeline_mode = #tpu.pipeline_mode<synchronous>, transform_indices = @transform_13, window_bounds = array<i64: 1, 128>}, {pipeline_mode = #tpu.pipeline_mode<synchronous>, transform_indices = @transform_14, window_bounds = array<i64: 1, 128>}, {pipeline_mode = #tpu.pipeline_mode<synchronous>, transform_indices = @transform_15, window_bounds = array<i64: 128, 128>}, {pipeline_mode = #tpu.pipeline_mode<synchronous>, transform_indices = @transform_16, window_bounds = array<i64: 1, 128>}, {pipeline_mode = #tpu.pipeline_mode<synchronous>, transform_indices = @transform_17, window_bounds = array<i64: 1, 1>}, {transform_indices = @transform_18, window_bounds = array<i64: 1, 16, 1>}]} {
    %c0 = arith.constant 0 : index
    %c0_0 = arith.constant 0 : index
    %c0_1 = arith.constant 0 : index
    %c0_2 = arith.constant 0 : index
    %0 = vector.load %arg1[%c0, %c0_0, %c0_1, %c0_2] : memref<1x5x8x128xf32, #tpu.memory_space<vmem>>, vector<1x4x4x128xf32>
    %1 = vector.shape_cast %0 : vector<1x4x4x128xf32> to vector<4x4x128xf32>
    %2 = vector.shape_cast %1 : vector<4x4x128xf32> to vector<16x128xf32>
    %c0_3 = arith.constant 0 : index
    %c0_4 = arith.constant 0 : index
    %c0_5 = arith.constant 0 : index
    %3 = vector.load %arg2[%c0_3, %c0_4, %c0_5] : memref<4x128x128xf32, #tpu.memory_space<vmem>>, vector<1x128x128xf32>
    %4 = vector.shape_cast %3 : vector<1x128x128xf32> to vector<128x128xf32>
    %cst = arith.constant dense<0.000000e+00> : vector<16x128xf32>
    %5 = tpu.matmul %2, %4, %cst {dimension_numbers = #tpu.dot_dimension_numbers<[1], [0], [0], [1], [0, 0, 1, 1], [], []>} : vector<16x128xf32>, vector<128x128xf32>, vector<16x128xf32> -> vector<16x128xf32>
    %c0_6 = arith.constant 0 : index
    %c0_7 = arith.constant 0 : index
    %c1 = arith.constant 1 : index
    %c0_8 = arith.constant 0 : index
    %6 = vector.load %arg1[%c0_6, %c0_7, %c1, %c0_8] : memref<1x5x8x128xf32, #tpu.memory_space<vmem>>, vector<1x4x4x128xf32>
    %7 = vector.shape_cast %6 : vector<1x4x4x128xf32> to vector<4x4x128xf32>
    %8 = vector.shape_cast %7 : vector<4x4x128xf32> to vector<16x128xf32>
    %c1_9 = arith.constant 1 : index
    %c0_10 = arith.constant 0 : index
    %c0_11 = arith.constant 0 : index
    %9 = vector.load %arg2[%c1_9, %c0_10, %c0_11] : memref<4x128x128xf32, #tpu.memory_space<vmem>>, vector<1x128x128xf32>
    %10 = vector.shape_cast %9 : vector<1x128x128xf32> to vector<128x128xf32>
    %cst_12 = arith.constant dense<0.000000e+00> : vector<16x128xf32>
    %11 = tpu.matmul %8, %10, %cst_12 {dimension_numbers = #tpu.dot_dimension_numbers<[1], [0], [0], [1], [0, 0, 1, 1], [], []>} : vector<16x128xf32>, vector<128x128xf32>, vector<16x128xf32> -> vector<16x128xf32>
    %12 = arith.addf %5, %11 : vector<16x128xf32>
    %c0_13 = arith.constant 0 : index
    %c1_14 = arith.constant 1 : index
    %c0_15 = arith.constant 0 : index
    %c0_16 = arith.constant 0 : index
    %13 = vector.load %arg1[%c0_13, %c1_14, %c0_15, %c0_16] : memref<1x5x8x128xf32, #tpu.memory_space<vmem>>, vector<1x4x4x128xf32>
    %14 = vector.shape_cast %13 : vector<1x4x4x128xf32> to vector<4x4x128xf32>
    %15 = vector.shape_cast %14 : vector<4x4x128xf32> to vector<16x128xf32>
    %c2 = arith.constant 2 : index
    %c0_17 = arith.constant 0 : index
    %c0_18 = arith.constant 0 : index
    %16 = vector.load %arg2[%c2, %c0_17, %c0_18] : memref<4x128x128xf32, #tpu.memory_space<vmem>>, vector<1x128x128xf32>
    %17 = vector.shape_cast %16 : vector<1x128x128xf32> to vector<128x128xf32>
    %cst_19 = arith.constant dense<0.000000e+00> : vector<16x128xf32>
    %18 = tpu.matmul %15, %17, %cst_19 {dimension_numbers = #tpu.dot_dimension_numbers<[1], [0], [0], [1], [0, 0, 1, 1], [], []>} : vector<16x128xf32>, vector<128x128xf32>, vector<16x128xf32> -> vector<16x128xf32>
    %19 = arith.addf %12, %18 : vector<16x128xf32>
    %c0_20 = arith.constant 0 : index
    %c1_21 = arith.constant 1 : index
    %c1_22 = arith.constant 1 : index
    %c0_23 = arith.constant 0 : index
    %20 = vector.load %arg1[%c0_20, %c1_21, %c1_22, %c0_23] : memref<1x5x8x128xf32, #tpu.memory_space<vmem>>, vector<1x4x4x128xf32>
    %21 = vector.shape_cast %20 : vector<1x4x4x128xf32> to vector<4x4x128xf32>
    %22 = vector.shape_cast %21 : vector<4x4x128xf32> to vector<16x128xf32>
    %c3 = arith.constant 3 : index
    %c0_24 = arith.constant 0 : index
    %c0_25 = arith.constant 0 : index
    %23 = vector.load %arg2[%c3, %c0_24, %c0_25] : memref<4x128x128xf32, #tpu.memory_space<vmem>>, vector<1x128x128xf32>
    %24 = vector.shape_cast %23 : vector<1x128x128xf32> to vector<128x128xf32>
    %cst_26 = arith.constant dense<0.000000e+00> : vector<16x128xf32>
    %25 = tpu.matmul %22, %24, %cst_26 {dimension_numbers = #tpu.dot_dimension_numbers<[1], [0], [0], [1], [0, 0, 1, 1], [], []>} : vector<16x128xf32>, vector<128x128xf32>, vector<16x128xf32> -> vector<16x128xf32>
    %26 = arith.addf %19, %25 : vector<16x128xf32>
    %c0_27 = arith.constant 0 : index
    %c0_28 = arith.constant 0 : index
    %27 = vector.load %arg3[%c0_27, %c0_28] : memref<1x128xf32, #tpu.memory_space<vmem>>, vector<1x128xf32>
    %28 = vector.broadcast %27 : vector<1x128xf32> to vector<16x128xf32>
    %29 = arith.addf %26, %28 : vector<16x128xf32>
    %cst_29 = arith.constant dense<0.000000e+00> : vector<128xf32>
    %30 = vector.multi_reduction <add>, %29, %cst_29 [0] : vector<16x128xf32> to vector<128xf32>
    %31 = vector.shape_cast %30 : vector<128xf32> to vector<1x128xf32>
    %32 = arith.mulf %29, %29 : vector<16x128xf32>
    %cst_30 = arith.constant dense<0.000000e+00> : vector<128xf32>
    %33 = vector.multi_reduction <add>, %32, %cst_30 [0] : vector<16x128xf32> to vector<128xf32>
    %34 = vector.shape_cast %33 : vector<128xf32> to vector<1x128xf32>
    %c0_31 = arith.constant 0 : index
    %c0_32 = arith.constant 0 : index
    %35 = vector.load %arg6[%c0_31, %c0_32] : memref<128x128xf32, #tpu.memory_space<vmem>>, vector<128x128xf32>
    %cst_33 = arith.constant dense<0.000000e+00> : vector<1x128xf32>
    %36 = tpu.matmul %31, %35, %cst_33 {dimension_numbers = #tpu.dot_dimension_numbers<[1], [0], [0], [1], [0, 0, 1, 1], [], []>} : vector<1x128xf32>, vector<128x128xf32>, vector<1x128xf32> -> vector<1x128xf32>
    %c0_34 = arith.constant 0 : index
    %c0_35 = arith.constant 0 : index
    %37 = vector.load %arg6[%c0_34, %c0_35] : memref<128x128xf32, #tpu.memory_space<vmem>>, vector<128x128xf32>
    %cst_36 = arith.constant dense<0.000000e+00> : vector<1x128xf32>
    %38 = tpu.matmul %34, %37, %cst_36 {dimension_numbers = #tpu.dot_dimension_numbers<[1], [0], [0], [1], [0, 0, 1, 1], [], []>} : vector<1x128xf32>, vector<128x128xf32>, vector<1x128xf32> -> vector<1x128xf32>
    %39 = arith.mulf %36, %36 : vector<1x128xf32>
    %40 = arith.subf %38, %39 : vector<1x128xf32>
    %cst_37 = arith.constant 9.99999974E-6 : f32
    %41 = vector.broadcast %cst_37 : f32 to vector<1x128xf32>
    %42 = arith.addf %40, %41 : vector<1x128xf32>
    %43 = math.rsqrt %42 : vector<1x128xf32>
    %44 = vector.broadcast %36 : vector<1x128xf32> to vector<16x128xf32>
    %45 = arith.subf %29, %44 : vector<16x128xf32>
    %46 = vector.broadcast %43 : vector<1x128xf32> to vector<16x128xf32>
    %47 = arith.mulf %45, %46 : vector<16x128xf32>
    %c0_38 = arith.constant 0 : index
    %c0_39 = arith.constant 0 : index
    %48 = vector.load %arg4[%c0_38, %c0_39] : memref<1x128xf32, #tpu.memory_space<vmem>>, vector<1x128xf32>
    %49 = vector.broadcast %48 : vector<1x128xf32> to vector<16x128xf32>
    %50 = arith.mulf %47, %49 : vector<16x128xf32>
    %c0_40 = arith.constant 0 : index
    %c0_41 = arith.constant 0 : index
    %51 = vector.load %arg5[%c0_40, %c0_41] : memref<1x128xf32, #tpu.memory_space<vmem>>, vector<1x128xf32>
    %52 = vector.broadcast %51 : vector<1x128xf32> to vector<16x128xf32>
    %53 = arith.addf %50, %52 : vector<16x128xf32>
    %cst_42 = arith.constant 0.000000e+00 : f32
    %54 = vector.broadcast %cst_42 : f32 to vector<16x128xf32>
    %55 = arith.cmpf oge, %53, %54 : vector<16x128xf32>
    %cst_43 = arith.constant 2.000000e-01 : f32
    %56 = vector.broadcast %cst_43 : f32 to vector<16x128xf32>
    %57 = arith.mulf %56, %53 : vector<16x128xf32>
    %58 = arith.select %55, %53, %57 : vector<16x128xi1>, vector<16x128xf32>
    %cst_44 = arith.constant 0.000000e+00 : f32
    %59 = vector.broadcast %cst_44 : f32 to vector<8x128xf32>
    %cst_45 = arith.constant 0.000000e+00 : f32
    %60 = vector.broadcast %cst_45 : f32 to vector<4x1x128xf32>
    %c0_46 = arith.constant 0 : index
    %c0_47 = arith.constant 0 : index
    %c0_48 = arith.constant 0 : index
    %61 = vector.load %arg20[%c0_46, %c0_47, %c0_48] : memref<6x8x128xf32, #tpu.memory_space<vmem>>, vector<1x8x128xf32>
    %62 = vector.shape_cast %61 : vector<1x8x128xf32> to vector<8x128xf32>
    %63 = vector.shape_cast %59 : vector<8x128xf32> to vector<1x8x128xf32>
    tpu.vector_store %arg20[%c0_46, %c0_47, %c0_48], %63 {strides = array<i32>} : memref<6x8x128xf32, #tpu.memory_space<vmem>>, vector<1x8x128xf32>,
    %c5 = arith.constant 5 : index
    %c0_49 = arith.constant 0 : index
    %c0_50 = arith.constant 0 : index
    %64 = vector.load %arg20[%c5, %c0_49, %c0_50] : memref<6x8x128xf32, #tpu.memory_space<vmem>>, vector<1x8x128xf32>
    %65 = vector.shape_cast %64 : vector<1x8x128xf32> to vector<8x128xf32>
    %66 = vector.shape_cast %59 : vector<8x128xf32> to vector<1x8x128xf32>
    tpu.vector_store %arg20[%c5, %c0_49, %c0_50], %66 {strides = array<i32>} : memref<6x8x128xf32, #tpu.memory_space<vmem>>, vector<1x8x128xf32>,
    %c1_51 = arith.constant 1 : index
    %c0_52 = arith.constant 0 : index
    %c0_53 = arith.constant 0 : index
    %67 = vector.load %arg20[%c1_51, %c0_52, %c0_53] : memref<6x8x128xf32, #tpu.memory_space<vmem>>, vector<4x1x128xf32>
    tpu.vector_store %arg20[%c1_51, %c0_52, %c0_53], %60 {strides = array<i32>} : memref<6x8x128xf32, #tpu.memory_space<vmem>>, vector<4x1x128xf32>,
    %c1_54 = arith.constant 1 : index
    %c5_55 = arith.constant 5 : index
    %c0_56 = arith.constant 0 : index
    %68 = vector.load %arg20[%c1_54, %c5_55, %c0_56] : memref<6x8x128xf32, #tpu.memory_space<vmem>>, vector<4x1x128xf32>
    tpu.vector_store %arg20[%c1_54, %c5_55, %c0_56], %60 {strides = array<i32>} : memref<6x8x128xf32, #tpu.memory_space<vmem>>, vector<4x1x128xf32>,
    %69 = vector.shape_cast %58 : vector<16x128xf32> to vector<4x4x128xf32>
    %c1_57 = arith.constant 1 : index
    %c1_58 = arith.constant 1 : index
    %c0_59 = arith.constant 0 : index
    %70 = vector.load %arg20[%c1_57, %c1_58, %c0_59] : memref<6x8x128xf32, #tpu.memory_space<vmem>>, vector<4x4x128xf32>
    tpu.vector_store %arg20[%c1_57, %c1_58, %c0_59], %69 {strides = array<i32>} : memref<6x8x128xf32, #tpu.memory_space<vmem>>, vector<4x4x128xf32>,
    %c0_60 = arith.constant 0 : index
    %c0_61 = arith.constant 0 : index
    %c0_62 = arith.constant 0 : index
    %71 = vector.load %arg20[%c0_60, %c0_61, %c0_62] : memref<6x8x128xf32, #tpu.memory_space<vmem>>, vector<4x4x128xf32>
    %72 = vector.shape_cast %71 : vector<4x4x128xf32> to vector<16x128xf32>
    %c0_63 = arith.constant 0 : index
    %c0_64 = arith.constant 0 : index
    %c0_65 = arith.constant 0 : index
    %73 = vector.load %arg7[%c0_63, %c0_64, %c0_65] : memref<9x128x128xf32, #tpu.memory_space<vmem>>, vector<1x128x128xf32>
    %74 = vector.shape_cast %73 : vector<1x128x128xf32> to vector<128x128xf32>
    %cst_66 = arith.constant dense<0.000000e+00> : vector<16x128xf32>
    %75 = tpu.matmul %72, %74, %cst_66 {dimension_numbers = #tpu.dot_dimension_numbers<[1], [0], [0], [1], [0, 0, 1, 1], [], []>} : vector<16x128xf32>, vector<128x128xf32>, vector<16x128xf32> -> vector<16x128xf32>
    %c0_67 = arith.constant 0 : index
    %c1_68 = arith.constant 1 : index
    %c0_69 = arith.constant 0 : index
    %76 = vector.load %arg20[%c0_67, %c1_68, %c0_69] : memref<6x8x128xf32, #tpu.memory_space<vmem>>, vector<4x4x128xf32>
    %77 = vector.shape_cast %76 : vector<4x4x128xf32> to vector<16x128xf32>
    %c1_70 = arith.constant 1 : index
    %c0_71 = arith.constant 0 : index
    %c0_72 = arith.constant 0 : index
    %78 = vector.load %arg7[%c1_70, %c0_71, %c0_72] : memref<9x128x128xf32, #tpu.memory_space<vmem>>, vector<1x128x128xf32>
    %79 = vector.shape_cast %78 : vector<1x128x128xf32> to vector<128x128xf32>
    %cst_73 = arith.constant dense<0.000000e+00> : vector<16x128xf32>
    %80 = tpu.matmul %77, %79, %cst_73 {dimension_numbers = #tpu.dot_dimension_numbers<[1], [0], [0], [1], [0, 0, 1, 1], [], []>} : vector<16x128xf32>, vector<128x128xf32>, vector<16x128xf32> -> vector<16x128xf32>
    %81 = arith.addf %75, %80 : vector<16x128xf32>
    %c0_74 = arith.constant 0 : index
    %c2_75 = arith.constant 2 : index
    %c0_76 = arith.constant 0 : index
    %82 = vector.load %arg20[%c0_74, %c2_75, %c0_76] : memref<6x8x128xf32, #tpu.memory_space<vmem>>, vector<4x4x128xf32>
    %83 = vector.shape_cast %82 : vector<4x4x128xf32> to vector<16x128xf32>
    %c2_77 = arith.constant 2 : index
    %c0_78 = arith.constant 0 : index
    %c0_79 = arith.constant 0 : index
    %84 = vector.load %arg7[%c2_77, %c0_78, %c0_79] : memref<9x128x128xf32, #tpu.memory_space<vmem>>, vector<1x128x128xf32>
    %85 = vector.shape_cast %84 : vector<1x128x128xf32> to vector<128x128xf32>
    %cst_80 = arith.constant dense<0.000000e+00> : vector<16x128xf32>
    %86 = tpu.matmul %83, %85, %cst_80 {dimension_numbers = #tpu.dot_dimension_numbers<[1], [0], [0], [1], [0, 0, 1, 1], [], []>} : vector<16x128xf32>, vector<128x128xf32>, vector<16x128xf32> -> vector<16x128xf32>
    %87 = arith.addf %81, %86 : vector<16x128xf32>
    %c1_81 = arith.constant 1 : index
    %c0_82 = arith.constant 0 : index
    %c0_83 = arith.constant 0 : index
    %88 = vector.load %arg20[%c1_81, %c0_82, %c0_83] : memref<6x8x128xf32, #tpu.memory_space<vmem>>, vector<4x4x128xf32>
    %89 = vector.shape_cast %88 : vector<4x4x128xf32> to vector<16x128xf32>
    %c3_84 = arith.constant 3 : index
    %c0_85 = arith.constant 0 : index
    %c0_86 = arith.constant 0 : index
    %90 = vector.load %arg7[%c3_84, %c0_85, %c0_86] : memref<9x128x128xf32, #tpu.memory_space<vmem>>, vector<1x128x128xf32>
    %91 = vector.shape_cast %90 : vector<1x128x128xf32> to vector<128x128xf32>
    %cst_87 = arith.constant dense<0.000000e+00> : vector<16x128xf32>
    %92 = tpu.matmul %89, %91, %cst_87 {dimension_numbers = #tpu.dot_dimension_numbers<[1], [0], [0], [1], [0, 0, 1, 1], [], []>} : vector<16x128xf32>, vector<128x128xf32>, vector<16x128xf32> -> vector<16x128xf32>
    %93 = arith.addf %87, %92 : vector<16x128xf32>
    %c1_88 = arith.constant 1 : index
    %c1_89 = arith.constant 1 : index
    %c0_90 = arith.constant 0 : index
    %94 = vector.load %arg20[%c1_88, %c1_89, %c0_90] : memref<6x8x128xf32, #tpu.memory_space<vmem>>, vector<4x4x128xf32>
    %95 = vector.shape_cast %94 : vector<4x4x128xf32> to vector<16x128xf32>
    %c4 = arith.constant 4 : index
    %c0_91 = arith.constant 0 : index
    %c0_92 = arith.constant 0 : index
    %96 = vector.load %arg7[%c4, %c0_91, %c0_92] : memref<9x128x128xf32, #tpu.memory_space<vmem>>, vector<1x128x128xf32>
    %97 = vector.shape_cast %96 : vector<1x128x128xf32> to vector<128x128xf32>
    %cst_93 = arith.constant dense<0.000000e+00> : vector<16x128xf32>
    %98 = tpu.matmul %95, %97, %cst_93 {dimension_numbers = #tpu.dot_dimension_numbers<[1], [0], [0], [1], [0, 0, 1, 1], [], []>} : vector<16x128xf32>, vector<128x128xf32>, vector<16x128xf32> -> vector<16x128xf32>
    %99 = arith.addf %93, %98 : vector<16x128xf32>
    %c1_94 = arith.constant 1 : index
    %c2_95 = arith.constant 2 : index
    %c0_96 = arith.constant 0 : index
    %100 = vector.load %arg20[%c1_94, %c2_95, %c0_96] : memref<6x8x128xf32, #tpu.memory_space<vmem>>, vector<4x4x128xf32>
    %101 = vector.shape_cast %100 : vector<4x4x128xf32> to vector<16x128xf32>
    %c5_97 = arith.constant 5 : index
    %c0_98 = arith.constant 0 : index
    %c0_99 = arith.constant 0 : index
    %102 = vector.load %arg7[%c5_97, %c0_98, %c0_99] : memref<9x128x128xf32, #tpu.memory_space<vmem>>, vector<1x128x128xf32>
    %103 = vector.shape_cast %102 : vector<1x128x128xf32> to vector<128x128xf32>
    %cst_100 = arith.constant dense<0.000000e+00> : vector<16x128xf32>
    %104 = tpu.matmul %101, %103, %cst_100 {dimension_numbers = #tpu.dot_dimension_numbers<[1], [0], [0], [1], [0, 0, 1, 1], [], []>} : vector<16x128xf32>, vector<128x128xf32>, vector<16x128xf32> -> vector<16x128xf32>
    %105 = arith.addf %99, %104 : vector<16x128xf32>
    %c2_101 = arith.constant 2 : index
    %c0_102 = arith.constant 0 : index
    %c0_103 = arith.constant 0 : index
    %106 = vector.load %arg20[%c2_101, %c0_102, %c0_103] : memref<6x8x128xf32, #tpu.memory_space<vmem>>, vector<4x4x128xf32>
    %107 = vector.shape_cast %106 : vector<4x4x128xf32> to vector<16x128xf32>
    %c6 = arith.constant 6 : index
    %c0_104 = arith.constant 0 : index
    %c0_105 = arith.constant 0 : index
    %108 = vector.load %arg7[%c6, %c0_104, %c0_105] : memref<9x128x128xf32, #tpu.memory_space<vmem>>, vector<1x128x128xf32>
    %109 = vector.shape_cast %108 : vector<1x128x128xf32> to vector<128x128xf32>
    %cst_106 = arith.constant dense<0.000000e+00> : vector<16x128xf32>
    %110 = tpu.matmul %107, %109, %cst_106 {dimension_numbers = #tpu.dot_dimension_numbers<[1], [0], [0], [1], [0, 0, 1, 1], [], []>} : vector<16x128xf32>, vector<128x128xf32>, vector<16x128xf32> -> vector<16x128xf32>
    %111 = arith.addf %105, %110 : vector<16x128xf32>
    %c2_107 = arith.constant 2 : index
    %c1_108 = arith.constant 1 : index
    %c0_109 = arith.constant 0 : index
    %112 = vector.load %arg20[%c2_107, %c1_108, %c0_109] : memref<6x8x128xf32, #tpu.memory_space<vmem>>, vector<4x4x128xf32>
    %113 = vector.shape_cast %112 : vector<4x4x128xf32> to vector<16x128xf32>
    %c7 = arith.constant 7 : index
    %c0_110 = arith.constant 0 : index
    %c0_111 = arith.constant 0 : index
    %114 = vector.load %arg7[%c7, %c0_110, %c0_111] : memref<9x128x128xf32, #tpu.memory_space<vmem>>, vector<1x128x128xf32>
    %115 = vector.shape_cast %114 : vector<1x128x128xf32> to vector<128x128xf32>
    %cst_112 = arith.constant dense<0.000000e+00> : vector<16x128xf32>
    %116 = tpu.matmul %113, %115, %cst_112 {dimension_numbers = #tpu.dot_dimension_numbers<[1], [0], [0], [1], [0, 0, 1, 1], [], []>} : vector<16x128xf32>, vector<128x128xf32>, vector<16x128xf32> -> vector<16x128xf32>
    %117 = arith.addf %111, %116 : vector<16x128xf32>
    %c2_113 = arith.constant 2 : index
    %c2_114 = arith.constant 2 : index
    %c0_115 = arith.constant 0 : index
    %118 = vector.load %arg20[%c2_113, %c2_114, %c0_115] : memref<6x8x128xf32, #tpu.memory_space<vmem>>, vector<4x4x128xf32>
    %119 = vector.shape_cast %118 : vector<4x4x128xf32> to vector<16x128xf32>
    %c8 = arith.constant 8 : index
    %c0_116 = arith.constant 0 : index
    %c0_117 = arith.constant 0 : index
    %120 = vector.load %arg7[%c8, %c0_116, %c0_117] : memref<9x128x128xf32, #tpu.memory_space<vmem>>, vector<1x128x128xf32>
    %121 = vector.shape_cast %120 : vector<1x128x128xf32> to vector<128x128xf32>
    %cst_118 = arith.constant dense<0.000000e+00> : vector<16x128xf32>
    %122 = tpu.matmul %119, %121, %cst_118 {dimension_numbers = #tpu.dot_dimension_numbers<[1], [0], [0], [1], [0, 0, 1, 1], [], []>} : vector<16x128xf32>, vector<128x128xf32>, vector<16x128xf32> -> vector<16x128xf32>
    %123 = arith.addf %117, %122 : vector<16x128xf32>
    %c0_119 = arith.constant 0 : index
    %c0_120 = arith.constant 0 : index
    %124 = vector.load %arg8[%c0_119, %c0_120] : memref<1x128xf32, #tpu.memory_space<vmem>>, vector<1x128xf32>
    %125 = vector.broadcast %124 : vector<1x128xf32> to vector<16x128xf32>
    %126 = arith.addf %123, %125 : vector<16x128xf32>
    %cst_121 = arith.constant dense<0.000000e+00> : vector<128xf32>
    %127 = vector.multi_reduction <add>, %126, %cst_121 [0] : vector<16x128xf32> to vector<128xf32>
    %128 = vector.shape_cast %127 : vector<128xf32> to vector<1x128xf32>
    %129 = arith.mulf %126, %126 : vector<16x128xf32>
    %cst_122 = arith.constant dense<0.000000e+00> : vector<128xf32>
    %130 = vector.multi_reduction <add>, %129, %cst_122 [0] : vector<16x128xf32> to vector<128xf32>
    %131 = vector.shape_cast %130 : vector<128xf32> to vector<1x128xf32>
    %c0_123 = arith.constant 0 : index
    %c0_124 = arith.constant 0 : index
    %132 = vector.load %arg11[%c0_123, %c0_124] : memref<128x128xf32, #tpu.memory_space<vmem>>, vector<128x128xf32>
    %cst_125 = arith.constant dense<0.000000e+00> : vector<1x128xf32>
    %133 = tpu.matmul %128, %132, %cst_125 {dimension_numbers = #tpu.dot_dimension_numbers<[1], [0], [0], [1], [0, 0, 1, 1], [], []>} : vector<1x128xf32>, vector<128x128xf32>, vector<1x128xf32> -> vector<1x128xf32>
    %c0_126 = arith.constant 0 : index
    %c0_127 = arith.constant 0 : index
    %134 = vector.load %arg11[%c0_126, %c0_127] : memref<128x128xf32, #tpu.memory_space<vmem>>, vector<128x128xf32>
    %cst_128 = arith.constant dense<0.000000e+00> : vector<1x128xf32>
    %135 = tpu.matmul %131, %134, %cst_128 {dimension_numbers = #tpu.dot_dimension_numbers<[1], [0], [0], [1], [0, 0, 1, 1], [], []>} : vector<1x128xf32>, vector<128x128xf32>, vector<1x128xf32> -> vector<1x128xf32>
    %136 = arith.mulf %133, %133 : vector<1x128xf32>
    %137 = arith.subf %135, %136 : vector<1x128xf32>
    %cst_129 = arith.constant 9.99999974E-6 : f32
    %138 = vector.broadcast %cst_129 : f32 to vector<1x128xf32>
    %139 = arith.addf %137, %138 : vector<1x128xf32>
    %140 = math.rsqrt %139 : vector<1x128xf32>
    %141 = vector.broadcast %133 : vector<1x128xf32> to vector<16x128xf32>
    %142 = arith.subf %126, %141 : vector<16x128xf32>
    %143 = vector.broadcast %140 : vector<1x128xf32> to vector<16x128xf32>
    %144 = arith.mulf %142, %143 : vector<16x128xf32>
    %c0_130 = arith.constant 0 : index
    %c0_131 = arith.constant 0 : index
    %145 = vector.load %arg9[%c0_130, %c0_131] : memref<1x128xf32, #tpu.memory_space<vmem>>, vector<1x128xf32>
    %146 = vector.broadcast %145 : vector<1x128xf32> to vector<16x128xf32>
    %147 = arith.mulf %144, %146 : vector<16x128xf32>
    %c0_132 = arith.constant 0 : index
    %c0_133 = arith.constant 0 : index
    %148 = vector.load %arg10[%c0_132, %c0_133] : memref<1x128xf32, #tpu.memory_space<vmem>>, vector<1x128xf32>
    %149 = vector.broadcast %148 : vector<1x128xf32> to vector<16x128xf32>
    %150 = arith.addf %147, %149 : vector<16x128xf32>
    %cst_134 = arith.constant 0.000000e+00 : f32
    %151 = vector.broadcast %cst_134 : f32 to vector<16x128xf32>
    %152 = arith.cmpf oge, %150, %151 : vector<16x128xf32>
    %cst_135 = arith.constant 2.000000e-01 : f32
    %153 = vector.broadcast %cst_135 : f32 to vector<16x128xf32>
    %154 = arith.mulf %153, %150 : vector<16x128xf32>
    %155 = arith.select %152, %150, %154 : vector<16x128xi1>, vector<16x128xf32>
    %cst_136 = arith.constant 0.000000e+00 : f32
    %156 = vector.broadcast %cst_136 : f32 to vector<8x128xf32>
    %cst_137 = arith.constant 0.000000e+00 : f32
    %157 = vector.broadcast %cst_137 : f32 to vector<4x1x128xf32>
    %c0_138 = arith.constant 0 : index
    %c0_139 = arith.constant 0 : index
    %c0_140 = arith.constant 0 : index
    %158 = vector.load %arg21[%c0_138, %c0_139, %c0_140] : memref<6x8x128xf32, #tpu.memory_space<vmem>>, vector<1x8x128xf32>
    %159 = vector.shape_cast %158 : vector<1x8x128xf32> to vector<8x128xf32>
    %160 = vector.shape_cast %156 : vector<8x128xf32> to vector<1x8x128xf32>
    tpu.vector_store %arg21[%c0_138, %c0_139, %c0_140], %160 {strides = array<i32>} : memref<6x8x128xf32, #tpu.memory_space<vmem>>, vector<1x8x128xf32>,
    %c5_141 = arith.constant 5 : index
    %c0_142 = arith.constant 0 : index
    %c0_143 = arith.constant 0 : index
    %161 = vector.load %arg21[%c5_141, %c0_142, %c0_143] : memref<6x8x128xf32, #tpu.memory_space<vmem>>, vector<1x8x128xf32>
    %162 = vector.shape_cast %161 : vector<1x8x128xf32> to vector<8x128xf32>
    %163 = vector.shape_cast %156 : vector<8x128xf32> to vector<1x8x128xf32>
    tpu.vector_store %arg21[%c5_141, %c0_142, %c0_143], %163 {strides = array<i32>} : memref<6x8x128xf32, #tpu.memory_space<vmem>>, vector<1x8x128xf32>,
    %c1_144 = arith.constant 1 : index
    %c0_145 = arith.constant 0 : index
    %c0_146 = arith.constant 0 : index
    %164 = vector.load %arg21[%c1_144, %c0_145, %c0_146] : memref<6x8x128xf32, #tpu.memory_space<vmem>>, vector<4x1x128xf32>
    tpu.vector_store %arg21[%c1_144, %c0_145, %c0_146], %157 {strides = array<i32>} : memref<6x8x128xf32, #tpu.memory_space<vmem>>, vector<4x1x128xf32>,
    %c1_147 = arith.constant 1 : index
    %c5_148 = arith.constant 5 : index
    %c0_149 = arith.constant 0 : index
    %165 = vector.load %arg21[%c1_147, %c5_148, %c0_149] : memref<6x8x128xf32, #tpu.memory_space<vmem>>, vector<4x1x128xf32>
    tpu.vector_store %arg21[%c1_147, %c5_148, %c0_149], %157 {strides = array<i32>} : memref<6x8x128xf32, #tpu.memory_space<vmem>>, vector<4x1x128xf32>,
    %166 = vector.shape_cast %155 : vector<16x128xf32> to vector<4x4x128xf32>
    %c1_150 = arith.constant 1 : index
    %c1_151 = arith.constant 1 : index
    %c0_152 = arith.constant 0 : index
    %167 = vector.load %arg21[%c1_150, %c1_151, %c0_152] : memref<6x8x128xf32, #tpu.memory_space<vmem>>, vector<4x4x128xf32>
    tpu.vector_store %arg21[%c1_150, %c1_151, %c0_152], %166 {strides = array<i32>} : memref<6x8x128xf32, #tpu.memory_space<vmem>>, vector<4x4x128xf32>,
    %c0_153 = arith.constant 0 : index
    %c0_154 = arith.constant 0 : index
    %c0_155 = arith.constant 0 : index
    %168 = vector.load %arg21[%c0_153, %c0_154, %c0_155] : memref<6x8x128xf32, #tpu.memory_space<vmem>>, vector<4x4x128xf32>
    %169 = vector.shape_cast %168 : vector<4x4x128xf32> to vector<16x128xf32>
    %c0_156 = arith.constant 0 : index
    %c0_157 = arith.constant 0 : index
    %c0_158 = arith.constant 0 : index
    %170 = vector.load %arg12[%c0_156, %c0_157, %c0_158] : memref<9x128x128xf32, #tpu.memory_space<vmem>>, vector<1x128x128xf32>
    %171 = vector.shape_cast %170 : vector<1x128x128xf32> to vector<128x128xf32>
    %cst_159 = arith.constant dense<0.000000e+00> : vector<16x128xf32>
    %172 = tpu.matmul %169, %171, %cst_159 {dimension_numbers = #tpu.dot_dimension_numbers<[1], [0], [0], [1], [0, 0, 1, 1], [], []>} : vector<16x128xf32>, vector<128x128xf32>, vector<16x128xf32> -> vector<16x128xf32>
    %c0_160 = arith.constant 0 : index
    %c1_161 = arith.constant 1 : index
    %c0_162 = arith.constant 0 : index
    %173 = vector.load %arg21[%c0_160, %c1_161, %c0_162] : memref<6x8x128xf32, #tpu.memory_space<vmem>>, vector<4x4x128xf32>
    %174 = vector.shape_cast %173 : vector<4x4x128xf32> to vector<16x128xf32>
    %c1_163 = arith.constant 1 : index
    %c0_164 = arith.constant 0 : index
    %c0_165 = arith.constant 0 : index
    %175 = vector.load %arg12[%c1_163, %c0_164, %c0_165] : memref<9x128x128xf32, #tpu.memory_space<vmem>>, vector<1x128x128xf32>
    %176 = vector.shape_cast %175 : vector<1x128x128xf32> to vector<128x128xf32>
    %cst_166 = arith.constant dense<0.000000e+00> : vector<16x128xf32>
    %177 = tpu.matmul %174, %176, %cst_166 {dimension_numbers = #tpu.dot_dimension_numbers<[1], [0], [0], [1], [0, 0, 1, 1], [], []>} : vector<16x128xf32>, vector<128x128xf32>, vector<16x128xf32> -> vector<16x128xf32>
    %178 = arith.addf %172, %177 : vector<16x128xf32>
    %c0_167 = arith.constant 0 : index
    %c2_168 = arith.constant 2 : index
    %c0_169 = arith.constant 0 : index
    %179 = vector.load %arg21[%c0_167, %c2_168, %c0_169] : memref<6x8x128xf32, #tpu.memory_space<vmem>>, vector<4x4x128xf32>
    %180 = vector.shape_cast %179 : vector<4x4x128xf32> to vector<16x128xf32>
    %c2_170 = arith.constant 2 : index
    %c0_171 = arith.constant 0 : index
    %c0_172 = arith.constant 0 : index
    %181 = vector.load %arg12[%c2_170, %c0_171, %c0_172] : memref<9x128x128xf32, #tpu.memory_space<vmem>>, vector<1x128x128xf32>
    %182 = vector.shape_cast %181 : vector<1x128x128xf32> to vector<128x128xf32>
    %cst_173 = arith.constant dense<0.000000e+00> : vector<16x128xf32>
    %183 = tpu.matmul %180, %182, %cst_173 {dimension_numbers = #tpu.dot_dimension_numbers<[1], [0], [0], [1], [0, 0, 1, 1], [], []>} : vector<16x128xf32>, vector<128x128xf32>, vector<16x128xf32> -> vector<16x128xf32>
    %184 = arith.addf %178, %183 : vector<16x128xf32>
    %c1_174 = arith.constant 1 : index
    %c0_175 = arith.constant 0 : index
    %c0_176 = arith.constant 0 : index
    %185 = vector.load %arg21[%c1_174, %c0_175, %c0_176] : memref<6x8x128xf32, #tpu.memory_space<vmem>>, vector<4x4x128xf32>
    %186 = vector.shape_cast %185 : vector<4x4x128xf32> to vector<16x128xf32>
    %c3_177 = arith.constant 3 : index
    %c0_178 = arith.constant 0 : index
    %c0_179 = arith.constant 0 : index
    %187 = vector.load %arg12[%c3_177, %c0_178, %c0_179] : memref<9x128x128xf32, #tpu.memory_space<vmem>>, vector<1x128x128xf32>
    %188 = vector.shape_cast %187 : vector<1x128x128xf32> to vector<128x128xf32>
    %cst_180 = arith.constant dense<0.000000e+00> : vector<16x128xf32>
    %189 = tpu.matmul %186, %188, %cst_180 {dimension_numbers = #tpu.dot_dimension_numbers<[1], [0], [0], [1], [0, 0, 1, 1], [], []>} : vector<16x128xf32>, vector<128x128xf32>, vector<16x128xf32> -> vector<16x128xf32>
    %190 = arith.addf %184, %189 : vector<16x128xf32>
    %c1_181 = arith.constant 1 : index
    %c1_182 = arith.constant 1 : index
    %c0_183 = arith.constant 0 : index
    %191 = vector.load %arg21[%c1_181, %c1_182, %c0_183] : memref<6x8x128xf32, #tpu.memory_space<vmem>>, vector<4x4x128xf32>
    %192 = vector.shape_cast %191 : vector<4x4x128xf32> to vector<16x128xf32>
    %c4_184 = arith.constant 4 : index
    %c0_185 = arith.constant 0 : index
    %c0_186 = arith.constant 0 : index
    %193 = vector.load %arg12[%c4_184, %c0_185, %c0_186] : memref<9x128x128xf32, #tpu.memory_space<vmem>>, vector<1x128x128xf32>
    %194 = vector.shape_cast %193 : vector<1x128x128xf32> to vector<128x128xf32>
    %cst_187 = arith.constant dense<0.000000e+00> : vector<16x128xf32>
    %195 = tpu.matmul %192, %194, %cst_187 {dimension_numbers = #tpu.dot_dimension_numbers<[1], [0], [0], [1], [0, 0, 1, 1], [], []>} : vector<16x128xf32>, vector<128x128xf32>, vector<16x128xf32> -> vector<16x128xf32>
    %196 = arith.addf %190, %195 : vector<16x128xf32>
    %c1_188 = arith.constant 1 : index
    %c2_189 = arith.constant 2 : index
    %c0_190 = arith.constant 0 : index
    %197 = vector.load %arg21[%c1_188, %c2_189, %c0_190] : memref<6x8x128xf32, #tpu.memory_space<vmem>>, vector<4x4x128xf32>
    %198 = vector.shape_cast %197 : vector<4x4x128xf32> to vector<16x128xf32>
    %c5_191 = arith.constant 5 : index
    %c0_192 = arith.constant 0 : index
    %c0_193 = arith.constant 0 : index
    %199 = vector.load %arg12[%c5_191, %c0_192, %c0_193] : memref<9x128x128xf32, #tpu.memory_space<vmem>>, vector<1x128x128xf32>
    %200 = vector.shape_cast %199 : vector<1x128x128xf32> to vector<128x128xf32>
    %cst_194 = arith.constant dense<0.000000e+00> : vector<16x128xf32>
    %201 = tpu.matmul %198, %200, %cst_194 {dimension_numbers = #tpu.dot_dimension_numbers<[1], [0], [0], [1], [0, 0, 1, 1], [], []>} : vector<16x128xf32>, vector<128x128xf32>, vector<16x128xf32> -> vector<16x128xf32>
    %202 = arith.addf %196, %201 : vector<16x128xf32>
    %c2_195 = arith.constant 2 : index
    %c0_196 = arith.constant 0 : index
    %c0_197 = arith.constant 0 : index
    %203 = vector.load %arg21[%c2_195, %c0_196, %c0_197] : memref<6x8x128xf32, #tpu.memory_space<vmem>>, vector<4x4x128xf32>
    %204 = vector.shape_cast %203 : vector<4x4x128xf32> to vector<16x128xf32>
    %c6_198 = arith.constant 6 : index
    %c0_199 = arith.constant 0 : index
    %c0_200 = arith.constant 0 : index
    %205 = vector.load %arg12[%c6_198, %c0_199, %c0_200] : memref<9x128x128xf32, #tpu.memory_space<vmem>>, vector<1x128x128xf32>
    %206 = vector.shape_cast %205 : vector<1x128x128xf32> to vector<128x128xf32>
    %cst_201 = arith.constant dense<0.000000e+00> : vector<16x128xf32>
    %207 = tpu.matmul %204, %206, %cst_201 {dimension_numbers = #tpu.dot_dimension_numbers<[1], [0], [0], [1], [0, 0, 1, 1], [], []>} : vector<16x128xf32>, vector<128x128xf32>, vector<16x128xf32> -> vector<16x128xf32>
    %208 = arith.addf %202, %207 : vector<16x128xf32>
    %c2_202 = arith.constant 2 : index
    %c1_203 = arith.constant 1 : index
    %c0_204 = arith.constant 0 : index
    %209 = vector.load %arg21[%c2_202, %c1_203, %c0_204] : memref<6x8x128xf32, #tpu.memory_space<vmem>>, vector<4x4x128xf32>
    %210 = vector.shape_cast %209 : vector<4x4x128xf32> to vector<16x128xf32>
    %c7_205 = arith.constant 7 : index
    %c0_206 = arith.constant 0 : index
    %c0_207 = arith.constant 0 : index
    %211 = vector.load %arg12[%c7_205, %c0_206, %c0_207] : memref<9x128x128xf32, #tpu.memory_space<vmem>>, vector<1x128x128xf32>
    %212 = vector.shape_cast %211 : vector<1x128x128xf32> to vector<128x128xf32>
    %cst_208 = arith.constant dense<0.000000e+00> : vector<16x128xf32>
    %213 = tpu.matmul %210, %212, %cst_208 {dimension_numbers = #tpu.dot_dimension_numbers<[1], [0], [0], [1], [0, 0, 1, 1], [], []>} : vector<16x128xf32>, vector<128x128xf32>, vector<16x128xf32> -> vector<16x128xf32>
    %214 = arith.addf %208, %213 : vector<16x128xf32>
    %c2_209 = arith.constant 2 : index
    %c2_210 = arith.constant 2 : index
    %c0_211 = arith.constant 0 : index
    %215 = vector.load %arg21[%c2_209, %c2_210, %c0_211] : memref<6x8x128xf32, #tpu.memory_space<vmem>>, vector<4x4x128xf32>
    %216 = vector.shape_cast %215 : vector<4x4x128xf32> to vector<16x128xf32>
    %c8_212 = arith.constant 8 : index
    %c0_213 = arith.constant 0 : index
    %c0_214 = arith.constant 0 : index
    %217 = vector.load %arg12[%c8_212, %c0_213, %c0_214] : memref<9x128x128xf32, #tpu.memory_space<vmem>>, vector<1x128x128xf32>
    %218 = vector.shape_cast %217 : vector<1x128x128xf32> to vector<128x128xf32>
    %cst_215 = arith.constant dense<0.000000e+00> : vector<16x128xf32>
    %219 = tpu.matmul %216, %218, %cst_215 {dimension_numbers = #tpu.dot_dimension_numbers<[1], [0], [0], [1], [0, 0, 1, 1], [], []>} : vector<16x128xf32>, vector<128x128xf32>, vector<16x128xf32> -> vector<16x128xf32>
    %220 = arith.addf %214, %219 : vector<16x128xf32>
    %c0_216 = arith.constant 0 : index
    %c0_217 = arith.constant 0 : index
    %221 = vector.load %arg13[%c0_216, %c0_217] : memref<1x128xf32, #tpu.memory_space<vmem>>, vector<1x128xf32>
    %222 = vector.broadcast %221 : vector<1x128xf32> to vector<16x128xf32>
    %223 = arith.addf %220, %222 : vector<16x128xf32>
    %cst_218 = arith.constant dense<0.000000e+00> : vector<128xf32>
    %224 = vector.multi_reduction <add>, %223, %cst_218 [0] : vector<16x128xf32> to vector<128xf32>
    %225 = vector.shape_cast %224 : vector<128xf32> to vector<1x128xf32>
    %226 = arith.mulf %223, %223 : vector<16x128xf32>
    %cst_219 = arith.constant dense<0.000000e+00> : vector<128xf32>
    %227 = vector.multi_reduction <add>, %226, %cst_219 [0] : vector<16x128xf32> to vector<128xf32>
    %228 = vector.shape_cast %227 : vector<128xf32> to vector<1x128xf32>
    %c0_220 = arith.constant 0 : index
    %c0_221 = arith.constant 0 : index
    %229 = vector.load %arg16[%c0_220, %c0_221] : memref<128x128xf32, #tpu.memory_space<vmem>>, vector<128x128xf32>
    %cst_222 = arith.constant dense<0.000000e+00> : vector<1x128xf32>
    %230 = tpu.matmul %225, %229, %cst_222 {dimension_numbers = #tpu.dot_dimension_numbers<[1], [0], [0], [1], [0, 0, 1, 1], [], []>} : vector<1x128xf32>, vector<128x128xf32>, vector<1x128xf32> -> vector<1x128xf32>
    %c0_223 = arith.constant 0 : index
    %c0_224 = arith.constant 0 : index
    %231 = vector.load %arg16[%c0_223, %c0_224] : memref<128x128xf32, #tpu.memory_space<vmem>>, vector<128x128xf32>
    %cst_225 = arith.constant dense<0.000000e+00> : vector<1x128xf32>
    %232 = tpu.matmul %228, %231, %cst_225 {dimension_numbers = #tpu.dot_dimension_numbers<[1], [0], [0], [1], [0, 0, 1, 1], [], []>} : vector<1x128xf32>, vector<128x128xf32>, vector<1x128xf32> -> vector<1x128xf32>
    %233 = arith.mulf %230, %230 : vector<1x128xf32>
    %234 = arith.subf %232, %233 : vector<1x128xf32>
    %cst_226 = arith.constant 9.99999974E-6 : f32
    %235 = vector.broadcast %cst_226 : f32 to vector<1x128xf32>
    %236 = arith.addf %234, %235 : vector<1x128xf32>
    %237 = math.rsqrt %236 : vector<1x128xf32>
    %238 = vector.broadcast %230 : vector<1x128xf32> to vector<16x128xf32>
    %239 = arith.subf %223, %238 : vector<16x128xf32>
    %240 = vector.broadcast %237 : vector<1x128xf32> to vector<16x128xf32>
    %241 = arith.mulf %239, %240 : vector<16x128xf32>
    %c0_227 = arith.constant 0 : index
    %c0_228 = arith.constant 0 : index
    %242 = vector.load %arg14[%c0_227, %c0_228] : memref<1x128xf32, #tpu.memory_space<vmem>>, vector<1x128xf32>
    %243 = vector.broadcast %242 : vector<1x128xf32> to vector<16x128xf32>
    %244 = arith.mulf %241, %243 : vector<16x128xf32>
    %c0_229 = arith.constant 0 : index
    %c0_230 = arith.constant 0 : index
    %245 = vector.load %arg15[%c0_229, %c0_230] : memref<1x128xf32, #tpu.memory_space<vmem>>, vector<1x128xf32>
    %246 = vector.broadcast %245 : vector<1x128xf32> to vector<16x128xf32>
    %247 = arith.addf %244, %246 : vector<16x128xf32>
    %cst_231 = arith.constant 0.000000e+00 : f32
    %248 = vector.broadcast %cst_231 : f32 to vector<16x128xf32>
    %249 = arith.cmpf oge, %247, %248 : vector<16x128xf32>
    %cst_232 = arith.constant 2.000000e-01 : f32
    %250 = vector.broadcast %cst_232 : f32 to vector<16x128xf32>
    %251 = arith.mulf %250, %247 : vector<16x128xf32>
    %252 = arith.select %249, %247, %251 : vector<16x128xi1>, vector<16x128xf32>
    %c0_233 = arith.constant 0 : index
    %c0_234 = arith.constant 0 : index
    %253 = vector.load %arg17[%c0_233, %c0_234] : memref<1x128xf32, #tpu.memory_space<vmem>>, vector<1x128xf32>
    %254 = vector.broadcast %253 : vector<1x128xf32> to vector<16x128xf32>
    %255 = arith.mulf %252, %254 : vector<16x128xf32>
    %cst_235 = arith.constant dense<0.000000e+00> : vector<16xf32>
    %256 = vector.multi_reduction <add>, %255, %cst_235 [1] : vector<16x128xf32> to vector<16xf32>
    %257 = vector.shape_cast %256 : vector<16xf32> to vector<16x1xf32>
    %c0_236 = arith.constant 0 : index
    %c0_237 = arith.constant 0 : index
    %258 = vector.load %arg18[%c0_236, %c0_237] : memref<1x1xf32, #tpu.memory_space<vmem>>, vector<1x1xf32>
    %259 = vector.broadcast %258 : vector<1x1xf32> to vector<16x1xf32>
    %260 = arith.addf %257, %259 : vector<16x1xf32>
    %c0_238 = arith.constant 0 : index
    %c0_239 = arith.constant 0 : index
    %c0_240 = arith.constant 0 : index
    %261 = vector.load %arg19[%c0_238, %c0_239, %c0_240] : memref<1x16x1xf32, #tpu.memory_space<vmem>>, vector<1x16x1xf32>
    %262 = vector.shape_cast %261 : vector<1x16x1xf32> to vector<16x1xf32>
    %263 = vector.shape_cast %260 : vector<16x1xf32> to vector<1x16x1xf32>
    tpu.vector_store %arg19[%c0_238, %c0_239, %c0_240], %263 {strides = array<i32>} : memref<1x16x1xf32, #tpu.memory_space<vmem>>, vector<1x16x1xf32>,
    return
  }
  func.func @transform_0(%arg0: i32) -> (i32, i32, i32, i32) {
    %c0_i32 = arith.constant 0 : i32
    %c0_i32_0 = arith.constant 0 : i32
    %c0_i32_1 = arith.constant 0 : i32
    %c0_i32_2 = arith.constant 0 : i32
    return %arg0, %c0_i32, %c0_i32_0, %c0_i32_1 : i32, i32, i32, i32
  }
  func.func @transform_1(%arg0: i32) -> (i32, i32, i32) {
    %c0_i32 = arith.constant 0 : i32
    %c0_i32_0 = arith.constant 0 : i32
    %c0_i32_1 = arith.constant 0 : i32
    %c0_i32_2 = arith.constant 0 : i32
    return %c0_i32, %c0_i32_0, %c0_i32_1 : i32, i32, i32
  }
  func.func @transform_2(%arg0: i32) -> (i32, i32) {
    %c0_i32 = arith.constant 0 : i32
    %c0_i32_0 = arith.constant 0 : i32
    %c0_i32_1 = arith.constant 0 : i32
    return %c0_i32, %c0_i32_0 : i32, i32
  }
  func.func @transform_3(%arg0: i32) -> (i32, i32) {
    %c0_i32 = arith.constant 0 : i32
    %c0_i32_0 = arith.constant 0 : i32
    %c0_i32_1 = arith.constant 0 : i32
    return %c0_i32, %c0_i32_0 : i32, i32
  }
  func.func @transform_4(%arg0: i32) -> (i32, i32) {
    %c0_i32 = arith.constant 0 : i32
    %c0_i32_0 = arith.constant 0 : i32
    %c0_i32_1 = arith.constant 0 : i32
    return %c0_i32, %c0_i32_0 : i32, i32
  }
  func.func @transform_5(%arg0: i32) -> (i32, i32) {
    %c0_i32 = arith.constant 0 : i32
    %c0_i32_0 = arith.constant 0 : i32
    %c0_i32_1 = arith.constant 0 : i32
    return %c0_i32, %c0_i32_0 : i32, i32
  }
  func.func @transform_6(%arg0: i32) -> (i32, i32, i32) {
    %c0_i32 = arith.constant 0 : i32
    %c0_i32_0 = arith.constant 0 : i32
    %c0_i32_1 = arith.constant 0 : i32
    %c0_i32_2 = arith.constant 0 : i32
    return %c0_i32, %c0_i32_0, %c0_i32_1 : i32, i32, i32
  }
  func.func @transform_7(%arg0: i32) -> (i32, i32) {
    %c0_i32 = arith.constant 0 : i32
    %c0_i32_0 = arith.constant 0 : i32
    %c0_i32_1 = arith.constant 0 : i32
    return %c0_i32, %c0_i32_0 : i32, i32
  }
  func.func @transform_8(%arg0: i32) -> (i32, i32) {
    %c0_i32 = arith.constant 0 : i32
    %c0_i32_0 = arith.constant 0 : i32
    %c0_i32_1 = arith.constant 0 : i32
    return %c0_i32, %c0_i32_0 : i32, i32
  }
  func.func @transform_9(%arg0: i32) -> (i32, i32) {
    %c0_i32 = arith.constant 0 : i32
    %c0_i32_0 = arith.constant 0 : i32
    %c0_i32_1 = arith.constant 0 : i32
    return %c0_i32, %c0_i32_0 : i32, i32
  }
  func.func @transform_10(%arg0: i32) -> (i32, i32) {
    %c0_i32 = arith.constant 0 : i32
    %c0_i32_0 = arith.constant 0 : i32
    %c0_i32_1 = arith.constant 0 : i32
    return %c0_i32, %c0_i32_0 : i32, i32
  }
  func.func @transform_11(%arg0: i32) -> (i32, i32, i32) {
    %c0_i32 = arith.constant 0 : i32
    %c0_i32_0 = arith.constant 0 : i32
    %c0_i32_1 = arith.constant 0 : i32
    %c0_i32_2 = arith.constant 0 : i32
    return %c0_i32, %c0_i32_0, %c0_i32_1 : i32, i32, i32
  }
  func.func @transform_12(%arg0: i32) -> (i32, i32) {
    %c0_i32 = arith.constant 0 : i32
    %c0_i32_0 = arith.constant 0 : i32
    %c0_i32_1 = arith.constant 0 : i32
    return %c0_i32, %c0_i32_0 : i32, i32
  }
  func.func @transform_13(%arg0: i32) -> (i32, i32) {
    %c0_i32 = arith.constant 0 : i32
    %c0_i32_0 = arith.constant 0 : i32
    %c0_i32_1 = arith.constant 0 : i32
    return %c0_i32, %c0_i32_0 : i32, i32
  }
  func.func @transform_14(%arg0: i32) -> (i32, i32) {
    %c0_i32 = arith.constant 0 : i32
    %c0_i32_0 = arith.constant 0 : i32
    %c0_i32_1 = arith.constant 0 : i32
    return %c0_i32, %c0_i32_0 : i32, i32
  }
  func.func @transform_15(%arg0: i32) -> (i32, i32) {
    %c0_i32 = arith.constant 0 : i32
    %c0_i32_0 = arith.constant 0 : i32
    %c0_i32_1 = arith.constant 0 : i32
    return %c0_i32, %c0_i32_0 : i32, i32
  }
  func.func @transform_16(%arg0: i32) -> (i32, i32) {
    %c0_i32 = arith.constant 0 : i32
    %c0_i32_0 = arith.constant 0 : i32
    %c0_i32_1 = arith.constant 0 : i32
    return %c0_i32, %c0_i32_0 : i32, i32
  }
  func.func @transform_17(%arg0: i32) -> (i32, i32) {
    %c0_i32 = arith.constant 0 : i32
    %c0_i32_0 = arith.constant 0 : i32
    %c0_i32_1 = arith.constant 0 : i32
    return %c0_i32, %c0_i32_0 : i32, i32
  }
  func.func @transform_18(%arg0: i32) -> (i32, i32, i32) {
    %c0_i32 = arith.constant 0 : i32
    %c0_i32_0 = arith.constant 0 : i32
    %c0_i32_1 = arith.constant 0 : i32
    return %arg0, %c0_i32, %c0_i32_0 : i32, i32, i32
  }
}

</mosaic_0001>

<bundles_post_ra>
// kernel: discriminator_forward.2
= control target key start
LH: loop header
LB: loop body
LE: loop exit
PB: predicated region body
PF: predicated region fallthrough
CT: control target
= control target key end

     0   :  { %s544_s12 = smov 0   ;;  %s633_s0 = inlined_call_operand.vmem [shape: f32[2,8,8,128], index: 0, kind: input, shape index: {}]   ;;  %s634_s1 = inlined_call_operand.vmem [shape: f32[1,128,128], index: 1, kind: input, shape index: {}]   ;;  %s635_s2 = inlined_call_operand.vmem [shape: f32[1,128], index: 2, kind: input, shape index: {}]   ;;  %s636_s3 = inlined_call_operand.vmem [shape: f32[2,64,128], index: 3, kind: output, shape index: {}]  }
   0x1 LB: > { %s394_s13 = sadd.s32 4294967295, %s522_s12   ;;  %p398_p0 = scmp.ge.s32.totalorder %s522_s12, 1  ;;  %s522_s12 = sphi %s544_s12, %s13_s12  }
   0x2   : > { %p137_p1 = scmp.lt.s32.totalorder %s522_s12, 3 }
   0x4   : > { %p138_p2 = pnand %p398_p0, %p137_p1 }
   0x5   : > { %p161_p3 = scmp.lt.s32.totalorder (!%p138_p2), %s394_s13, 1 }
   0x6   : > { %141 = sbr.rel (%p138_p2) target bundleno = 252 (0xfc), region = 32 }
   0xb   : > { %v194_v0 = vld [vmem:[%s634_s1 + $0x78] sm:$0xff]  ;;  %v193_v1 = vld [vmem:[%s634_s1 + $0x70] sm:$0xff]  ;;  %v192_v2 = vld [vmem:[%s634_s1 + $0x68] sm:$0xff]  ;;  %s638_s13 = smov (!%p161_p3, %s394_s13), 1 }
   0xc   : > { %432 = vmatprep.subr.mxu0 %v194_v0  ;;  %476 = vmatprep.subr.mxu1 %v194_v0  ;;  %v191_v3 = vld [vmem:[%s634_s1 + $0x60] sm:$0xff]  ;;  %v190_v4 = vld [vmem:[%s634_s1 + $0x58] sm:$0xff]  ;;  %v189_v5 = vld [vmem:[%s634_s1 + $0x50] sm:$0xff]  ;;  %s406_s17 = sshll.u32 %s638_s13, 6 }
   0xd   : > { %433 = vmatpush3.msra.mxu0 %v194_v0  ;;  %492 = vmatpush3.msra.mxu1 %v194_v0  ;;  %v188_v6 = vld [vmem:[%s634_s1 + $0x48] sm:$0xff]  ;;  %v187_v7 = vld [vmem:[%s634_s1 + $0x40] sm:$0xff]  ;;  %v186_v8 = vld [vmem:[%s634_s1 + $0x38] sm:$0xff]  ;;  %s165_s22 = scalar_lea.vmem %s633_s0, %s406_s17  ;;  %s620_s29 = scalar_lea.vmem %s636_s3, %s406_s17 }
   0xe   : > { %434 = vmatprep.subr.mxu0 %v193_v1  ;;  %477 = vmatprep.subr.mxu1 %v193_v1  ;;  %v185_v9 = vld [vmem:[%s634_s1 + $0x30] sm:$0xff]  ;;  %v184_v10 = vld [vmem:[%s634_s1 + $0x28] sm:$0xff]  ;;  %v183_v11 = vld [vmem:[%s634_s1 + $0x20] sm:$0xff] }
   0xf   : > { %435 = vmatpush3.msra.mxu0 %v193_v1  ;;  %493 = vmatpush3.msra.mxu1 %v193_v1  ;;  %v182_v12 = vld [vmem:[%s634_s1 + $0x18] sm:$0xff]  ;;  %v181_v13 = vld [vmem:[%s634_s1 + $0x10] sm:$0xff]  ;;  %v180_v14 = vld [vmem:[%s634_s1 + $0x8] sm:$0xff] }
  0x10   : > { %436 = vmatprep.subr.mxu0 %v192_v2  ;;  %478 = vmatprep.subr.mxu1 %v192_v2  ;;  %v179_v15 = vld [vmem:[%s634_s1] sm:$0xff]  ;;  %v172_v18 = vld [vmem:[%s165_s22 + $0x8] sm:$0xff]  ;;  %v173_v20 = vld [vmem:[%s165_s22 + $0x10] sm:$0xff] }
  0x11   : > { %437 = vmatpush3.msra.mxu0 %v192_v2  ;;  %494 = vmatpush3.msra.mxu1 %v192_v2  ;;  %v171_v16 = vld [vmem:[%s165_s22] sm:$0xff]  ;;  %v176_v19 = vld [vmem:[%s165_s22 + $0x28] sm:$0xff]  ;;  %v177_v21 = vld [vmem:[%s165_s22 + $0x30] sm:$0xff] }
  0x12   : > { %438 = vmatprep.subr.mxu0 %v191_v3  ;;  %479 = vmatprep.subr.mxu1 %v191_v3  ;;  %v175_v17 = vld [vmem:[%s165_s22 + $0x20] sm:$0xff]  ;;  %v174_v22 = vld [vmem:[%s165_s22 + $0x18] sm:$0xff] }
  0x13   : > { %439 = vmatpush3.msra.mxu0 %v191_v3  ;;  %495 = vmatpush3.msra.mxu1 %v191_v3  ;;  %v178_v23 = vld [vmem:[%s165_s22 + $0x38] sm:$0xff]  ;;  %v403_v24 = vld [vmem:[%s635_s2] ss:$0 sm:$0xff] }
  0x14   : > { %440 = vmatprep.subr.mxu0 %v190_v4  ;;  %480 = vmatprep.subr.mxu1 %v190_v4 }
  0x15   : > { %441 = vmatpush3.msra.mxu0 %v190_v4  ;;  %496 = vmatpush3.msra.mxu1 %v190_v4 }
  0x16   : > { %442 = vmatprep.subr.mxu0 %v189_v5  ;;  %481 = vmatprep.subr.mxu1 %v189_v5 }
  0x17   : > { %443 = vmatpush3.msra.mxu0 %v189_v5  ;;  %497 = vmatpush3.msra.mxu1 %v189_v5 }
  0x18   : > { %444 = vmatprep.subr.mxu0 %v188_v6  ;;  %482 = vmatprep.subr.mxu1 %v188_v6 }
  0x19   : > { %445 = vmatpush3.msra.mxu0 %v188_v6  ;;  %498 = vmatpush3.msra.mxu1 %v188_v6 }
  0x1a   : > { %446 = vmatprep.subr.mxu0 %v187_v7  ;;  %483 = vmatprep.subr.mxu1 %v187_v7 }
  0x1b   : > { %447 = vmatpush3.msra.mxu0 %v187_v7  ;;  %499 = vmatpush3.msra.mxu1 %v187_v7 }
  0x1c   : > { %448 = vmatprep.subr.mxu0 %v186_v8  ;;  %484 = vmatprep.subr.mxu1 %v186_v8 }
  0x1d   : > { %449 = vmatpush3.msra.mxu0 %v186_v8  ;;  %500 = vmatpush3.msra.mxu1 %v186_v8 }
  0x1e   : > { %450 = vmatprep.subr.mxu0 %v185_v9  ;;  %485 = vmatprep.subr.mxu1 %v185_v9 }
  0x1f   : > { %451 = vmatpush3.msra.mxu0 %v185_v9  ;;  %501 = vmatpush3.msra.mxu1 %v185_v9 }
  0x20   : > { %452 = vmatprep.subr.mxu0 %v184_v10  ;;  %486 = vmatprep.subr.mxu1 %v184_v10 }
  0x21   : > { %453 = vmatpush3.msra.mxu0 %v184_v10  ;;  %502 = vmatpush3.msra.mxu1 %v184_v10 }
  0x22   : > { %454 = vmatprep.subr.mxu0 %v183_v11  ;;  %487 = vmatprep.subr.mxu1 %v183_v11 }
  0x23   : > { %455 = vmatpush3.msra.mxu0 %v183_v11  ;;  %503 = vmatpush3.msra.mxu1 %v183_v11 }
  0x24   : > { %456 = vmatprep.subr.mxu0 %v182_v12  ;;  %488 = vmatprep.subr.mxu1 %v182_v12 }
  0x25   : > { %457 = vmatpush3.msra.mxu0 %v182_v12  ;;  %504 = vmatpush3.msra.mxu1 %v182_v12 }
  0x26   : > { %458 = vmatprep.subr.mxu0 %v181_v13  ;;  %489 = vmatprep.subr.mxu1 %v181_v13 }
  0x27   : > { %459 = vmatpush3.msra.mxu0 %v181_v13  ;;  %505 = vmatpush3.msra.mxu1 %v181_v13 }
  0x28   : > { %460 = vmatprep.subr.mxu0 %v180_v14  ;;  %490 = vmatprep.subr.mxu1 %v180_v14 }
  0x29   : > { %461 = vmatpush3.msra.mxu0 %v180_v14  ;;  %506 = vmatpush3.msra.mxu1 %v180_v14 }
  0x2a   : > { %462 = vmatprep.subr.mxu0 %v179_v15  ;;  %491 = vmatprep.subr.mxu1 %v179_v15 }
  0x2b   : > { %463 = vmatpush3.msra.mxu0 %v179_v15  ;;  %507 = vmatpush3.msra.mxu1 %v179_v15 }
  0x2c   : > { %464 = vmatprep.mubr.f32.mxu0 %v171_v16  ;;  %470 = vmatprep.mubr.f32.mxu1 %v175_v17 }
  0x2d   : > { %465 = vmatmul.mubr.f32.vlgmr.msra.gmra.mxu0 %v172_v18  ;;  %471 = vmatmul.mubr.f32.vlgmr.msra.gmra.mxu1 %v176_v19 }
  0x2e   : > { %467 = vmatprep.mubr.f32.mxu0 %v173_v20  ;;  %473 = vmatprep.mubr.f32.mxu1 %v177_v21 }
  0x31   : > { %468 = vmatmul.mubr.f32.gmra.mxu0 %v174_v22  ;;  %474 = vmatmul.mubr.f32.gmra.mxu1 %v178_v23 }
  0xed   : > { %v466_v25 = vpop.f32.mrf.mxu0  ;;  %v472_v26 = vpop.f32.mrf.mxu1 }
  0xee   : > { %v274_v27 = vadd.f32 %v466_v25, %v403_v24  ;;  %v294_v28 = vadd.f32 %v472_v26, %v403_v24 }
  0xef   : > { %v268_v29 = vpop.f32.mrf.mxu0  ;;  %v288_v30 = vpop.f32.mrf.mxu1 }
  0xf0   : > { %vm308_vm0 = vcmp.ge.f32.partialorder %v274_v27, 0.0  ;;  %v316_v31 = vmul.f32 0.2, %v274_v27  ;;  %vm312_vm1 = vcmp.ge.f32.partialorder %v294_v28, 0.0  ;;  %v320_v32 = vmul.f32 0.2, %v294_v28 }
  0xf1   : > { %v269_v33 = vadd.f32 %v403_v24, %v268_v29  ;;  %v289_v34 = vadd.f32 %v403_v24, %v288_v30  ;;  %v469_v35 = vpop.f32.mrf.mxu0  ;;  %v475_v36 = vpop.f32.mrf.mxu1 }
  0xf2   : > { %v324_v37 = vsel %vm308_vm0, %v274_v27, %v316_v31  ;;  %v328_v38 = vsel %vm312_vm1, %v294_v28, %v320_v32  ;;  %v284_v39 = vadd.f32 %v469_v35, %v403_v24  ;;  %v304_v40 = vadd.f32 %v475_v36, %v403_v24 }
  0xf3   : > { %332 = vst [vmem:[%s620_s29 + $0x8] sm:$0xff] %v324_v37  ;;  %336 = vst [vmem:[%s620_s29 + $0x28] sm:$0xff] %v328_v38  ;;  %vm307_vm2 = vcmp.ge.f32.partialorder %v269_v33, 0.0  ;;  %v315_v41 = vmul.f32 0.2, %v269_v33  ;;  %vm311_vm3 = vcmp.ge.f32.partialorder %v289_v34, 0.0  ;;  %v278_v43 = vpop.f32.mrf.mxu0  ;;  %v298_v44 = vpop.f32.mrf.mxu1 }
  0xf4   : > { %v319_v42 = vmul.f32 0.2, %v289_v34  ;;  %vm310_vm4 = vcmp.ge.f32.partialorder %v284_v39, 0.0  ;;  %v318_v45 = vmul.f32 0.2, %v284_v39  ;;  %vm314_vm5 = vcmp.ge.f32.partialorder %v304_v40, 0.0 }
  0xf5   : > { %v322_v46 = vmul.f32 0.2, %v304_v40  ;;  %v323_v47 = vsel %vm307_vm2, %v269_v33, %v315_v41  ;;  %v279_v49 = vadd.f32 %v403_v24, %v278_v43  ;;  %v299_v50 = vadd.f32 %v403_v24, %v298_v44 }
  0xf6   : > { %v327_v48 = vsel %vm311_vm3, %v289_v34, %v319_v42  ;;  %331 = vst [vmem:[%s620_s29] sm:$0xff] %v323_v47  ;;  %v326_v51 = vsel %vm310_vm4, %v284_v39, %v318_v45 }
  0xf7   : > { %335 = vst [vmem:[%s620_s29 + $0x20] sm:$0xff] %v327_v48  ;;  %v330_v52 = vsel %vm314_vm5, %v304_v40, %v322_v46  ;;  %334 = vst [vmem:[%s620_s29 + $0x18] sm:$0xff] %v326_v51  ;;  %vm309_vm6 = vcmp.ge.f32.partialorder %v279_v49, 0.0  ;;  %v317_v53 = vmul.f32 0.2, %v279_v49  ;;  %vm313_vm7 = vcmp.ge.f32.partialorder %v299_v50, 0.0 }
  0xf8   : > { %338 = vst [vmem:[%s620_s29 + $0x38] sm:$0xff] %v330_v52  ;;  %v321_v54 = vmul.f32 0.2, %v299_v50 }
  0xf9   : > { %v325_v55 = vsel %vm309_vm6, %v279_v49, %v317_v53 }
  0xfa   : > { %v329_v56 = vsel %vm313_vm7, %v299_v50, %v321_v54  ;;  %333 = vst [vmem:[%s620_s29 + $0x10] sm:$0xff] %v325_v55 }
  0xfb   : > { %337 = vst [vmem:[%s620_s29 + $0x30] sm:$0xff] %v329_v56 }
  0xfc PF: > { %s13_s12 = sadd.s32 1, %s522_s12  }
  0xfd   : > { %p10_p4 = scmp.ge.s32.totalorder %s13_s12, 4  }
  0xff   :  { %12 = sbr.rel (!%p10_p4) target bundleno = 1 (0x1), region = 62 }

// kernel: discriminator_forward.3
= control target key start
LH: loop header
LB: loop body
LE: loop exit
PB: predicated region body
PF: predicated region fallthrough
CT: control target
= control target key end

     0   :  { %s5668_s29 = smov 0   ;;  %s7093_s0 = inlined_call_operand.vmem [shape: f32[2,5,8,128], index: 0, kind: input, shape index: {}]   ;;  %s7094_s1 = inlined_call_operand.vmem [shape: f32[4,128,128], index: 1, kind: input, shape index: {}]   ;;  %s7095_s2 = inlined_call_operand.vmem [shape: f32[1,128], index: 2, kind: input, shape index: {}]   ;;  %s7096_s3 = inlined_call_operand.vmem [shape: f32[1,128], index: 3, kind: input, shape index: {}]   ;;  %s7097_s4 = inlined_call_operand.vmem [shape: f32[1,128], index: 4, kind: input, shape index: {}]   ;;  %s7098_s5 = inlined_call_operand.vmem [shape: f32[128,128], index: 5, kind: input, shape index: {}, may-alias: {5,10}]   ;;  %s7099_s6 = inlined_call_operand.vmem [shape: f32[9,128,128], index: 6, kind: input, shape index: {}]   ;;  %s7100_s7 = inlined_call_operand.vmem [shape: f32[1,128], index: 7, kind: input, shape index: {}]   ;;  %s7101_s8 = inlined_call_operand.vmem [shape: f32[1,128], index: 8, kind: input, shape index: {}]   ;;  %s7102_s9 = inlined_call_operand.vmem [shape: f32[1,128], index: 9, kind: input, shape index: {}]   ;;  %s7103_s10 = inlined_call_operand.vmem [shape: f32[128,128], index: 10, kind: input, shape index: {}, may-alias: {5,10}]   ;;  %s7104_s11 = inlined_call_operand.vmem [shape: f32[9,128,128], index: 11, kind: input, shape index: {}]   ;;  %s7105_s12 = inlined_call_operand.vmem [shape: f32[1,128], index: 12, kind: input, shape index: {}]   ;;  %s7106_s13 = inlined_call_operand.vmem [shape: f32[1,128], index: 13, kind: input, shape index: {}]   ;;  %s7107_s14 = inlined_call_operand.vmem [shape: f32[1,128], index: 14, kind: input, shape index: {}]   ;;  %s7108_s15 = inlined_call_operand.vmem [shape: f32[128,128], index: 15, kind: input, shape index: {}]   ;;  %s7109_s16 = inlined_call_operand.vmem [shape: f32[1,128], index: 16, kind: input, shape index: {}]   ;;  %s7110_s17 = inlined_call_operand.<no memory space> [shape: f32[1,1], index: 17, kind: input, shape index: {}]   ;;  %s7111_s18 = inlined_call_operand.vmem [shape: f32[2,16,1], index: 18, kind: output, shape index: {}]  }
   0x1   :  { %7113 = sst [smem:[#allocation5_spill]] %s7093_s0  ;;  %v23_v0 = vstv %s7110_s17 }
   0x2   :  { %7114 = sst [smem:[#allocation6_spill]] %s7094_s1  ;;  %24 = vst [vmem:[#allocation4] sm:$0x1] %v23_v0 }
   0x3   :  { %7115 = sst [smem:[#allocation7_spill]] %s7095_s2 }
   0x4 LB: > { %s3685_s30 = sadd.s32 4294967295, %s5566_s29   ;;  %p3689_p0 = scmp.ge.s32.totalorder %s5566_s29, 1  ;;  %s5566_s29 = sphi %s5668_s29, %s30_s29  }
   0x5   : > { %p514_p1 = scmp.lt.s32.totalorder %s5566_s29, 3 }
   0x7   : > { %p515_p2 = pnand %p3689_p0, %p514_p1 }
   0x8   : > { %s7116_s1 = sld [smem:[#allocation6_spill]] (!%p515_p2)  ;;  %p568_p3 = scmp.lt.s32.totalorder (!%p515_p2), %s3685_s30, 1 }
   0x9   : > { %518 = sbr.rel (%p515_p2) target bundleno = 1830 (0x726), region = 92  ;;  %s7117_s19 = sld [smem:[#allocation5_spill]] (!%p515_p2) }
   0xa   : > { %s7118_s23 = sld [smem:[#allocation7_spill]] (!%p515_p2) }
   0xe   : > { %v3708_v1 = vld [vmem:[%s7116_s1 + $0xf8] sm:$0xff]  ;;  %v3707_v3 = vld [vmem:[%s7116_s1 + $0xf0] sm:$0xff]  ;;  %v3706_v5 = vld [vmem:[%s7116_s1 + $0xe8] sm:$0xff]  ;;  %s7120_s30 = smov (!%p568_p3, %s3685_s30), 1  ;;  %vm5569_vm0 = vmmov 0   ;;  %vm3627_vm7 = vcmask 7168  }
   0xf   : > { %v597_v2 = vld [vmem:[%s7116_s1 + $0x78] sm:$0xff]  ;;  %4517 = vmatprep.subr.mxu0 %v3708_v1  ;;  %v596_v4 = vld [vmem:[%s7116_s1 + $0x70] sm:$0xff]  ;;  %v595_v6 = vld [vmem:[%s7116_s1 + $0x68] sm:$0xff]  ;;  %s5497_s20 = smul.u32 40, %s7120_s30 }
  0x10   : > { %4552 = vmatprep.subr.mxu1 %v597_v2  ;;  %4518 = vmatpush3.msra.mxu0 %v3708_v1  ;;  %v3705_v7 = vld [vmem:[%s7116_s1 + $0xe0] sm:$0xff]  ;;  %v3704_v9 = vld [vmem:[%s7116_s1 + $0xd8] sm:$0xff]  ;;  %v3703_v11 = vld [vmem:[%s7116_s1 + $0xd0] sm:$0xff] }
  0x11   : > { %4553 = vmatpush3.msra.mxu1 %v597_v2  ;;  %4519 = vmatprep.subr.mxu0 %v3707_v3  ;;  %v594_v8 = vld [vmem:[%s7116_s1 + $0x60] sm:$0xff]  ;;  %v593_v10 = vld [vmem:[%s7116_s1 + $0x58] sm:$0xff]  ;;  %v592_v12 = vld [vmem:[%s7116_s1 + $0x50] sm:$0xff]  ;;  %s5718_s17 = scalar_lea.vmem %s7117_s19, %s5497_s20  ;;  %s4018_s19 = sshll.u32 %s7120_s30, 4 }
  0x12   : > { %4554 = vmatprep.subr.mxu1 %v596_v4  ;;  %4520 = vmatpush3.msra.mxu0 %v3707_v3  ;;  %v3702_v13 = vld [vmem:[%s7116_s1 + $0xc8] sm:$0xff]  ;;  %v3701_v15 = vld [vmem:[%s7116_s1 + $0xc0] sm:$0xff]  ;;  %v3700_v17 = vld [vmem:[%s7116_s1 + $0xb8] sm:$0xff]  ;;  %s577_s2 = scalar_lea.vmem %s7111_s18, %s4018_s19 }
  0x13   : > { %4555 = vmatpush3.msra.mxu1 %v596_v4  ;;  %4521 = vmatprep.subr.mxu0 %v3706_v5  ;;  %v591_v14 = vld [vmem:[%s7116_s1 + $0x48] sm:$0xff]  ;;  %v590_v16 = vld [vmem:[%s7116_s1 + $0x40] sm:$0xff]  ;;  %v589_v18 = vld [vmem:[%s7116_s1 + $0x38] sm:$0xff] }
  0x14   : > { %4556 = vmatprep.subr.mxu1 %v595_v6  ;;  %4522 = vmatpush3.msra.mxu0 %v3706_v5  ;;  %v3699_v19 = vld [vmem:[%s7116_s1 + $0xb0] sm:$0xff]  ;;  %v3698_v21 = vld [vmem:[%s7116_s1 + $0xa8] sm:$0xff]  ;;  %v3697_v23 = vld [vmem:[%s7116_s1 + $0xa0] sm:$0xff] }
  0x15   : > { %4557 = vmatpush3.msra.mxu1 %v595_v6  ;;  %4523 = vmatprep.subr.mxu0 %v3705_v7  ;;  %v588_v20 = vld [vmem:[%s7116_s1 + $0x30] sm:$0xff]  ;;  %v587_v22 = vld [vmem:[%s7116_s1 + $0x28] sm:$0xff]  ;;  %v586_v24 = vld [vmem:[%s7116_s1 + $0x20] sm:$0xff] }
  0x16   : > { %4558 = vmatprep.subr.mxu1 %v594_v8  ;;  %4524 = vmatpush3.msra.mxu0 %v3705_v7  ;;  %v3696_v25 = vld [vmem:[%s7116_s1 + $0x98] sm:$0xff]  ;;  %v3695_v27 = vld [vmem:[%s7116_s1 + $0x90] sm:$0xff]  ;;  %v3694_v29 = vld [vmem:[%s7116_s1 + $0x88] sm:$0xff] }
  0x17   : > { %4559 = vmatpush3.msra.mxu1 %v594_v8  ;;  %4525 = vmatprep.subr.mxu0 %v3704_v9  ;;  %v585_v26 = vld [vmem:[%s7116_s1 + $0x18] sm:$0xff]  ;;  %v584_v28 = vld [vmem:[%s7116_s1 + $0x10] sm:$0xff]  ;;  %v583_v30 = vld [vmem:[%s7116_s1 + $0x8] sm:$0xff] }
  0x18   : > { %4560 = vmatprep.subr.mxu1 %v593_v10  ;;  %4526 = vmatpush3.msra.mxu0 %v3704_v9  ;;  %v3693_v31 = vld [vmem:[%s7116_s1 + $0x80] sm:$0xff]  ;;  %v5510_v35 = vld [vmem:[%s5718_s17 + $0x11] ss:$8 sps:$4 sm:$0xff]   ;;  %v3726_v41 = vld [vmem:[%s7116_s1 + $0x168] sm:$0xff] }
  0x19   : > { %4561 = vmatpush3.msra.mxu1 %v593_v10  ;;  %4527 = vmatprep.subr.mxu0 %v3703_v11  ;;  %v582_v32 = vld [vmem:[%s7116_s1] sm:$0xff]  ;;  %v5511_v36 = vld [vmem:[%s5718_s17 + $0x10] ss:$8 sps:$4 sm:$0xff]   ;;  %v3746_v42 = vld [vmem:[%s7116_s1 + $0x1e8] sm:$0xff]  ;;  %v5568_v10 = vmov 0.0  }
  0x1a   : > { %4562 = vmatprep.subr.mxu1 %v592_v12  ;;  %4528 = vmatpush3.msra.mxu0 %v3703_v11  ;;  %v5508_v33 = vld [vmem:[%s5718_s17 + $0x1] ss:$8 sps:$4 sm:$0xff]   ;;  %v3728_v37 = vld [vmem:[%s7116_s1 + $0x178] sm:$0xff]  ;;  %v3727_v39 = vld [vmem:[%s7116_s1 + $0x170] sm:$0xff]  ;;  %1219 = vst [vmem:[#allocation2] sm:$0xff] %v5568_v10 }
  0x1b   : > { %4563 = vmatpush3.msra.mxu1 %v592_v12  ;;  %4529 = vmatprep.subr.mxu0 %v3702_v13  ;;  %v5509_v34 = vld [vmem:[%s5718_s17] ss:$8 sps:$4 sm:$0xff]   ;;  %v3748_v38 = vld [vmem:[%s7116_s1 + $0x1f8] sm:$0xff]  ;;  %v3747_v40 = vld [vmem:[%s7116_s1 + $0x1f0] sm:$0xff]  ;;  %1221 = vst [vmem:[#allocation2 + $0x28] sm:$0xff] %v5568_v10 }
  0x1c   : > { %4564 = vmatprep.subr.mxu1 %v591_v14  ;;  %4530 = vmatpush3.msra.mxu0 %v3702_v13  ;;  %v3725_v43 = vld [vmem:[%s7116_s1 + $0x160] sm:$0xff]  ;;  %v3724_v45 = vld [vmem:[%s7116_s1 + $0x158] sm:$0xff]  ;;  %v3723_v47 = vld [vmem:[%s7116_s1 + $0x150] sm:$0xff]  ;;  %1223 = vst [vmem:[#allocation2 + $0x8] sm:$0x1] %v5568_v10 }
  0x1d   : > { %4565 = vmatpush3.msra.mxu1 %v591_v14  ;;  %4531 = vmatprep.subr.mxu0 %v3701_v15  ;;  %v3745_v44 = vld [vmem:[%s7116_s1 + $0x1e0] sm:$0xff]  ;;  %v3744_v46 = vld [vmem:[%s7116_s1 + $0x1d8] sm:$0xff]  ;;  %v3743_v48 = vld [vmem:[%s7116_s1 + $0x1d0] sm:$0xff]  ;;  %1224 = vst [vmem:[#allocation2 + $0x10] sm:$0x1] %v5568_v10 }
  0x1e   : > { %4566 = vmatprep.subr.mxu1 %v590_v16  ;;  %4532 = vmatpush3.msra.mxu0 %v3701_v15  ;;  %v3722_v49 = vld [vmem:[%s7116_s1 + $0x148] sm:$0xff]  ;;  %v3721_v51 = vld [vmem:[%s7116_s1 + $0x140] sm:$0xff]  ;;  %v3720_v53 = vld [vmem:[%s7116_s1 + $0x138] sm:$0xff]  ;;  %1225 = vst [vmem:[#allocation2 + $0x18] sm:$0x1] %v5568_v10 }
  0x1f   : > { %4567 = vmatpush3.msra.mxu1 %v590_v16  ;;  %4533 = vmatprep.subr.mxu0 %v3700_v17  ;;  %v3742_v50 = vld [vmem:[%s7116_s1 + $0x1c8] sm:$0xff]  ;;  %v3741_v52 = vld [vmem:[%s7116_s1 + $0x1c0] sm:$0xff]  ;;  %v3740_v54 = vld [vmem:[%s7116_s1 + $0x1b8] sm:$0xff]  ;;  %1226 = vst [vmem:[#allocation2 + $0x20] sm:$0x1] %v5568_v10 }
  0x20   : > { %4568 = vmatprep.subr.mxu1 %v589_v18  ;;  %4534 = vmatpush3.msra.mxu0 %v3700_v17  ;;  %v3719_v55 = vld [vmem:[%s7116_s1 + $0x130] sm:$0xff]  ;;  %v3718_v57 = vld [vmem:[%s7116_s1 + $0x128] sm:$0xff]  ;;  %v3717_v59 = vld [vmem:[%s7116_s1 + $0x120] sm:$0xff]  ;;  %1227 = vst [vmem:[#allocation2 + $0xd] sm:$0x1] %v5568_v10 }
  0x21   : > { %4569 = vmatpush3.msra.mxu1 %v589_v18  ;;  %4535 = vmatprep.subr.mxu0 %v3699_v19  ;;  %v3739_v56 = vld [vmem:[%s7116_s1 + $0x1b0] sm:$0xff]  ;;  %v3738_v58 = vld [vmem:[%s7116_s1 + $0x1a8] sm:$0xff]  ;;  %v3737_v60 = vld [vmem:[%s7116_s1 + $0x1a0] sm:$0xff]  ;;  %1228 = vst [vmem:[#allocation2 + $0x15] sm:$0x1] %v5568_v10 }
  0x22   : > { %4570 = vmatprep.subr.mxu1 %v588_v20  ;;  %4536 = vmatpush3.msra.mxu0 %v3699_v19  ;;  %v3716_v61 = vld [vmem:[%s7116_s1 + $0x118] sm:$0xff]  ;;  %v3715_v63 = vld [vmem:[%s7116_s1 + $0x110] sm:$0xff]  ;;  %v3714_v1 = vld [vmem:[%s7116_s1 + $0x108] sm:$0xff]  ;;  %1229 = vst [vmem:[#allocation2 + $0x1d] sm:$0x1] %v5568_v10 }
  0x23   : > { %4571 = vmatpush3.msra.mxu1 %v588_v20  ;;  %4537 = vmatprep.subr.mxu0 %v3698_v21  ;;  %v3736_v62 = vld [vmem:[%s7116_s1 + $0x198] sm:$0xff]  ;;  %v3735_v0 = vld [vmem:[%s7116_s1 + $0x190] sm:$0xff]  ;;  %v3734_v2 = vld [vmem:[%s7116_s1 + $0x188] sm:$0xff]  ;;  %1230 = vst [vmem:[#allocation2 + $0x25] sm:$0x1] %v5568_v10 }
  0x24   : > { %4572 = vmatprep.subr.mxu1 %v587_v22  ;;  %4538 = vmatpush3.msra.mxu0 %v3698_v21  ;;  %v3713_v3 = vld [vmem:[%s7116_s1 + $0x100] sm:$0xff]  ;;  %v5512_v5 = vld [vmem:[%s5718_s17 + $0x8] ss:$8 sps:$4 sm:$0xff]   ;;  %v1038_v9 = vld [vmem:[%s7098_s5 + $0x78] sm:$0xff]  ;;  %2412 = vst [vmem:[#allocation3] sm:$0xff] %v5568_v10 }
  0x25   : > { %4573 = vmatpush3.msra.mxu1 %v587_v22  ;;  %4539 = vmatprep.subr.mxu0 %v3697_v23  ;;  %v3733_v4 = vld [vmem:[%s7116_s1 + $0x180] sm:$0xff]  ;;  %v5513_v6 = vld [vmem:[%s5718_s17 + $0x9] ss:$8 sps:$4 sm:$0xff]   ;;  %2414 = vst [vmem:[#allocation3 + $0x28] sm:$0xff] %v5568_v10  ;;  %2416 = vst [vmem:[#allocation3 + $0x8] sm:$0x1] %v5568_v10 }
  0x26   : > { %4574 = vmatprep.subr.mxu1 %v586_v24  ;;  %4540 = vmatpush3.msra.mxu0 %v3697_v23  ;;  %v5514_v7 = vld [vmem:[%s5718_s17 + $0x18] ss:$8 sps:$4 sm:$0xff]   ;;  %2417 = vst [vmem:[#allocation3 + $0x10] sm:$0x1] %v5568_v10  ;;  %2418 = vst [vmem:[#allocation3 + $0x18] sm:$0x1] %v5568_v10 }
  0x27   : > { %4575 = vmatpush3.msra.mxu1 %v586_v24  ;;  %4541 = vmatprep.subr.mxu0 %v3696_v25  ;;  %v5515_v8 = vld [vmem:[%s5718_s17 + $0x19] ss:$8 sps:$4 sm:$0xff]   ;;  %2419 = vst [vmem:[#allocation3 + $0x20] sm:$0x1] %v5568_v10  ;;  %2420 = vst [vmem:[#allocation3 + $0xd] sm:$0x1] %v5568_v10 }
  0x28   : > { %4576 = vmatprep.subr.mxu1 %v585_v26  ;;  %4542 = vmatpush3.msra.mxu0 %v3696_v25  ;;  %2421 = vst [vmem:[#allocation3 + $0x15] sm:$0x1] %v5568_v10  ;;  %2422 = vst [vmem:[#allocation3 + $0x1d] sm:$0x1] %v5568_v10  ;;  %v1037_v11 = vld [vmem:[%s7098_s5 + $0x70] sm:$0xff]  ;;  %v1036_v12 = vld [vmem:[%s7098_s5 + $0x68] sm:$0xff] }
  0x29   : > { %4577 = vmatpush3.msra.mxu1 %v585_v26  ;;  %4543 = vmatprep.subr.mxu0 %v3695_v27  ;;  %2423 = vst [vmem:[#allocation3 + $0x25] sm:$0x1] %v5568_v10  ;;  %v1035_v13 = vld [vmem:[%s7098_s5 + $0x60] sm:$0xff]  ;;  %v1034_v14 = vld [vmem:[%s7098_s5 + $0x58] sm:$0xff]  ;;  %v1033_v15 = vld [vmem:[%s7098_s5 + $0x50] sm:$0xff] }
  0x2a   : > { %4578 = vmatprep.subr.mxu1 %v584_v28  ;;  %4544 = vmatpush3.msra.mxu0 %v3695_v27  ;;  %v1032_v16 = vld [vmem:[%s7098_s5 + $0x48] sm:$0xff]  ;;  %v1031_v17 = vld [vmem:[%s7098_s5 + $0x40] sm:$0xff]  ;;  %v1030_v18 = vld [vmem:[%s7098_s5 + $0x38] sm:$0xff] }
  0x2b   : > { %4579 = vmatpush3.msra.mxu1 %v584_v28  ;;  %4545 = vmatprep.subr.mxu0 %v3694_v29  ;;  %v1029_v19 = vld [vmem:[%s7098_s5 + $0x30] sm:$0xff]  ;;  %v1028_v20 = vld [vmem:[%s7098_s5 + $0x28] sm:$0xff]  ;;  %v1027_v21 = vld [vmem:[%s7098_s5 + $0x20] sm:$0xff] }
  0x2c   : > { %4580 = vmatprep.subr.mxu1 %v583_v30  ;;  %4546 = vmatpush3.msra.mxu0 %v3694_v29  ;;  %v1026_v22 = vld [vmem:[%s7098_s5 + $0x18] sm:$0xff]  ;;  %v1025_v23 = vld [vmem:[%s7098_s5 + $0x10] sm:$0xff]  ;;  %v1024_v24 = vld [vmem:[%s7098_s5 + $0x8] sm:$0xff] }
  0x2d   : > { %4581 = vmatpush3.msra.mxu1 %v583_v30  ;;  %4547 = vmatprep.subr.mxu0 %v3693_v31  ;;  %v1023_v25 = vld [vmem:[%s7098_s5] sm:$0xff] }
  0x2e   : > { %4582 = vmatprep.subr.mxu1 %v582_v32  ;;  %4548 = vmatpush3.msra.mxu0 %v3693_v31 }
  0x2f   : > { %4549 = vmatprep.mubr.f32.mxu0 %v5508_v33  ;;  %4583 = vmatpush3.msra.mxu1 %v582_v32 }
  0x30   : > { %4584 = vmatprep.mubr.f32.mxu1 %v5509_v34  ;;  %4550 = vmatmul.mubr.f32.vlgmr.msra.gmra.mxu0 %v5510_v35  ;;  %v3749_v35 = vld [vmem:[%s7118_s23] ss:$0 sm:$0xff] }
  0x31   : > { %4585 = vmatmul.mubr.f32.vlgmr.msra.gmra.mxu1 %v5511_v36  ;;  %4587 = vmatprep.subr.mxu0 %v3728_v37 }
  0x32   : > { %4622 = vmatprep.subr.mxu1 %v3748_v38  ;;  %4588 = vmatpush3.msra.mxu0 %v3728_v37 }
  0x33   : > { %4623 = vmatpush3.msra.mxu1 %v3748_v38  ;;  %4589 = vmatprep.subr.mxu0 %v3727_v39 }
  0x34   : > { %4624 = vmatprep.subr.mxu1 %v3747_v40  ;;  %4590 = vmatpush3.msra.mxu0 %v3727_v39 }
  0x35   : > { %4625 = vmatpush3.msra.mxu1 %v3747_v40  ;;  %4591 = vmatprep.subr.mxu0 %v3726_v41 }
  0x36   : > { %4626 = vmatprep.subr.mxu1 %v3746_v42  ;;  %4592 = vmatpush3.msra.mxu0 %v3726_v41 }
  0x37   : > { %4627 = vmatpush3.msra.mxu1 %v3746_v42  ;;  %4593 = vmatprep.subr.mxu0 %v3725_v43 }
  0x38   : > { %4628 = vmatprep.subr.mxu1 %v3745_v44  ;;  %4594 = vmatpush3.msra.mxu0 %v3725_v43 }
  0x39   : > { %4629 = vmatpush3.msra.mxu1 %v3745_v44  ;;  %4595 = vmatprep.subr.mxu0 %v3724_v45 }
  0x3a   : > { %4630 = vmatprep.subr.mxu1 %v3744_v46  ;;  %4596 = vmatpush3.msra.mxu0 %v3724_v45 }
  0x3b   : > { %4631 = vmatpush3.msra.mxu1 %v3744_v46  ;;  %4597 = vmatprep.subr.mxu0 %v3723_v47 }
  0x3c   : > { %4632 = vmatprep.subr.mxu1 %v3743_v48  ;;  %4598 = vmatpush3.msra.mxu0 %v3723_v47 }
  0x3d   : > { %4633 = vmatpush3.msra.mxu1 %v3743_v48  ;;  %4599 = vmatprep.subr.mxu0 %v3722_v49 }
  0x3e   : > { %4634 = vmatprep.subr.mxu1 %v3742_v50  ;;  %4600 = vmatpush3.msra.mxu0 %v3722_v49 }
  0x3f   : > { %4635 = vmatpush3.msra.mxu1 %v3742_v50  ;;  %4601 = vmatprep.subr.mxu0 %v3721_v51 }
  0x40   : > { %4636 = vmatprep.subr.mxu1 %v3741_v52  ;;  %4602 = vmatpush3.msra.mxu0 %v3721_v51 }
  0x41   : > { %4637 = vmatpush3.msra.mxu1 %v3741_v52  ;;  %4603 = vmatprep.subr.mxu0 %v3720_v53 }
  0x42   : > { %4638 = vmatprep.subr.mxu1 %v3740_v54  ;;  %4604 = vmatpush3.msra.mxu0 %v3720_v53 }
  0x43   : > { %4639 = vmatpush3.msra.mxu1 %v3740_v54  ;;  %4605 = vmatprep.subr.mxu0 %v3719_v55 }
  0x44   : > { %4640 = vmatprep.subr.mxu1 %v3739_v56  ;;  %4606 = vmatpush3.msra.mxu0 %v3719_v55 }
  0x45   : > { %4641 = vmatpush3.msra.mxu1 %v3739_v56  ;;  %4607 = vmatprep.subr.mxu0 %v3718_v57 }
  0x46   : > { %4642 = vmatprep.subr.mxu1 %v3738_v58  ;;  %4608 = vmatpush3.msra.mxu0 %v3718_v57 }
  0x47   : > { %4643 = vmatpush3.msra.mxu1 %v3738_v58  ;;  %4609 = vmatprep.subr.mxu0 %v3717_v59 }
  0x48   : > { %4644 = vmatprep.subr.mxu1 %v3737_v60  ;;  %4610 = vmatpush3.msra.mxu0 %v3717_v59  ;;  %v3767_v59 = vld [vmem:[%s7099_s6 + $0xf8] sm:$0xff] }
  0x49   : > { %4645 = vmatpush3.msra.mxu1 %v3737_v60  ;;  %4611 = vmatprep.subr.mxu0 %v3716_v61  ;;  %v1260_v60 = vld [vmem:[%s7099_s6 + $0x78] sm:$0xff] }
  0x4a   : > { %4646 = vmatprep.subr.mxu1 %v3736_v62  ;;  %4612 = vmatpush3.msra.mxu0 %v3716_v61  ;;  %v3766_v61 = vld [vmem:[%s7099_s6 + $0xf0] sm:$0xff] }
  0x4b   : > { %4647 = vmatpush3.msra.mxu1 %v3736_v62  ;;  %4613 = vmatprep.subr.mxu0 %v3715_v63  ;;  %v1259_v62 = vld [vmem:[%s7099_s6 + $0x70] sm:$0xff] }
  0x4c   : > { %4648 = vmatprep.subr.mxu1 %v3735_v0  ;;  %4614 = vmatpush3.msra.mxu0 %v3715_v63  ;;  %v3765_v63 = vld [vmem:[%s7099_s6 + $0xe8] sm:$0xff] }
  0x4d   : > { %4649 = vmatpush3.msra.mxu1 %v3735_v0  ;;  %4615 = vmatprep.subr.mxu0 %v3714_v1  ;;  %v1258_v0 = vld [vmem:[%s7099_s6 + $0x68] sm:$0xff] }
  0x4e   : > { %4650 = vmatprep.subr.mxu1 %v3734_v2  ;;  %4616 = vmatpush3.msra.mxu0 %v3714_v1  ;;  %v3764_v1 = vld [vmem:[%s7099_s6 + $0xe0] sm:$0xff] }
  0x4f   : > { %4651 = vmatpush3.msra.mxu1 %v3734_v2  ;;  %4617 = vmatprep.subr.mxu0 %v3713_v3  ;;  %v1257_v2 = vld [vmem:[%s7099_s6 + $0x60] sm:$0xff] }
  0x50   : > { %4652 = vmatprep.subr.mxu1 %v3733_v4  ;;  %4618 = vmatpush3.msra.mxu0 %v3713_v3  ;;  %v3763_v3 = vld [vmem:[%s7099_s6 + $0xd8] sm:$0xff] }
  0x51   : > { %4619 = vmatprep.mubr.f32.mxu0 %v5512_v5  ;;  %4653 = vmatpush3.msra.mxu1 %v3733_v4  ;;  %v1256_v4 = vld [vmem:[%s7099_s6 + $0x58] sm:$0xff]  ;;  %v3762_v5 = vld [vmem:[%s7099_s6 + $0xd0] sm:$0xff] }
  0x52   : > { %4654 = vmatprep.mubr.f32.mxu1 %v5513_v6  ;;  %4620 = vmatmul.mubr.f32.vlgmr.msra.gmra.mxu0 %v5514_v7  ;;  %v1255_v6 = vld [vmem:[%s7099_s6 + $0x50] sm:$0xff]  ;;  %v3761_v7 = vld [vmem:[%s7099_s6 + $0xc8] sm:$0xff] }
  0x53   : > { %4655 = vmatmul.mubr.f32.vlgmr.msra.gmra.mxu1 %v5515_v8  ;;  %4657 = vmatprep.subr.mxu0 %v5568_v10  ;;  %v1254_v8 = vld [vmem:[%s7099_s6 + $0x48] sm:$0xff] }
  0x54   : > { %4692 = vmatprep.subr.mxu1 %v5568_v10  ;;  %4658 = vmatpush3.msra.mxu0 %v1038_v9 }
  0x55   : > { %4693 = vmatpush3.msra.mxu1 %v1038_v9  ;;  %4659 = vmatprep.subr.mxu0 %v5568_v10  ;;  %v3760_v9 = vld [vmem:[%s7099_s6 + $0xc0] sm:$0xff] }
  0x56   : > { %4694 = vmatprep.subr.mxu1 %v5568_v10  ;;  %4660 = vmatpush3.msra.mxu0 %v1037_v11 }
  0x57   : > { %4695 = vmatpush3.msra.mxu1 %v1037_v11  ;;  %4661 = vmatprep.subr.mxu0 %v5568_v10  ;;  %v3759_v11 = vld [vmem:[%s7099_s6 + $0xb8] sm:$0xff] }
  0x58   : > { %4696 = vmatprep.subr.mxu1 %v5568_v10  ;;  %4662 = vmatpush3.msra.mxu0 %v1036_v12 }
  0x59   : > { %4697 = vmatpush3.msra.mxu1 %v1036_v12  ;;  %4663 = vmatprep.subr.mxu0 %v5568_v10  ;;  %v1252_v12 = vld [vmem:[%s7099_s6 + $0x38] sm:$0xff] }
  0x5a   : > { %4698 = vmatprep.subr.mxu1 %v5568_v10  ;;  %4664 = vmatpush3.msra.mxu0 %v1035_v13 }
  0x5b   : > { %4699 = vmatpush3.msra.mxu1 %v1035_v13  ;;  %4665 = vmatprep.subr.mxu0 %v5568_v10  ;;  %v3758_v13 = vld [vmem:[%s7099_s6 + $0xb0] sm:$0xff] }
  0x5c   : > { %4700 = vmatprep.subr.mxu1 %v5568_v10  ;;  %4666 = vmatpush3.msra.mxu0 %v1034_v14 }
  0x5d   : > { %4701 = vmatpush3.msra.mxu1 %v1034_v14  ;;  %4667 = vmatprep.subr.mxu0 %v5568_v10  ;;  %v1251_v14 = vld [vmem:[%s7099_s6 + $0x30] sm:$0xff] }
  0x5e   : > { %4702 = vmatprep.subr.mxu1 %v5568_v10  ;;  %4668 = vmatpush3.msra.mxu0 %v1033_v15 }
  0x5f   : > { %4703 = vmatpush3.msra.mxu1 %v1033_v15  ;;  %4669 = vmatprep.subr.mxu0 %v5568_v10  ;;  %v3757_v15 = vld [vmem:[%s7099_s6 + $0xa8] sm:$0xff] }
  0x60   : > { %4704 = vmatprep.subr.mxu1 %v5568_v10  ;;  %4670 = vmatpush3.msra.mxu0 %v1032_v16 }
  0x61   : > { %4705 = vmatpush3.msra.mxu1 %v1032_v16  ;;  %4671 = vmatprep.subr.mxu0 %v5568_v10  ;;  %v1250_v16 = vld [vmem:[%s7099_s6 + $0x28] sm:$0xff] }
  0x62   : > { %4706 = vmatprep.subr.mxu1 %v5568_v10  ;;  %4672 = vmatpush3.msra.mxu0 %v1031_v17 }
  0x63   : > { %4707 = vmatpush3.msra.mxu1 %v1031_v17  ;;  %4673 = vmatprep.subr.mxu0 %v5568_v10  ;;  %v3756_v17 = vld [vmem:[%s7099_s6 + $0xa0] sm:$0xff] }
  0x64   : > { %4708 = vmatprep.subr.mxu1 %v5568_v10  ;;  %4674 = vmatpush3.msra.mxu0 %v1030_v18 }
  0x65   : > { %4709 = vmatpush3.msra.mxu1 %v1030_v18  ;;  %4675 = vmatprep.subr.mxu0 %v5568_v10  ;;  %v1249_v18 = vld [vmem:[%s7099_s6 + $0x20] sm:$0xff] }
  0x66   : > { %4710 = vmatprep.subr.mxu1 %v5568_v10  ;;  %4676 = vmatpush3.msra.mxu0 %v1029_v19 }
  0x67   : > { %4711 = vmatpush3.msra.mxu1 %v1029_v19  ;;  %4677 = vmatprep.subr.mxu0 %v5568_v10  ;;  %v3755_v19 = vld [vmem:[%s7099_s6 + $0x98] sm:$0xff] }
  0x68   : > { %4712 = vmatprep.subr.mxu1 %v5568_v10  ;;  %4678 = vmatpush3.msra.mxu0 %v1028_v20 }
  0x69   : > { %4713 = vmatpush3.msra.mxu1 %v1028_v20  ;;  %4679 = vmatprep.subr.mxu0 %v5568_v10  ;;  %v1248_v20 = vld [vmem:[%s7099_s6 + $0x18] sm:$0xff] }
  0x6a   : > { %4714 = vmatprep.subr.mxu1 %v5568_v10  ;;  %4680 = vmatpush3.msra.mxu0 %v1027_v21 }
  0x6b   : > { %4715 = vmatpush3.msra.mxu1 %v1027_v21  ;;  %4681 = vmatprep.subr.mxu0 %v5568_v10  ;;  %v3754_v21 = vld [vmem:[%s7099_s6 + $0x90] sm:$0xff] }
  0x6c   : > { %4716 = vmatprep.subr.mxu1 %v5568_v10  ;;  %4682 = vmatpush3.msra.mxu0 %v1026_v22 }
  0x6d   : > { %4717 = vmatpush3.msra.mxu1 %v1026_v22  ;;  %4683 = vmatprep.subr.mxu0 %v5568_v10  ;;  %v1247_v22 = vld [vmem:[%s7099_s6 + $0x10] sm:$0xff] }
  0x6e   : > { %4718 = vmatprep.subr.mxu1 %v5568_v10  ;;  %4684 = vmatpush3.msra.mxu0 %v1025_v23 }
  0x6f   : > { %4719 = vmatpush3.msra.mxu1 %v1025_v23  ;;  %4685 = vmatprep.subr.mxu0 %v5568_v10  ;;  %v3753_v23 = vld [vmem:[%s7099_s6 + $0x88] sm:$0xff] }
  0x70   : > { %4720 = vmatprep.subr.mxu1 %v5568_v10  ;;  %4686 = vmatpush3.msra.mxu0 %v1024_v24 }
  0x71   : > { %4689 = vmatprep.mubr.msk.f32.mxu0 %vm5569_vm0, %v5568_v10  ;;  %4687 = vmatprep.subr.mxu0 %v5568_v10 }
  0x72   : > { %4721 = vmatpush3.msra.mxu1 %v1024_v24  ;;  %4688 = vmatpush3.msra.mxu0 %v1023_v25  ;;  %v1246_v24 = vld [vmem:[%s7099_s6 + $0x8] sm:$0xff] }
  0x73   : > { %4722 = vmatprep.subr.mxu1 %v5568_v10  ;;  %4724 = vmatprep.mubr.msk.f32.mxu1 %vm5569_vm0, %v5568_v10  ;;  %v1253_v10 = vld [vmem:[%s7099_s6 + $0x40] sm:$0xff] }
  0x74   : > { %4723 = vmatpush3.msra.mxu1 %v1023_v25  ;;  %4727 = vmatprep.subr.mxu0 %v3767_v59  ;;  %v3752_v25 = vld [vmem:[%s7099_s6 + $0x80] sm:$0xff] }
  0x75   : > { %4762 = vmatprep.subr.mxu1 %v1260_v60 }
  0xf0   : > { %v4551_v26 = vpop.f32.mrf.mxu0 }
  0xf1   : > { %v4586_v27 = vpop.f32.mrf.mxu1 }
  0xf2   : > { %v693_v28 = vpop.f32.mrf.mxu0  ;;  %v782_v30 = vadd.f32 %v4586_v27, %v4551_v26  ;;  %v1245_v26 = vld [vmem:[%s7099_s6] sm:$0xff]  ;;  %v3783_v27 = vld [vmem:[%s7099_s6 + $0x178] sm:$0xff] }
  0xf3   : > { %v776_v29 = vpop.f32.mrf.mxu1 }
  0xf4   : > { %v777_v33 = vadd.f32 %v776_v29, %v693_v28  ;;  %v3799_v28 = vld [vmem:[%s7099_s6 + $0x1f8] sm:$0xff] }
 0x112   : > { %v4621_v31 = vpop.f32.mrf.mxu0 }
 0x113   : > { %v4656_v32 = vpop.f32.mrf.mxu1  ;;  %v891_v34 = vadd.f32 %v4621_v31, %v782_v30 }
 0x114   : > { %v881_v36 = vpop.f32.mrf.mxu0 }
 0x115   : > { %v997_v37 = vadd.f32 %v4656_v32, %v891_v34  ;;  %v890_v38 = vadd.f32 %v881_v36, %v777_v33  ;;  %v987_v39 = vpop.f32.mrf.mxu1 }
 0x117   : > { %v5991_v40 = vadd.f32 %v3749_v35, %v997_v37  ;;  %v996_v41 = vadd.f32 %v987_v39, %v890_v38 }
 0x119   : > { %v5993_v42 = vadd.f32 %v3749_v35, %v996_v41  ;;  %v1015_v43 = vmul.f32 %v5991_v40, %v5991_v40  ;;  %v1183_v35 = vlaneseq }
 0x11b   : > { %v1007_v44 = vadd.f32 %v5991_v40, %v5993_v42  ;;  %v1014_v45 = vmul.f32 %v5993_v42, %v5993_v42  ;;  %v1184_v37 = vshrl.u32 %v1183_v35, 7  ;;  %v3814_v35 = vld [vmem:[%s7099_s6 + $0x270] sm:$0xff] }
 0x11d   : > { %v1008_v46 = vrot.slane %v1007_v44, 4  ;;  %v1016_v47 = vadd.f32 %v1015_v43, %v1014_v45  ;;  %v6103_v38 = vsub.s32 0, %v1184_v37  ;;  %v3830_v37 = vld [vmem:[%s7099_s6 + $0x2f0] sm:$0xff] }
 0x11f   : > { %v1009_v48 = vadd.f32 %v1008_v46, %v1007_v44  ;;  %v1017_v49 = vrot.slane %v1016_v47, 4  ;;  %v3750_v46 = vld [vmem:[%s7096_s3] ss:$0 sm:$0xff] }
 0x121   : > { %v1010_v50 = vrot.slane %v1009_v48, 2  ;;  %v1018_v51 = vadd.f32 %v1017_v49, %v1016_v47  ;;  %v3751_v49 = vld [vmem:[%s7097_s4] ss:$0 sm:$0xff] }
 0x123   : > { %v1011_v52 = vadd.f32 %v1010_v50, %v1009_v48  ;;  %v1019_v53 = vrot.slane %v1018_v51, 2 }
 0x125   : > { %v1012_v54 = vrot.slane %v1011_v52, 1  ;;  %v1020_v55 = vadd.f32 %v1019_v53, %v1018_v51 }
 0x127   : > { %v1013_v56 = vadd.f32 %v1012_v54, %v1011_v52  ;;  %v1021_v57 = vrot.slane %v1020_v55, 1 }
 0x129   : > { %4690 = vmatmul.mubr.f32.vlgmr.msra.gmra.mxu0 %v1013_v56  ;;  %v1022_v58 = vadd.f32 %v1021_v57, %v1020_v55 }
 0x12a   : > { %4728 = vmatpush3.msra.mxu0 %v3767_v59 }
 0x12b   : > { %4725 = vmatmul.mubr.f32.vlgmr.msra.gmra.mxu1 %v1022_v58  ;;  %4729 = vmatprep.subr.mxu0 %v3766_v61 }
 0x12c   : > { %4763 = vmatpush3.msra.mxu1 %v1260_v60  ;;  %4730 = vmatpush3.msra.mxu0 %v3766_v61  ;;  %v3782_v60 = vld [vmem:[%s7099_s6 + $0x170] sm:$0xff] }
 0x12d   : > { %4764 = vmatprep.subr.mxu1 %v1259_v62  ;;  %4731 = vmatprep.subr.mxu0 %v3765_v63 }
 0x12e   : > { %4765 = vmatpush3.msra.mxu1 %v1259_v62  ;;  %4732 = vmatpush3.msra.mxu0 %v3765_v63  ;;  %v3798_v63 = vld [vmem:[%s7099_s6 + $0x1f0] sm:$0xff] }
 0x12f   : > { %4766 = vmatprep.subr.mxu1 %v1258_v0  ;;  %4733 = vmatprep.subr.mxu0 %v3764_v1 }
 0x130   : > { %4767 = vmatpush3.msra.mxu1 %v1258_v0  ;;  %4734 = vmatpush3.msra.mxu0 %v3764_v1 }
 0x131   : > { %4768 = vmatprep.subr.mxu1 %v1257_v2  ;;  %4735 = vmatprep.subr.mxu0 %v3763_v3 }
 0x132   : > { %4769 = vmatpush3.msra.mxu1 %v1257_v2  ;;  %4736 = vmatpush3.msra.mxu0 %v3763_v3  ;;  %v3781_v2 = vld [vmem:[%s7099_s6 + $0x168] sm:$0xff] }
 0x133   : > { %4770 = vmatprep.subr.mxu1 %v1256_v4  ;;  %4737 = vmatprep.subr.mxu0 %v3762_v5  ;;  %v3797_v3 = vld [vmem:[%s7099_s6 + $0x1e8] sm:$0xff] }
 0x134   : > { %4771 = vmatpush3.msra.mxu1 %v1256_v4  ;;  %4738 = vmatpush3.msra.mxu0 %v3762_v5  ;;  %v3780_v4 = vld [vmem:[%s7099_s6 + $0x160] sm:$0xff] }
 0x135   : > { %4772 = vmatprep.subr.mxu1 %v1255_v6  ;;  %4739 = vmatprep.subr.mxu0 %v3761_v7  ;;  %v3796_v5 = vld [vmem:[%s7099_s6 + $0x1e0] sm:$0xff] }
 0x136   : > { %4773 = vmatpush3.msra.mxu1 %v1255_v6  ;;  %4740 = vmatpush3.msra.mxu0 %v3761_v7  ;;  %v3779_v6 = vld [vmem:[%s7099_s6 + $0x158] sm:$0xff] }
 0x137   : > { %4774 = vmatprep.subr.mxu1 %v1254_v8  ;;  %4741 = vmatprep.subr.mxu0 %v3760_v9  ;;  %v3795_v7 = vld [vmem:[%s7099_s6 + $0x1d8] sm:$0xff] }
 0x138   : > { %4775 = vmatpush3.msra.mxu1 %v1254_v8  ;;  %4742 = vmatpush3.msra.mxu0 %v3760_v9  ;;  %v3778_v8 = vld [vmem:[%s7099_s6 + $0x150] sm:$0xff] }
 0x139   : > { %4776 = vmatprep.subr.mxu1 %v1253_v10  ;;  %4743 = vmatprep.subr.mxu0 %v3759_v11  ;;  %v3794_v9 = vld [vmem:[%s7099_s6 + $0x1d0] sm:$0xff] }
 0x13a   : > { %4777 = vmatpush3.msra.mxu1 %v1253_v10  ;;  %4744 = vmatpush3.msra.mxu0 %v3759_v11  ;;  %v3777_v10 = vld [vmem:[%s7099_s6 + $0x148] sm:$0xff] }
 0x13b   : > { %4778 = vmatprep.subr.mxu1 %v1252_v12  ;;  %4745 = vmatprep.subr.mxu0 %v3758_v13  ;;  %v3793_v11 = vld [vmem:[%s7099_s6 + $0x1c8] sm:$0xff] }
 0x13c   : > { %4779 = vmatpush3.msra.mxu1 %v1252_v12  ;;  %4746 = vmatpush3.msra.mxu0 %v3758_v13  ;;  %v3776_v12 = vld [vmem:[%s7099_s6 + $0x140] sm:$0xff] }
 0x13d   : > { %4780 = vmatprep.subr.mxu1 %v1251_v14  ;;  %4747 = vmatprep.subr.mxu0 %v3757_v15  ;;  %v3792_v13 = vld [vmem:[%s7099_s6 + $0x1c0] sm:$0xff] }
 0x13e   : > { %4781 = vmatpush3.msra.mxu1 %v1251_v14  ;;  %4748 = vmatpush3.msra.mxu0 %v3757_v15  ;;  %v3775_v14 = vld [vmem:[%s7099_s6 + $0x138] sm:$0xff] }
 0x13f   : > { %4782 = vmatprep.subr.mxu1 %v1250_v16  ;;  %4749 = vmatprep.subr.mxu0 %v3756_v17  ;;  %v3791_v15 = vld [vmem:[%s7099_s6 + $0x1b8] sm:$0xff] }
 0x140   : > { %4783 = vmatpush3.msra.mxu1 %v1250_v16  ;;  %4750 = vmatpush3.msra.mxu0 %v3756_v17  ;;  %v3774_v16 = vld [vmem:[%s7099_s6 + $0x130] sm:$0xff] }
 0x141   : > { %4784 = vmatprep.subr.mxu1 %v1249_v18  ;;  %4751 = vmatprep.subr.mxu0 %v3755_v19  ;;  %v3790_v17 = vld [vmem:[%s7099_s6 + $0x1b0] sm:$0xff] }
 0x142   : > { %4785 = vmatpush3.msra.mxu1 %v1249_v18  ;;  %4752 = vmatpush3.msra.mxu0 %v3755_v19  ;;  %v3773_v18 = vld [vmem:[%s7099_s6 + $0x128] sm:$0xff] }
 0x143   : > { %4786 = vmatprep.subr.mxu1 %v1248_v20  ;;  %4753 = vmatprep.subr.mxu0 %v3754_v21  ;;  %v3789_v19 = vld [vmem:[%s7099_s6 + $0x1a8] sm:$0xff] }
 0x144   : > { %4787 = vmatpush3.msra.mxu1 %v1248_v20  ;;  %4754 = vmatpush3.msra.mxu0 %v3754_v21  ;;  %v3772_v20 = vld [vmem:[%s7099_s6 + $0x120] sm:$0xff] }
 0x145   : > { %4788 = vmatprep.subr.mxu1 %v1247_v22  ;;  %4755 = vmatprep.subr.mxu0 %v3753_v23  ;;  %v3788_v21 = vld [vmem:[%s7099_s6 + $0x1a0] sm:$0xff] }
 0x146   : > { %4789 = vmatpush3.msra.mxu1 %v1247_v22  ;;  %4756 = vmatpush3.msra.mxu0 %v3753_v23  ;;  %v3771_v22 = vld [vmem:[%s7099_s6 + $0x118] sm:$0xff] }
 0x147   : > { %4790 = vmatprep.subr.mxu1 %v1246_v24  ;;  %4757 = vmatprep.subr.mxu0 %v3752_v25  ;;  %v3787_v23 = vld [vmem:[%s7099_s6 + $0x198] sm:$0xff] }
 0x148   : > { %4791 = vmatpush3.msra.mxu1 %v1246_v24  ;;  %4758 = vmatpush3.msra.mxu0 %v3752_v25  ;;  %v3770_v24 = vld [vmem:[%s7099_s6 + $0x110] sm:$0xff] }
 0x149   : > { %4792 = vmatprep.subr.mxu1 %v1245_v26  ;;  %4797 = vmatprep.subr.mxu0 %v3783_v27  ;;  %v3786_v25 = vld [vmem:[%s7099_s6 + $0x190] sm:$0xff] }
 0x14a   : > { %4793 = vmatpush3.msra.mxu1 %v1245_v26  ;;  %v3769_v26 = vld [vmem:[%s7099_s6 + $0x108] sm:$0xff] }
 0x14b   : > { %4832 = vmatprep.subr.mxu1 %v3799_v28 }
 0x1e9   : > { %v1105_v29 = vpop.f32.mrf.mxu0 }
 0x1ea   : > { %v1179_v30 = vmul.f32 %v1105_v29, %v1105_v29  ;;  %v1186_v39 = vrot.slane %v1105_v29, %v6103_v38  ;;  %v3784_v29 = vld [vmem:[%s7099_s6 + $0x180] sm:$0xff] }
 0x1eb   : > { %v4691_v31 = vpop.f32.mrf.mxu0  ;;  %v1175_v32 = vpop.f32.mrf.mxu1 }
 0x1ec   : > { %v1180_v33 = vsub.f32 %v1175_v32, %v1179_v30  ;;  %v1187_v43 = vsub.f32 %v5993_v42, %v1186_v39  ;;  %v1188_v44 = vsub.f32 %v5991_v40, %v1186_v39  ;;  %v3815_v31 = vld [vmem:[%s7099_s6 + $0x278] sm:$0xff]  ;;  %v3813_v39 = vld [vmem:[%s7099_s6 + $0x268] sm:$0xff] }
 0x1ed   : > { %v4726_v34 = vpop.f32.mrf.mxu1 }
 0x1ee   : > { %v1181_v36 = vadd.f32 1e-05, %v1180_v33  ;;  %v3831_v33 = vld [vmem:[%s7099_s6 + $0x2f8] sm:$0xff] }
 0x1f0   : > { %5552 = vrsqrt.f32 %v1181_v36 }
 0x1fd   : > { %v5553_v41 = vpop.eup %5552 }
 0x1fe   : > { %v1192_v45 = vrot.slane %v5553_v41, %v6103_v38  ;;  %v3829_v41 = vld [vmem:[%s7099_s6 + $0x2e8] sm:$0xff] }
 0x200   : > { %v1193_v47 = vmul.f32 %v1192_v45, %v1187_v43  ;;  %v1194_v48 = vmul.f32 %v1192_v45, %v1188_v44  ;;  %v3812_v43 = vld [vmem:[%s7099_s6 + $0x260] sm:$0xff]  ;;  %v3811_v45 = vld [vmem:[%s7099_s6 + $0x258] sm:$0xff] }
 0x201   : > { %v3828_v44 = vld [vmem:[%s7099_s6 + $0x2e0] sm:$0xff] }
 0x202   : > { %v1202_v50 = vmul.f32 %v3750_v46, %v1193_v47  ;;  %v1203_v51 = vmul.f32 %v3750_v46, %v1194_v48  ;;  %v3827_v46 = vld [vmem:[%s7099_s6 + $0x2d8] sm:$0xff]  ;;  %v3810_v47 = vld [vmem:[%s7099_s6 + $0x250] sm:$0xff] }
 0x203   : > { %v3826_v48 = vld [vmem:[%s7099_s6 + $0x2d0] sm:$0xff] }
 0x204   : > { %v1211_v52 = vadd.f32 %v3751_v49, %v1202_v50  ;;  %v1212_v53 = vadd.f32 %v3751_v49, %v1203_v51  ;;  %v3809_v49 = vld [vmem:[%s7099_s6 + $0x248] sm:$0xff]  ;;  %v3808_v51 = vld [vmem:[%s7099_s6 + $0x240] sm:$0xff] }
 0x205   : > { %v3825_v50 = vld [vmem:[%s7099_s6 + $0x2c8] sm:$0xff] }
 0x206   : > { %vm1213_vm1 = vcmp.ge.f32.partialorder %v1211_v52, 0.0  ;;  %vm1214_vm2 = vcmp.ge.f32.partialorder %v1212_v53, 0.0  ;;  %v1215_v42 = vmul.f32 0.2, %v1211_v52  ;;  %v1216_v40 = vmul.f32 0.2, %v1212_v53 }
 0x208   : > { %v1217_v54 = vsel %vm1213_vm1, %v1211_v52, %v1215_v42  ;;  %v1218_v55 = vsel %vm1214_vm2, %v1212_v53, %v1216_v40  ;;  %v3824_v52 = vld [vmem:[%s7099_s6 + $0x2c0] sm:$0xff]  ;;  %v3807_v53 = vld [vmem:[%s7099_s6 + $0x238] sm:$0xff]  ;;  %v3806_v40 = vld [vmem:[%s7099_s6 + $0x230] sm:$0xff] }
 0x209   : > { %v1233_v56 = vcombine.high %v1217_v54, %v1217_v54  ;;  %v1234_v57 = vcombine.high %v1218_v55, %v1218_v55  ;;  %1237 = vst [vmem:[#allocation2 + $0x9] sm:$0xf] %v1217_v54  ;;  %1239 = vst [vmem:[#allocation2 + $0x19] sm:$0xf] %v1218_v55  ;;  %v3823_v42 = vld [vmem:[%s7099_s6 + $0x2b8] sm:$0xff]  ;;  %v3822_v54 = vld [vmem:[%s7099_s6 + $0x2b0] sm:$0xff] }
 0x20a   : > { %v3805_v55 = vld [vmem:[%s7099_s6 + $0x228] sm:$0xff] }
 0x20b   : > { %1238 = vst [vmem:[#allocation2 + $0x11] sm:$0xf] %v1233_v56  ;;  %1240 = vst [vmem:[#allocation2 + $0x21] sm:$0xf] %v1234_v57  ;;  %v3821_v56 = vld [vmem:[%s7099_s6 + $0x2a8] sm:$0xff]  ;;  %v3804_v57 = vld [vmem:[%s7099_s6 + $0x220] sm:$0xff] }
 0x210   : > { %v5516_v58 = vld [vmem:[#allocation2 + $0x1] ss:$8 sps:$4 sm:$0xff]  }
 0x211   : > { %v5517_v59 = vld [vmem:[#allocation2] ss:$8 sps:$4 sm:$0xff]   ;;  %4759 = vmatprep.mubr.f32.mxu0 %v5516_v58 }
 0x212   : > { %v5518_v61 = vld [vmem:[#allocation2 + $0x11] ss:$8 sps:$4 sm:$0xff]   ;;  %4794 = vmatprep.mubr.f32.mxu1 %v5517_v59  ;;  %v5520_v1 = vld [vmem:[#allocation2 + $0x2] ss:$8 sps:$4 sm:$0xff]  }
 0x213   : > { %v5519_v62 = vld [vmem:[#allocation2 + $0x10] ss:$8 sps:$4 sm:$0xff]   ;;  %4760 = vmatmul.mubr.f32.vlgmr.msra.gmra.mxu0 %v5518_v61  ;;  %v3820_v58 = vld [vmem:[%s7099_s6 + $0x2a0] sm:$0xff] }
 0x214   : > { %v5521_v0 = vld [vmem:[#allocation2 + $0x8] ss:$8 sps:$4 sm:$0xff]   ;;  %4795 = vmatmul.mubr.f32.vlgmr.msra.gmra.mxu1 %v5519_v62  ;;  %4798 = vmatpush3.msra.mxu0 %v3783_v27  ;;  %v5523_v32 = vld [vmem:[#allocation2 + $0x18] ss:$8 sps:$4 sm:$0xff]  }
 0x215   : > { %4833 = vmatpush3.msra.mxu1 %v3799_v28  ;;  %4799 = vmatprep.subr.mxu0 %v3782_v60  ;;  %v3785_v27 = vld [vmem:[%s7099_s6 + $0x188] sm:$0xff]  ;;  %v3768_v28 = vld [vmem:[%s7099_s6 + $0x100] sm:$0xff]  ;;  %v5522_v30 = vld [vmem:[#allocation2 + $0x12] ss:$8 sps:$4 sm:$0xff]  }
 0x216   : > { %4829 = vmatprep.mubr.f32.mxu0 %v5520_v1  ;;  %4834 = vmatprep.subr.mxu1 %v3798_v63  ;;  %v5524_v34 = vld [vmem:[#allocation2 + $0x9] ss:$8 sps:$4 sm:$0xff]   ;;  %v3803_v59 = vld [vmem:[%s7099_s6 + $0x218] sm:$0xff]  ;;  %v3800_v1 = vld [vmem:[%s7099_s6 + $0x200] sm:$0xff] }
 0x217   : > { %4864 = vmatprep.mubr.f32.mxu1 %v5521_v0  ;;  %4800 = vmatpush3.msra.mxu0 %v3782_v60  ;;  %v5525_v36 = vld [vmem:[#allocation2 + $0xa] ss:$8 sps:$4 sm:$0xff]   ;;  %v3819_v60 = vld [vmem:[%s7099_s6 + $0x298] sm:$0xff] }
 0x218   : > { %4835 = vmatpush3.msra.mxu1 %v3798_v63  ;;  %4801 = vmatprep.subr.mxu0 %v3781_v2  ;;  %v3802_v61 = vld [vmem:[%s7099_s6 + $0x210] sm:$0xff]  ;;  %v3801_v63 = vld [vmem:[%s7099_s6 + $0x208] sm:$0xff] }
 0x219   : > { %4836 = vmatprep.subr.mxu1 %v3797_v3  ;;  %4802 = vmatpush3.msra.mxu0 %v3781_v2  ;;  %v3818_v62 = vld [vmem:[%s7099_s6 + $0x290] sm:$0xff]  ;;  %v3817_v0 = vld [vmem:[%s7099_s6 + $0x288] sm:$0xff]  ;;  %v3816_v2 = vld [vmem:[%s7099_s6 + $0x280] sm:$0xff] }
 0x21a   : > { %4837 = vmatpush3.msra.mxu1 %v3797_v3  ;;  %4803 = vmatprep.subr.mxu0 %v3780_v4  ;;  %v5526_v3 = vld [vmem:[#allocation2 + $0x19] ss:$8 sps:$4 sm:$0xff]  }
 0x21b   : > { %4838 = vmatprep.subr.mxu1 %v3796_v5  ;;  %4804 = vmatpush3.msra.mxu0 %v3780_v4  ;;  %v3847_v4 = vld [vmem:[%s7099_s6 + $0x378] sm:$0xff] }
 0x21c   : > { %4839 = vmatpush3.msra.mxu1 %v3796_v5  ;;  %4805 = vmatprep.subr.mxu0 %v3779_v6  ;;  %v5527_v5 = vld [vmem:[#allocation2 + $0x1a] ss:$8 sps:$4 sm:$0xff]  }
 0x21d   : > { %4840 = vmatprep.subr.mxu1 %v3795_v7  ;;  %4806 = vmatpush3.msra.mxu0 %v3779_v6  ;;  %v3863_v6 = vld [vmem:[%s7099_s6 + $0x3f8] sm:$0xff] }
 0x21e   : > { %4841 = vmatpush3.msra.mxu1 %v3795_v7  ;;  %4807 = vmatprep.subr.mxu0 %v3778_v8  ;;  %v5528_v7 = vld [vmem:[#allocation2 + $0x10] ss:$8 sps:$4 sm:$0xff]  }
 0x21f   : > { %4842 = vmatprep.subr.mxu1 %v3794_v9  ;;  %4808 = vmatpush3.msra.mxu0 %v3778_v8  ;;  %v3846_v8 = vld [vmem:[%s7099_s6 + $0x370] sm:$0xff] }
 0x220   : > { %4843 = vmatpush3.msra.mxu1 %v3794_v9  ;;  %4809 = vmatprep.subr.mxu0 %v3777_v10  ;;  %v5529_v9 = vld [vmem:[#allocation2 + $0x11] ss:$8 sps:$4 sm:$0xff]  }
 0x221   : > { %4844 = vmatprep.subr.mxu1 %v3793_v11  ;;  %4810 = vmatpush3.msra.mxu0 %v3777_v10  ;;  %v3862_v10 = vld [vmem:[%s7099_s6 + $0x3f0] sm:$0xff] }
 0x222   : > { %4845 = vmatpush3.msra.mxu1 %v3793_v11  ;;  %4811 = vmatprep.subr.mxu0 %v3776_v12  ;;  %v3845_v11 = vld [vmem:[%s7099_s6 + $0x368] sm:$0xff] }
 0x223   : > { %4846 = vmatprep.subr.mxu1 %v3792_v13  ;;  %4812 = vmatpush3.msra.mxu0 %v3776_v12  ;;  %v3861_v12 = vld [vmem:[%s7099_s6 + $0x3e8] sm:$0xff] }
 0x224   : > { %4847 = vmatpush3.msra.mxu1 %v3792_v13  ;;  %4813 = vmatprep.subr.mxu0 %v3775_v14  ;;  %v3844_v13 = vld [vmem:[%s7099_s6 + $0x360] sm:$0xff] }
 0x225   : > { %4848 = vmatprep.subr.mxu1 %v3791_v15  ;;  %4814 = vmatpush3.msra.mxu0 %v3775_v14  ;;  %v3860_v14 = vld [vmem:[%s7099_s6 + $0x3e0] sm:$0xff] }
 0x226   : > { %4849 = vmatpush3.msra.mxu1 %v3791_v15  ;;  %4815 = vmatprep.subr.mxu0 %v3774_v16  ;;  %v3843_v15 = vld [vmem:[%s7099_s6 + $0x358] sm:$0xff] }
 0x227   : > { %4850 = vmatprep.subr.mxu1 %v3790_v17  ;;  %4816 = vmatpush3.msra.mxu0 %v3774_v16  ;;  %v3859_v16 = vld [vmem:[%s7099_s6 + $0x3d8] sm:$0xff] }
 0x228   : > { %4851 = vmatpush3.msra.mxu1 %v3790_v17  ;;  %4817 = vmatprep.subr.mxu0 %v3773_v18  ;;  %v3842_v17 = vld [vmem:[%s7099_s6 + $0x350] sm:$0xff] }
 0x229   : > { %4852 = vmatprep.subr.mxu1 %v3789_v19  ;;  %4818 = vmatpush3.msra.mxu0 %v3773_v18  ;;  %v3858_v18 = vld [vmem:[%s7099_s6 + $0x3d0] sm:$0xff] }
 0x22a   : > { %4853 = vmatpush3.msra.mxu1 %v3789_v19  ;;  %4819 = vmatprep.subr.mxu0 %v3772_v20  ;;  %v3841_v19 = vld [vmem:[%s7099_s6 + $0x348] sm:$0xff] }
 0x22b   : > { %4854 = vmatprep.subr.mxu1 %v3788_v21  ;;  %4820 = vmatpush3.msra.mxu0 %v3772_v20  ;;  %v3857_v20 = vld [vmem:[%s7099_s6 + $0x3c8] sm:$0xff] }
 0x22c   : > { %4855 = vmatpush3.msra.mxu1 %v3788_v21  ;;  %4821 = vmatprep.subr.mxu0 %v3771_v22  ;;  %v3840_v21 = vld [vmem:[%s7099_s6 + $0x340] sm:$0xff] }
 0x22d   : > { %4856 = vmatprep.subr.mxu1 %v3787_v23  ;;  %4822 = vmatpush3.msra.mxu0 %v3771_v22  ;;  %v3856_v22 = vld [vmem:[%s7099_s6 + $0x3c0] sm:$0xff] }
 0x22e   : > { %4857 = vmatpush3.msra.mxu1 %v3787_v23  ;;  %4823 = vmatprep.subr.mxu0 %v3770_v24  ;;  %v3839_v23 = vld [vmem:[%s7099_s6 + $0x338] sm:$0xff] }
 0x22f   : > { %4858 = vmatprep.subr.mxu1 %v3786_v25  ;;  %4824 = vmatpush3.msra.mxu0 %v3770_v24  ;;  %v3855_v24 = vld [vmem:[%s7099_s6 + $0x3b8] sm:$0xff] }
 0x230   : > { %4859 = vmatpush3.msra.mxu1 %v3786_v25  ;;  %4825 = vmatprep.subr.mxu0 %v3769_v26  ;;  %v3838_v25 = vld [vmem:[%s7099_s6 + $0x330] sm:$0xff] }
 0x231   : > { %4860 = vmatprep.subr.mxu1 %v3785_v27  ;;  %4826 = vmatpush3.msra.mxu0 %v3769_v26  ;;  %v3854_v26 = vld [vmem:[%s7099_s6 + $0x3b0] sm:$0xff] }
 0x232   : > { %4861 = vmatpush3.msra.mxu1 %v3785_v27  ;;  %4827 = vmatprep.subr.mxu0 %v3768_v28  ;;  %v3837_v27 = vld [vmem:[%s7099_s6 + $0x328] sm:$0xff] }
 0x233   : > { %4862 = vmatprep.subr.mxu1 %v3784_v29  ;;  %4828 = vmatpush3.msra.mxu0 %v3768_v28  ;;  %v3853_v28 = vld [vmem:[%s7099_s6 + $0x3a8] sm:$0xff] }
 0x234   : > { %4863 = vmatpush3.msra.mxu1 %v3784_v29  ;;  %4830 = vmatmul.mubr.f32.vlgmr.msra.gmra.mxu0 %v5522_v30  ;;  %v3836_v29 = vld [vmem:[%s7099_s6 + $0x320] sm:$0xff] }
 0x235   : > { %4865 = vmatmul.mubr.f32.vlgmr.msra.gmra.mxu1 %v5523_v32  ;;  %4867 = vmatprep.subr.mxu0 %v3815_v31  ;;  %v3852_v30 = vld [vmem:[%s7099_s6 + $0x3a0] sm:$0xff]  ;;  %v3851_v32 = vld [vmem:[%s7099_s6 + $0x398] sm:$0xff] }
 0x236   : > { %4902 = vmatprep.subr.mxu1 %v3831_v33  ;;  %4868 = vmatpush3.msra.mxu0 %v3815_v31  ;;  %v3835_v31 = vld [vmem:[%s7099_s6 + $0x318] sm:$0xff] }
 0x237   : > { %4899 = vmatprep.mubr.f32.mxu0 %v5524_v34  ;;  %4903 = vmatpush3.msra.mxu1 %v3831_v33  ;;  %v3834_v33 = vld [vmem:[%s7099_s6 + $0x310] sm:$0xff] }
 0x238   : > { %4934 = vmatprep.mubr.f32.mxu1 %v5525_v36  ;;  %4869 = vmatprep.subr.mxu0 %v3814_v35  ;;  %v3850_v34 = vld [vmem:[%s7099_s6 + $0x390] sm:$0xff]  ;;  %v3849_v36 = vld [vmem:[%s7099_s6 + $0x388] sm:$0xff] }
 0x239   : > { %4904 = vmatprep.subr.mxu1 %v3830_v37  ;;  %4870 = vmatpush3.msra.mxu0 %v3814_v35  ;;  %v3833_v35 = vld [vmem:[%s7099_s6 + $0x308] sm:$0xff] }
 0x23a   : > { %4905 = vmatpush3.msra.mxu1 %v3830_v37  ;;  %4871 = vmatprep.subr.mxu0 %v3813_v39  ;;  %v3832_v37 = vld [vmem:[%s7099_s6 + $0x300] sm:$0xff] }
 0x23b   : > { %4906 = vmatprep.subr.mxu1 %v3829_v41  ;;  %4872 = vmatpush3.msra.mxu0 %v3813_v39  ;;  %v3848_v39 = vld [vmem:[%s7099_s6 + $0x380] sm:$0xff] }
 0x23c   : > { %4907 = vmatpush3.msra.mxu1 %v3829_v41  ;;  %4873 = vmatprep.subr.mxu0 %v3812_v43  ;;  %v5530_v41 = vld [vmem:[#allocation2 + $0x20] ss:$8 sps:$4 sm:$0xff]  }
 0x23d   : > { %4908 = vmatprep.subr.mxu1 %v3828_v44  ;;  %4874 = vmatpush3.msra.mxu0 %v3812_v43  ;;  %v3879_v43 = vld [vmem:[%s7099_s6 + $0x478] sm:$0xff] }
 0x23e   : > { %4909 = vmatpush3.msra.mxu1 %v3828_v44  ;;  %4875 = vmatprep.subr.mxu0 %v3811_v45  ;;  %v5531_v44 = vld [vmem:[#allocation2 + $0x21] ss:$8 sps:$4 sm:$0xff]  }
 0x23f   : > { %4910 = vmatprep.subr.mxu1 %v3827_v46  ;;  %4876 = vmatpush3.msra.mxu0 %v3811_v45  ;;  %v5532_v45 = vld [vmem:[#allocation2 + $0x12] ss:$8 sps:$4 sm:$0xff]  }
 0x240   : > { %4911 = vmatpush3.msra.mxu1 %v3827_v46  ;;  %4877 = vmatprep.subr.mxu0 %v3810_v47  ;;  %v3878_v46 = vld [vmem:[%s7099_s6 + $0x470] sm:$0xff] }
 0x241   : > { %4912 = vmatprep.subr.mxu1 %v3826_v48  ;;  %4878 = vmatpush3.msra.mxu0 %v3810_v47  ;;  %v3877_v47 = vld [vmem:[%s7099_s6 + $0x468] sm:$0xff] }
 0x242   : > { %4913 = vmatpush3.msra.mxu1 %v3826_v48  ;;  %4879 = vmatprep.subr.mxu0 %v3809_v49  ;;  %v6406_v48 = vld [vmem:[#allocation2] sm:$0xff] }
 0x243   : > { %4914 = vmatprep.subr.mxu1 %v3825_v50  ;;  %4880 = vmatpush3.msra.mxu0 %v3809_v49  ;;  %v3876_v49 = vld [vmem:[%s7099_s6 + $0x460] sm:$0xff] }
 0x244   : > { %4915 = vmatpush3.msra.mxu1 %v3825_v50  ;;  %4881 = vmatprep.subr.mxu0 %v3808_v51  ;;  %v3875_v50 = vld [vmem:[%s7099_s6 + $0x458] sm:$0xff] }
 0x245   : > { %4916 = vmatprep.subr.mxu1 %v3824_v52  ;;  %4882 = vmatpush3.msra.mxu0 %v3808_v51  ;;  %v3874_v51 = vld [vmem:[%s7099_s6 + $0x450] sm:$0xff] }
 0x246   : > { %4917 = vmatpush3.msra.mxu1 %v3824_v52  ;;  %4883 = vmatprep.subr.mxu0 %v3807_v53  ;;  %v3873_v52 = vld [vmem:[%s7099_s6 + $0x448] sm:$0xff] }
 0x247   : > { %4918 = vmatprep.subr.mxu1 %v3823_v42  ;;  %4884 = vmatpush3.msra.mxu0 %v3807_v53  ;;  %v3872_v53 = vld [vmem:[%s7099_s6 + $0x440] sm:$0xff] }
 0x248   : > { %4919 = vmatpush3.msra.mxu1 %v3823_v42  ;;  %4885 = vmatprep.subr.mxu0 %v3806_v40  ;;  %v3871_v42 = vld [vmem:[%s7099_s6 + $0x438] sm:$0xff] }
 0x249   : > { %4920 = vmatprep.subr.mxu1 %v3822_v54  ;;  %4886 = vmatpush3.msra.mxu0 %v3806_v40  ;;  %v3870_v40 = vld [vmem:[%s7099_s6 + $0x430] sm:$0xff] }
 0x24a   : > { %4921 = vmatpush3.msra.mxu1 %v3822_v54  ;;  %4887 = vmatprep.subr.mxu0 %v3805_v55  ;;  %v3869_v54 = vld [vmem:[%s7099_s6 + $0x428] sm:$0xff] }
 0x24b   : > { %4922 = vmatprep.subr.mxu1 %v3821_v56  ;;  %4888 = vmatpush3.msra.mxu0 %v3805_v55  ;;  %v3868_v55 = vld [vmem:[%s7099_s6 + $0x420] sm:$0xff] }
 0x24c   : > { %4923 = vmatpush3.msra.mxu1 %v3821_v56  ;;  %4889 = vmatprep.subr.mxu0 %v3804_v57  ;;  %v3867_v56 = vld [vmem:[%s7099_s6 + $0x418] sm:$0xff] }
 0x24d   : > { %4924 = vmatprep.subr.mxu1 %v3820_v58  ;;  %4890 = vmatpush3.msra.mxu0 %v3804_v57  ;;  %v3866_v57 = vld [vmem:[%s7099_s6 + $0x410] sm:$0xff] }
 0x24e   : > { %4925 = vmatpush3.msra.mxu1 %v3820_v58  ;;  %4891 = vmatprep.subr.mxu0 %v3803_v59  ;;  %v3865_v58 = vld [vmem:[%s7099_s6 + $0x408] sm:$0xff] }
 0x24f   : > { %4926 = vmatprep.subr.mxu1 %v3819_v60  ;;  %4892 = vmatpush3.msra.mxu0 %v3803_v59  ;;  %v3864_v59 = vld [vmem:[%s7099_s6 + $0x400] sm:$0xff] }
 0x250   : > { %4927 = vmatpush3.msra.mxu1 %v3819_v60  ;;  %4893 = vmatprep.subr.mxu0 %v3802_v61  ;;  %v5533_v60 = vld [vmem:[#allocation2 + $0x22] ss:$8 sps:$4 sm:$0xff]  }
 0x251   : > { %4928 = vmatprep.subr.mxu1 %v3818_v62  ;;  %4894 = vmatpush3.msra.mxu0 %v3802_v61  ;;  %v2231_v61 = vld [vmem:[%s7103_s10 + $0x78] sm:$0xff] }
 0x252   : > { %4929 = vmatpush3.msra.mxu1 %v3818_v62  ;;  %4895 = vmatprep.subr.mxu0 %v3801_v63  ;;  %v2230_v62 = vld [vmem:[%s7103_s10 + $0x70] sm:$0xff] }
 0x253   : > { %4930 = vmatprep.subr.mxu1 %v3817_v0  ;;  %4896 = vmatpush3.msra.mxu0 %v3801_v63  ;;  %v2229_v63 = vld [vmem:[%s7103_s10 + $0x68] sm:$0xff] }
 0x254   : > { %4931 = vmatpush3.msra.mxu1 %v3817_v0  ;;  %4897 = vmatprep.subr.mxu0 %v3800_v1  ;;  %v2228_v0 = vld [vmem:[%s7103_s10 + $0x60] sm:$0xff] }
 0x255   : > { %4932 = vmatprep.subr.mxu1 %v3816_v2  ;;  %4898 = vmatpush3.msra.mxu0 %v3800_v1  ;;  %v2227_v1 = vld [vmem:[%s7103_s10 + $0x58] sm:$0xff] }
 0x256   : > { %4933 = vmatpush3.msra.mxu1 %v3816_v2  ;;  %4900 = vmatmul.mubr.f32.vlgmr.msra.gmra.mxu0 %v5526_v3  ;;  %v2226_v2 = vld [vmem:[%s7103_s10 + $0x50] sm:$0xff]  ;;  %v2225_v3 = vld [vmem:[%s7103_s10 + $0x48] sm:$0xff] }
 0x257   : > { %4935 = vmatmul.mubr.f32.vlgmr.msra.gmra.mxu1 %v5527_v5  ;;  %4937 = vmatprep.subr.mxu0 %v3847_v4  ;;  %v2223_v5 = vld [vmem:[%s7103_s10 + $0x38] sm:$0xff] }
 0x258   : > { %4972 = vmatprep.subr.mxu1 %v3863_v6  ;;  %4938 = vmatpush3.msra.mxu0 %v3847_v4  ;;  %v2224_v4 = vld [vmem:[%s7103_s10 + $0x40] sm:$0xff] }
 0x259   : > { %4969 = vmatprep.mubr.f32.mxu0 %v5528_v7  ;;  %4973 = vmatpush3.msra.mxu1 %v3863_v6  ;;  %v2222_v6 = vld [vmem:[%s7103_s10 + $0x30] sm:$0xff]  ;;  %v2221_v7 = vld [vmem:[%s7103_s10 + $0x28] sm:$0xff] }
 0x25a   : > { %5004 = vmatprep.mubr.f32.mxu1 %v5529_v9  ;;  %4939 = vmatprep.subr.mxu0 %v3846_v8  ;;  %v2219_v9 = vld [vmem:[%s7103_s10 + $0x18] sm:$0xff] }
 0x25b   : > { %4974 = vmatprep.subr.mxu1 %v3862_v10  ;;  %4940 = vmatpush3.msra.mxu0 %v3846_v8  ;;  %v2220_v8 = vld [vmem:[%s7103_s10 + $0x20] sm:$0xff] }
 0x25c   : > { %4975 = vmatpush3.msra.mxu1 %v3862_v10  ;;  %4941 = vmatprep.subr.mxu0 %v3845_v11  ;;  %v2218_v10 = vld [vmem:[%s7103_s10 + $0x10] sm:$0xff] }
 0x25d   : > { %4976 = vmatprep.subr.mxu1 %v3861_v12  ;;  %4942 = vmatpush3.msra.mxu0 %v3845_v11  ;;  %v2217_v11 = vld [vmem:[%s7103_s10 + $0x8] sm:$0xff] }
 0x25e   : > { %4977 = vmatpush3.msra.mxu1 %v3861_v12  ;;  %4943 = vmatprep.subr.mxu0 %v3844_v13  ;;  %v2216_v12 = vld [vmem:[%s7103_s10] sm:$0xff] }
 0x25f   : > { %4978 = vmatprep.subr.mxu1 %v3860_v14  ;;  %4944 = vmatpush3.msra.mxu0 %v3844_v13 }
 0x260   : > { %4979 = vmatpush3.msra.mxu1 %v3860_v14  ;;  %4945 = vmatprep.subr.mxu0 %v3843_v15 }
 0x261   : > { %4980 = vmatprep.subr.mxu1 %v3859_v16  ;;  %4946 = vmatpush3.msra.mxu0 %v3843_v15 }
 0x262   : > { %4981 = vmatpush3.msra.mxu1 %v3859_v16  ;;  %4947 = vmatprep.subr.mxu0 %v3842_v17 }
 0x263   : > { %4982 = vmatprep.subr.mxu1 %v3858_v18  ;;  %4948 = vmatpush3.msra.mxu0 %v3842_v17 }
 0x264   : > { %4983 = vmatpush3.msra.mxu1 %v3858_v18  ;;  %4949 = vmatprep.subr.mxu0 %v3841_v19 }
 0x265   : > { %4984 = vmatprep.subr.mxu1 %v3857_v20  ;;  %4950 = vmatpush3.msra.mxu0 %v3841_v19 }
 0x266   : > { %4985 = vmatpush3.msra.mxu1 %v3857_v20  ;;  %4951 = vmatprep.subr.mxu0 %v3840_v21 }
 0x267   : > { %4986 = vmatprep.subr.mxu1 %v3856_v22  ;;  %4952 = vmatpush3.msra.mxu0 %v3840_v21 }
 0x268   : > { %4987 = vmatpush3.msra.mxu1 %v3856_v22  ;;  %4953 = vmatprep.subr.mxu0 %v3839_v23 }
 0x269   : > { %4988 = vmatprep.subr.mxu1 %v3855_v24  ;;  %4954 = vmatpush3.msra.mxu0 %v3839_v23 }
 0x26a   : > { %4989 = vmatpush3.msra.mxu1 %v3855_v24  ;;  %4955 = vmatprep.subr.mxu0 %v3838_v25 }
 0x26b   : > { %4990 = vmatprep.subr.mxu1 %v3854_v26  ;;  %4956 = vmatpush3.msra.mxu0 %v3838_v25 }
 0x26c   : > { %4991 = vmatpush3.msra.mxu1 %v3854_v26  ;;  %4957 = vmatprep.subr.mxu0 %v3837_v27 }
 0x26d   : > { %4992 = vmatprep.subr.mxu1 %v3853_v28  ;;  %4958 = vmatpush3.msra.mxu0 %v3837_v27 }
 0x26e   : > { %4993 = vmatpush3.msra.mxu1 %v3853_v28  ;;  %4959 = vmatprep.subr.mxu0 %v3836_v29 }
 0x26f   : > { %4994 = vmatprep.subr.mxu1 %v3852_v30  ;;  %4960 = vmatpush3.msra.mxu0 %v3836_v29 }
 0x270   : > { %4995 = vmatpush3.msra.mxu1 %v3852_v30  ;;  %4961 = vmatprep.subr.mxu0 %v3835_v31 }
 0x271   : > { %4996 = vmatprep.subr.mxu1 %v3851_v32  ;;  %4962 = vmatpush3.msra.mxu0 %v3835_v31 }
 0x272   : > { %4997 = vmatpush3.msra.mxu1 %v3851_v32  ;;  %4963 = vmatprep.subr.mxu0 %v3834_v33 }
 0x273   : > { %4998 = vmatprep.subr.mxu1 %v3850_v34  ;;  %4964 = vmatpush3.msra.mxu0 %v3834_v33 }
 0x274   : > { %4999 = vmatpush3.msra.mxu1 %v3850_v34  ;;  %4965 = vmatprep.subr.mxu0 %v3833_v35 }
 0x275   : > { %5000 = vmatprep.subr.mxu1 %v3849_v36  ;;  %4966 = vmatpush3.msra.mxu0 %v3833_v35 }
 0x276   : > { %5001 = vmatpush3.msra.mxu1 %v3849_v36  ;;  %4967 = vmatprep.subr.mxu0 %v3832_v37 }
 0x277   : > { %5002 = vmatprep.subr.mxu1 %v3848_v39  ;;  %4968 = vmatpush3.msra.mxu0 %v3832_v37 }
 0x278   : > { %5003 = vmatpush3.msra.mxu1 %v3848_v39  ;;  %4970 = vmatmul.mubr.f32.vlgmr.msra.gmra.mxu0 %v5530_v41 }
 0x279   : > { %5005 = vmatmul.mubr.f32.vlgmr.msra.gmra.mxu1 %v5531_v44  ;;  %5007 = vmatprep.subr.mxu0 %v3879_v43 }
 0x27a   : > { %5008 = vmatpush3.msra.mxu0 %v3879_v43  ;;  %5039 = vmatprep.mubr.f32.mxu0 %v5532_v45 }
 0x27b   : > { %5009 = vmatprep.subr.mxu0 %v3878_v46  ;;  %5042 = vmatprep.subr.mxu1 %v6406_v48 }
 0x27c   : > { %5010 = vmatpush3.msra.mxu0 %v3878_v46  ;;  %5074 = vmatprep.mubr.msk.f32.mxu1 %vm5569_vm0, %v6406_v48  ;;  %v3880_v46 = vld [vmem:[%s7100_s7] ss:$0 sm:$0xff] }
 0x27d   : > { %5011 = vmatprep.subr.mxu0 %v3877_v47  ;;  %5043 = vmatpush3.msra.mxu1 %v2231_v61 }
 0x27e   : > { %5012 = vmatpush3.msra.mxu0 %v3877_v47  ;;  %5044 = vmatprep.subr.mxu1 %v6406_v48 }
 0x27f   : > { %5013 = vmatprep.subr.mxu0 %v3876_v49  ;;  %5045 = vmatpush3.msra.mxu1 %v2230_v62 }
 0x280   : > { %5014 = vmatpush3.msra.mxu0 %v3876_v49  ;;  %5046 = vmatprep.subr.mxu1 %v6406_v48 }
 0x281   : > { %5015 = vmatprep.subr.mxu0 %v3875_v50  ;;  %5047 = vmatpush3.msra.mxu1 %v2229_v63 }
 0x282   : > { %5016 = vmatpush3.msra.mxu0 %v3875_v50  ;;  %5048 = vmatprep.subr.mxu1 %v6406_v48 }
 0x283   : > { %5017 = vmatprep.subr.mxu0 %v3874_v51  ;;  %5049 = vmatpush3.msra.mxu1 %v2228_v0 }
 0x284   : > { %5018 = vmatpush3.msra.mxu0 %v3874_v51  ;;  %5050 = vmatprep.subr.mxu1 %v6406_v48 }
 0x285   : > { %5019 = vmatprep.subr.mxu0 %v3873_v52  ;;  %5051 = vmatpush3.msra.mxu1 %v2227_v1 }
 0x286   : > { %5020 = vmatpush3.msra.mxu0 %v3873_v52  ;;  %5052 = vmatprep.subr.mxu1 %v6406_v48 }
 0x287   : > { %5021 = vmatprep.subr.mxu0 %v3872_v53  ;;  %5053 = vmatpush3.msra.mxu1 %v2226_v2 }
 0x288   : > { %5022 = vmatpush3.msra.mxu0 %v3872_v53  ;;  %5054 = vmatprep.subr.mxu1 %v6406_v48 }
 0x289   : > { %5023 = vmatprep.subr.mxu0 %v3871_v42  ;;  %5055 = vmatpush3.msra.mxu1 %v2225_v3 }
 0x28a   : > { %5024 = vmatpush3.msra.mxu0 %v3871_v42  ;;  %5056 = vmatprep.subr.mxu1 %v6406_v48 }
 0x28b   : > { %5025 = vmatprep.subr.mxu0 %v3870_v40  ;;  %5057 = vmatpush3.msra.mxu1 %v2224_v4 }
 0x28c   : > { %5026 = vmatpush3.msra.mxu0 %v3870_v40  ;;  %5058 = vmatprep.subr.mxu1 %v6406_v48 }
 0x28d   : > { %5027 = vmatprep.subr.mxu0 %v3869_v54  ;;  %5059 = vmatpush3.msra.mxu1 %v2223_v5 }
 0x28e   : > { %5028 = vmatpush3.msra.mxu0 %v3869_v54  ;;  %5060 = vmatprep.subr.mxu1 %v6406_v48 }
 0x28f   : > { %5029 = vmatprep.subr.mxu0 %v3868_v55  ;;  %5061 = vmatpush3.msra.mxu1 %v2222_v6 }
 0x290   : > { %5030 = vmatpush3.msra.mxu0 %v3868_v55  ;;  %5062 = vmatprep.subr.mxu1 %v6406_v48 }
 0x291   : > { %5031 = vmatprep.subr.mxu0 %v3867_v56  ;;  %5063 = vmatpush3.msra.mxu1 %v2221_v7 }
 0x292   : > { %5032 = vmatpush3.msra.mxu0 %v3867_v56  ;;  %5064 = vmatprep.subr.mxu1 %v6406_v48 }
 0x293   : > { %5033 = vmatprep.subr.mxu0 %v3866_v57  ;;  %5065 = vmatpush3.msra.mxu1 %v2220_v8 }
 0x294   : > { %5034 = vmatpush3.msra.mxu0 %v3866_v57  ;;  %5066 = vmatprep.subr.mxu1 %v6406_v48 }
 0x295   : > { %5035 = vmatprep.subr.mxu0 %v3865_v58  ;;  %5067 = vmatpush3.msra.mxu1 %v2219_v9 }
 0x296   : > { %5036 = vmatpush3.msra.mxu0 %v3865_v58  ;;  %5068 = vmatprep.subr.mxu1 %v6406_v48 }
 0x297   : > { %5037 = vmatprep.subr.mxu0 %v3864_v59  ;;  %5069 = vmatpush3.msra.mxu1 %v2218_v10 }
 0x298   : > { %5038 = vmatpush3.msra.mxu0 %v3864_v59  ;;  %5070 = vmatprep.subr.mxu1 %v6406_v48 }
 0x299   : > { %5040 = vmatmul.mubr.f32.vlgmr.msra.gmra.mxu0 %v5533_v60  ;;  %5077 = vmatprep.subr.mxu0 %v6406_v48 }
 0x29a   : > { %5109 = vmatprep.mubr.msk.f32.mxu0 %vm5569_vm0, %v6406_v48  ;;  %5078 = vmatpush3.msra.mxu0 %v2231_v61 }
 0x29b   : > { %5079 = vmatprep.subr.mxu0 %v6406_v48  ;;  %5071 = vmatpush3.msra.mxu1 %v2217_v11 }
 0x29c   : > { %5080 = vmatpush3.msra.mxu0 %v2230_v62  ;;  %5072 = vmatprep.subr.mxu1 %v6406_v48 }
 0x29d   : > { %5081 = vmatprep.subr.mxu0 %v6406_v48  ;;  %5073 = vmatpush3.msra.mxu1 %v2216_v12 }
 0x29e   : > { %5082 = vmatpush3.msra.mxu0 %v2229_v63 }
 0x29f   : > { %5083 = vmatprep.subr.mxu0 %v6406_v48 }
 0x2a0   : > { %5084 = vmatpush3.msra.mxu0 %v2228_v0 }
 0x2a1   : > { %5085 = vmatprep.subr.mxu0 %v6406_v48 }
 0x2a2   : > { %5086 = vmatpush3.msra.mxu0 %v2227_v1 }
 0x2a3   : > { %5087 = vmatprep.subr.mxu0 %v6406_v48 }
 0x2a4   : > { %5088 = vmatpush3.msra.mxu0 %v2226_v2 }
 0x2a5   : > { %5089 = vmatprep.subr.mxu0 %v6406_v48 }
 0x2a6   : > { %5090 = vmatpush3.msra.mxu0 %v2225_v3  ;;  %v3898_v3 = vld [vmem:[%s7104_s11 + $0xf8] sm:$0xff] }
 0x2a7   : > { %5091 = vmatprep.subr.mxu0 %v6406_v48  ;;  %5112 = vmatprep.subr.mxu1 %v3898_v3 }
 0x2a8   : > { %5092 = vmatpush3.msra.mxu0 %v2224_v4  ;;  %v2453_v4 = vld [vmem:[%s7104_s11 + $0x78] sm:$0xff] }
 0x2a9   : > { %5093 = vmatprep.subr.mxu0 %v6406_v48 }
 0x2aa   : > { %5094 = vmatpush3.msra.mxu0 %v2223_v5  ;;  %v3897_v5 = vld [vmem:[%s7104_s11 + $0xf0] sm:$0xff] }
 0x2ab   : > { %5095 = vmatprep.subr.mxu0 %v6406_v48 }
 0x2ac   : > { %5096 = vmatpush3.msra.mxu0 %v2222_v6  ;;  %v2452_v6 = vld [vmem:[%s7104_s11 + $0x70] sm:$0xff] }
 0x2ad   : > { %5097 = vmatprep.subr.mxu0 %v6406_v48 }
 0x2ae   : > { %5098 = vmatpush3.msra.mxu0 %v2221_v7  ;;  %v3896_v7 = vld [vmem:[%s7104_s11 + $0xe8] sm:$0xff] }
 0x2af   : > { %5099 = vmatprep.subr.mxu0 %v6406_v48 }
 0x2b0   : > { %5100 = vmatpush3.msra.mxu0 %v2220_v8  ;;  %v2451_v8 = vld [vmem:[%s7104_s11 + $0x68] sm:$0xff] }
 0x2b1   : > { %5101 = vmatprep.subr.mxu0 %v6406_v48 }
 0x2b2   : > { %5102 = vmatpush3.msra.mxu0 %v2219_v9  ;;  %v3895_v9 = vld [vmem:[%s7104_s11 + $0xe0] sm:$0xff] }
 0x2b3   : > { %5103 = vmatprep.subr.mxu0 %v6406_v48 }
 0x2b4   : > { %5104 = vmatpush3.msra.mxu0 %v2218_v10  ;;  %v2450_v10 = vld [vmem:[%s7104_s11 + $0x60] sm:$0xff] }
 0x2b5   : > { %5105 = vmatprep.subr.mxu0 %v6406_v48 }
 0x2b6   : > { %5106 = vmatpush3.msra.mxu0 %v2217_v11  ;;  %v3894_v11 = vld [vmem:[%s7104_s11 + $0xd8] sm:$0xff] }
 0x2b7   : > { %5107 = vmatprep.subr.mxu0 %v6406_v48 }
 0x2b8   : > { %5108 = vmatpush3.msra.mxu0 %v2216_v12  ;;  %v2449_v12 = vld [vmem:[%s7104_s11 + $0x58] sm:$0xff] }
 0x2b9   : > { %5147 = vmatprep.subr.mxu0 %v2453_v4 }
 0x2d3   : > { %v4761_v13 = vpop.f32.mrf.mxu0 }
 0x2d4   : > { %v4796_v14 = vpop.f32.mrf.mxu1 }
 0x2d5   : > { %v1356_v15 = vpop.f32.mrf.mxu0  ;;  %v1445_v18 = vadd.f32 %v4796_v14, %v4761_v13  ;;  %v3893_v13 = vld [vmem:[%s7104_s11 + $0xd0] sm:$0xff] }
 0x2d6   : > { %v1439_v17 = vpop.f32.mrf.mxu1  ;;  %v2448_v14 = vld [vmem:[%s7104_s11 + $0x50] sm:$0xff] }
 0x2d7   : > { %v1440_v20 = vadd.f32 %v1439_v17, %v1356_v15  ;;  %v3892_v15 = vld [vmem:[%s7104_s11 + $0xc8] sm:$0xff]  ;;  %v3891_v17 = vld [vmem:[%s7104_s11 + $0xc0] sm:$0xff] }
 0x2f4   : > { %v4831_v16 = vpop.f32.mrf.mxu0 }
 0x2f5   : > { %v1553_v21 = vadd.f32 %v4831_v16, %v1445_v18  ;;  %v4866_v22 = vpop.f32.mrf.mxu1  ;;  %v2447_v16 = vld [vmem:[%s7104_s11 + $0x48] sm:$0xff]  ;;  %v2446_v18 = vld [vmem:[%s7104_s11 + $0x40] sm:$0xff] }
 0x2f6   : > { %v1543_v19 = vpop.f32.mrf.mxu0 }
 0x2f7   : > { %v1552_v24 = vadd.f32 %v1543_v19, %v1440_v20  ;;  %v1659_v25 = vadd.f32 %v4866_v22, %v1553_v21  ;;  %v1649_v26 = vpop.f32.mrf.mxu1  ;;  %v3890_v19 = vld [vmem:[%s7104_s11 + $0xb8] sm:$0xff]  ;;  %v3889_v21 = vld [vmem:[%s7104_s11 + $0xb0] sm:$0xff] }
 0x2f8   : > { %v2445_v20 = vld [vmem:[%s7104_s11 + $0x38] sm:$0xff]  ;;  %v2444_v22 = vld [vmem:[%s7104_s11 + $0x30] sm:$0xff] }
 0x2f9   : > { %v1658_v28 = vadd.f32 %v1649_v26, %v1552_v24  ;;  %v2443_v24 = vld [vmem:[%s7104_s11 + $0x28] sm:$0xff]  ;;  %v2442_v26 = vld [vmem:[%s7104_s11 + $0x20] sm:$0xff] }
 0x316   : > { %v4901_v23 = vpop.f32.mrf.mxu0 }
 0x317   : > { %v1765_v29 = vadd.f32 %v4901_v23, %v1659_v25  ;;  %v4936_v30 = vpop.f32.mrf.mxu1  ;;  %v3888_v23 = vld [vmem:[%s7104_s11 + $0xa8] sm:$0xff]  ;;  %v3887_v25 = vld [vmem:[%s7104_s11 + $0xa0] sm:$0xff] }
 0x318   : > { %v1755_v27 = vpop.f32.mrf.mxu0 }
 0x319   : > { %v1764_v32 = vadd.f32 %v1755_v27, %v1658_v28  ;;  %v1871_v33 = vadd.f32 %v4936_v30, %v1765_v29  ;;  %v1861_v34 = vpop.f32.mrf.mxu1  ;;  %v3886_v27 = vld [vmem:[%s7104_s11 + $0x98] sm:$0xff]  ;;  %v3885_v29 = vld [vmem:[%s7104_s11 + $0x90] sm:$0xff] }
 0x31a   : > { %v2441_v28 = vld [vmem:[%s7104_s11 + $0x18] sm:$0xff]  ;;  %v2440_v30 = vld [vmem:[%s7104_s11 + $0x10] sm:$0xff] }
 0x31b   : > { %v1870_v36 = vadd.f32 %v1861_v34, %v1764_v32  ;;  %v2439_v32 = vld [vmem:[%s7104_s11 + $0x8] sm:$0xff]  ;;  %v2438_v34 = vld [vmem:[%s7104_s11] sm:$0xff] }
 0x338   : > { %v4971_v31 = vpop.f32.mrf.mxu0 }
 0x339   : > { %v1978_v37 = vadd.f32 %v4971_v31, %v1871_v33  ;;  %v5006_v39 = vpop.f32.mrf.mxu1  ;;  %v3884_v31 = vld [vmem:[%s7104_s11 + $0x88] sm:$0xff]  ;;  %v3883_v33 = vld [vmem:[%s7104_s11 + $0x80] sm:$0xff] }
 0x33a   : > { %v1968_v35 = vpop.f32.mrf.mxu0 }
 0x33b   : > { %v1977_v41 = vadd.f32 %v1968_v35, %v1870_v36  ;;  %v2084_v43 = vadd.f32 %v5006_v39, %v1978_v37  ;;  %v2074_v44 = vpop.f32.mrf.mxu1  ;;  %v3914_v35 = vld [vmem:[%s7104_s11 + $0x178] sm:$0xff] }
 0x33c   : > { %v3930_v36 = vld [vmem:[%s7104_s11 + $0x1f8] sm:$0xff] }
 0x33d   : > { %v2083_v47 = vadd.f32 %v2074_v44, %v1977_v41 }
 0x359   : > { %v5041_v45 = vpop.f32.mrf.mxu0 }
 0x35a   : > { %v2190_v48 = vadd.f32 %v5041_v45, %v2084_v43 }
 0x35b   : > { %v2180_v49 = vpop.f32.mrf.mxu0 }
 0x35c   : > { %v6534_v50 = vadd.f32 %v3880_v46, %v2190_v48  ;;  %v2189_v51 = vadd.f32 %v2180_v49, %v2083_v47 }
 0x35e   : > { %v6536_v52 = vadd.f32 %v3880_v46, %v2189_v51  ;;  %v2208_v53 = vmul.f32 %v6534_v50, %v6534_v50 }
 0x360   : > { %v2200_v42 = vadd.f32 %v6534_v50, %v6536_v52  ;;  %v2207_v40 = vmul.f32 %v6536_v52, %v6536_v52 }
 0x362   : > { %v2201_v54 = vrot.slane %v2200_v42, 4  ;;  %v2209_v55 = vadd.f32 %v2208_v53, %v2207_v40 }
 0x364   : > { %v2202_v56 = vadd.f32 %v2201_v54, %v2200_v42  ;;  %v2210_v57 = vrot.slane %v2209_v55, 4  ;;  %v3881_v42 = vld [vmem:[%s7101_s8] ss:$0 sm:$0xff] }
 0x366   : > { %v2203_v58 = vrot.slane %v2202_v56, 2  ;;  %v2211_v59 = vadd.f32 %v2210_v57, %v2209_v55  ;;  %v3882_v55 = vld [vmem:[%s7102_s9] ss:$0 sm:$0xff] }
 0x368   : > { %v2204_v60 = vadd.f32 %v2203_v58, %v2202_v56  ;;  %v2212_v61 = vrot.slane %v2211_v59, 2 }
 0x36a   : > { %v2205_v62 = vrot.slane %v2204_v60, 1  ;;  %v2213_v63 = vadd.f32 %v2212_v61, %v2211_v59 }
 0x36c   : > { %v2206_v0 = vadd.f32 %v2205_v62, %v2204_v60  ;;  %v2214_v1 = vrot.slane %v2213_v63, 1 }
 0x36e   : > { %5075 = vmatmul.mubr.f32.vlgmr.msra.gmra.mxu1 %v2206_v0  ;;  %v2215_v2 = vadd.f32 %v2214_v1, %v2213_v63 }
 0x36f   : > { %5113 = vmatpush3.msra.mxu1 %v3898_v3 }
 0x370   : > { %5110 = vmatmul.mubr.f32.vlgmr.msra.gmra.mxu0 %v2215_v2  ;;  %5114 = vmatprep.subr.mxu1 %v3897_v5  ;;  %v3913_v2 = vld [vmem:[%s7104_s11 + $0x170] sm:$0xff] }
 0x371   : > { %5148 = vmatpush3.msra.mxu0 %v2453_v4  ;;  %5115 = vmatpush3.msra.mxu1 %v3897_v5  ;;  %v3929_v5 = vld [vmem:[%s7104_s11 + $0x1f0] sm:$0xff] }
 0x372   : > { %5149 = vmatprep.subr.mxu0 %v2452_v6  ;;  %5116 = vmatprep.subr.mxu1 %v3896_v7 }
 0x373   : > { %5150 = vmatpush3.msra.mxu0 %v2452_v6  ;;  %5117 = vmatpush3.msra.mxu1 %v3896_v7 }
 0x374   : > { %5151 = vmatprep.subr.mxu0 %v2451_v8  ;;  %5118 = vmatprep.subr.mxu1 %v3895_v9 }
 0x375   : > { %5152 = vmatpush3.msra.mxu0 %v2451_v8  ;;  %5119 = vmatpush3.msra.mxu1 %v3895_v9  ;;  %v3912_v8 = vld [vmem:[%s7104_s11 + $0x168] sm:$0xff] }
 0x376   : > { %5153 = vmatprep.subr.mxu0 %v2450_v10  ;;  %5120 = vmatprep.subr.mxu1 %v3894_v11  ;;  %v3928_v9 = vld [vmem:[%s7104_s11 + $0x1e8] sm:$0xff] }
 0x377   : > { %5154 = vmatpush3.msra.mxu0 %v2450_v10  ;;  %5121 = vmatpush3.msra.mxu1 %v3894_v11  ;;  %v3911_v10 = vld [vmem:[%s7104_s11 + $0x160] sm:$0xff] }
 0x378   : > { %5155 = vmatprep.subr.mxu0 %v2449_v12  ;;  %5122 = vmatprep.subr.mxu1 %v3893_v13  ;;  %v3927_v11 = vld [vmem:[%s7104_s11 + $0x1e0] sm:$0xff] }
 0x379   : > { %5156 = vmatpush3.msra.mxu0 %v2449_v12  ;;  %5123 = vmatpush3.msra.mxu1 %v3893_v13  ;;  %v3910_v12 = vld [vmem:[%s7104_s11 + $0x158] sm:$0xff] }
 0x37a   : > { %5157 = vmatprep.subr.mxu0 %v2448_v14  ;;  %5124 = vmatprep.subr.mxu1 %v3892_v15  ;;  %v3926_v13 = vld [vmem:[%s7104_s11 + $0x1d8] sm:$0xff] }
 0x37b   : > { %5158 = vmatpush3.msra.mxu0 %v2448_v14  ;;  %5125 = vmatpush3.msra.mxu1 %v3892_v15  ;;  %v3909_v14 = vld [vmem:[%s7104_s11 + $0x150] sm:$0xff] }
 0x37c   : > { %5159 = vmatprep.subr.mxu0 %v2447_v16  ;;  %5126 = vmatprep.subr.mxu1 %v3891_v17  ;;  %v3925_v15 = vld [vmem:[%s7104_s11 + $0x1d0] sm:$0xff] }
 0x37d   : > { %5160 = vmatpush3.msra.mxu0 %v2447_v16  ;;  %5127 = vmatpush3.msra.mxu1 %v3891_v17  ;;  %v3908_v16 = vld [vmem:[%s7104_s11 + $0x148] sm:$0xff] }
 0x37e   : > { %5161 = vmatprep.subr.mxu0 %v2446_v18  ;;  %5128 = vmatprep.subr.mxu1 %v3890_v19  ;;  %v3924_v17 = vld [vmem:[%s7104_s11 + $0x1c8] sm:$0xff] }
 0x37f   : > { %5162 = vmatpush3.msra.mxu0 %v2446_v18  ;;  %5129 = vmatpush3.msra.mxu1 %v3890_v19  ;;  %v3907_v18 = vld [vmem:[%s7104_s11 + $0x140] sm:$0xff] }
 0x380   : > { %5163 = vmatprep.subr.mxu0 %v2445_v20  ;;  %5130 = vmatprep.subr.mxu1 %v3889_v21  ;;  %v3923_v19 = vld [vmem:[%s7104_s11 + $0x1c0] sm:$0xff] }
 0x381   : > { %5164 = vmatpush3.msra.mxu0 %v2445_v20  ;;  %5131 = vmatpush3.msra.mxu1 %v3889_v21  ;;  %v3906_v20 = vld [vmem:[%s7104_s11 + $0x138] sm:$0xff] }
 0x382   : > { %5165 = vmatprep.subr.mxu0 %v2444_v22  ;;  %5132 = vmatprep.subr.mxu1 %v3888_v23  ;;  %v3922_v21 = vld [vmem:[%s7104_s11 + $0x1b8] sm:$0xff] }
 0x383   : > { %5166 = vmatpush3.msra.mxu0 %v2444_v22  ;;  %5133 = vmatpush3.msra.mxu1 %v3888_v23  ;;  %v3905_v22 = vld [vmem:[%s7104_s11 + $0x130] sm:$0xff] }
 0x384   : > { %5167 = vmatprep.subr.mxu0 %v2443_v24  ;;  %5134 = vmatprep.subr.mxu1 %v3887_v25  ;;  %v3921_v23 = vld [vmem:[%s7104_s11 + $0x1b0] sm:$0xff] }
 0x385   : > { %5168 = vmatpush3.msra.mxu0 %v2443_v24  ;;  %5135 = vmatpush3.msra.mxu1 %v3887_v25  ;;  %v3904_v24 = vld [vmem:[%s7104_s11 + $0x128] sm:$0xff] }
 0x386   : > { %5169 = vmatprep.subr.mxu0 %v2442_v26  ;;  %5136 = vmatprep.subr.mxu1 %v3886_v27  ;;  %v3920_v25 = vld [vmem:[%s7104_s11 + $0x1a8] sm:$0xff] }
 0x387   : > { %5170 = vmatpush3.msra.mxu0 %v2442_v26  ;;  %5137 = vmatpush3.msra.mxu1 %v3886_v27  ;;  %v3903_v26 = vld [vmem:[%s7104_s11 + $0x120] sm:$0xff] }
 0x388   : > { %5171 = vmatprep.subr.mxu0 %v2441_v28  ;;  %5138 = vmatprep.subr.mxu1 %v3885_v29  ;;  %v3919_v27 = vld [vmem:[%s7104_s11 + $0x1a0] sm:$0xff] }
 0x389   : > { %5172 = vmatpush3.msra.mxu0 %v2441_v28  ;;  %5139 = vmatpush3.msra.mxu1 %v3885_v29  ;;  %v3902_v28 = vld [vmem:[%s7104_s11 + $0x118] sm:$0xff] }
 0x38a   : > { %5173 = vmatprep.subr.mxu0 %v2440_v30  ;;  %5140 = vmatprep.subr.mxu1 %v3884_v31  ;;  %v3918_v29 = vld [vmem:[%s7104_s11 + $0x198] sm:$0xff] }
 0x38b   : > { %5174 = vmatpush3.msra.mxu0 %v2440_v30  ;;  %5141 = vmatpush3.msra.mxu1 %v3884_v31  ;;  %v3901_v30 = vld [vmem:[%s7104_s11 + $0x110] sm:$0xff] }
 0x38c   : > { %5175 = vmatprep.subr.mxu0 %v2439_v32  ;;  %5142 = vmatprep.subr.mxu1 %v3883_v33  ;;  %v3917_v31 = vld [vmem:[%s7104_s11 + $0x190] sm:$0xff] }
 0x38d   : > { %5176 = vmatpush3.msra.mxu0 %v2439_v32  ;;  %5143 = vmatpush3.msra.mxu1 %v3883_v33  ;;  %v3900_v32 = vld [vmem:[%s7104_s11 + $0x108] sm:$0xff] }
 0x38e   : > { %5177 = vmatprep.subr.mxu0 %v2438_v34  ;;  %5182 = vmatprep.subr.mxu1 %v3914_v35  ;;  %v3916_v33 = vld [vmem:[%s7104_s11 + $0x188] sm:$0xff] }
 0x38f   : > { %5178 = vmatpush3.msra.mxu0 %v2438_v34  ;;  %v3899_v34 = vld [vmem:[%s7104_s11 + $0x100] sm:$0xff] }
 0x390   : > { %5217 = vmatprep.subr.mxu0 %v3930_v36 }
 0x42e   : > { %v2298_v37 = vpop.f32.mrf.mxu1 }
 0x42f   : > { %v2372_v39 = vmul.f32 %v2298_v37, %v2298_v37  ;;  %v2379_v47 = vrot.slane %v2298_v37, %v6103_v38  ;;  %v3946_v37 = vld [vmem:[%s7104_s11 + $0x278] sm:$0xff] }
 0x430   : > { %v5076_v41 = vpop.f32.mrf.mxu1  ;;  %v2368_v43 = vpop.f32.mrf.mxu0 }
 0x431   : > { %v2373_v44 = vsub.f32 %v2368_v43, %v2372_v39  ;;  %v2380_v49 = vsub.f32 %v6536_v52, %v2379_v47  ;;  %v2381_v51 = vsub.f32 %v6534_v50, %v2379_v47  ;;  %v3962_v41 = vld [vmem:[%s7104_s11 + $0x2f8] sm:$0xff]  ;;  %v3944_v47 = vld [vmem:[%s7104_s11 + $0x268] sm:$0xff] }
 0x432   : > { %v5111_v45 = vpop.f32.mrf.mxu0 }
 0x433   : > { %v2374_v46 = vadd.f32 1e-05, %v2373_v44  ;;  %v3945_v44 = vld [vmem:[%s7104_s11 + $0x270] sm:$0xff] }
 0x435   : > { %5554 = vrsqrt.f32 %v2374_v46  ;;  %v3961_v46 = vld [vmem:[%s7104_s11 + $0x2f0] sm:$0xff] }
 0x442   : > { %v5555_v48 = vpop.eup %5554 }
 0x443   : > { %v2385_v53 = vrot.slane %v5555_v48, %v6103_v38  ;;  %v3960_v48 = vld [vmem:[%s7104_s11 + $0x2e8] sm:$0xff] }
 0x445   : > { %v2386_v40 = vmul.f32 %v2385_v53, %v2380_v49  ;;  %v2387_v54 = vmul.f32 %v2385_v53, %v2381_v51  ;;  %v3943_v49 = vld [vmem:[%s7104_s11 + $0x260] sm:$0xff]  ;;  %v3942_v53 = vld [vmem:[%s7104_s11 + $0x258] sm:$0xff] }
 0x446   : > { %v3959_v51 = vld [vmem:[%s7104_s11 + $0x2e0] sm:$0xff] }
 0x447   : > { %v2395_v56 = vmul.f32 %v3881_v42, %v2386_v40  ;;  %v2396_v57 = vmul.f32 %v3881_v42, %v2387_v54  ;;  %v3958_v42 = vld [vmem:[%s7104_s11 + $0x2d8] sm:$0xff]  ;;  %v3941_v40 = vld [vmem:[%s7104_s11 + $0x250] sm:$0xff] }
 0x448   : > { %v3957_v54 = vld [vmem:[%s7104_s11 + $0x2d0] sm:$0xff] }
 0x449   : > { %v2404_v58 = vadd.f32 %v3882_v55, %v2395_v56  ;;  %v2405_v59 = vadd.f32 %v3882_v55, %v2396_v57  ;;  %v3940_v55 = vld [vmem:[%s7104_s11 + $0x248] sm:$0xff]  ;;  %v3939_v57 = vld [vmem:[%s7104_s11 + $0x240] sm:$0xff] }
 0x44a   : > { %v3956_v56 = vld [vmem:[%s7104_s11 + $0x2c8] sm:$0xff] }
 0x44b   : > { %vm2406_vm3 = vcmp.ge.f32.partialorder %v2404_v58, 0.0  ;;  %vm2407_vm4 = vcmp.ge.f32.partialorder %v2405_v59, 0.0  ;;  %v2408_v52 = vmul.f32 0.2, %v2404_v58  ;;  %v2409_v50 = vmul.f32 0.2, %v2405_v59 }
 0x44d   : > { %v2410_v60 = vsel %vm2406_vm3, %v2404_v58, %v2408_v52  ;;  %v2411_v61 = vsel %vm2407_vm4, %v2405_v59, %v2409_v50  ;;  %v3955_v58 = vld [vmem:[%s7104_s11 + $0x2c0] sm:$0xff]  ;;  %v3938_v59 = vld [vmem:[%s7104_s11 + $0x238] sm:$0xff]  ;;  %v3937_v50 = vld [vmem:[%s7104_s11 + $0x230] sm:$0xff] }
 0x44e   : > { %v2426_v62 = vcombine.high %v2410_v60, %v2410_v60  ;;  %v2427_v63 = vcombine.high %v2411_v61, %v2411_v61  ;;  %2430 = vst [vmem:[#allocation3 + $0x9] sm:$0xf] %v2410_v60  ;;  %2432 = vst [vmem:[#allocation3 + $0x19] sm:$0xf] %v2411_v61  ;;  %v3954_v52 = vld [vmem:[%s7104_s11 + $0x2b8] sm:$0xff]  ;;  %v3953_v60 = vld [vmem:[%s7104_s11 + $0x2b0] sm:$0xff] }
 0x44f   : > { %v3936_v61 = vld [vmem:[%s7104_s11 + $0x228] sm:$0xff] }
 0x450   : > { %2431 = vst [vmem:[#allocation3 + $0x11] sm:$0xf] %v2426_v62  ;;  %2433 = vst [vmem:[#allocation3 + $0x21] sm:$0xf] %v2427_v63  ;;  %v3952_v62 = vld [vmem:[%s7104_s11 + $0x2a8] sm:$0xff]  ;;  %v3935_v63 = vld [vmem:[%s7104_s11 + $0x220] sm:$0xff] }
 0x455   : > { %v5534_v0 = vld [vmem:[#allocation3 + $0x1] ss:$8 sps:$4 sm:$0xff]  }
 0x456   : > { %v5535_v1 = vld [vmem:[#allocation3] ss:$8 sps:$4 sm:$0xff]   ;;  %5144 = vmatprep.mubr.f32.mxu1 %v5534_v0  ;;  %v3951_v0 = vld [vmem:[%s7104_s11 + $0x2a0] sm:$0xff] }
 0x457   : > { %v5536_v3 = vld [vmem:[#allocation3 + $0x11] ss:$8 sps:$4 sm:$0xff]   ;;  %5179 = vmatprep.mubr.f32.mxu0 %v5535_v1  ;;  %v5538_v7 = vld [vmem:[#allocation3 + $0x2] ss:$8 sps:$4 sm:$0xff]  }
 0x458   : > { %v5537_v4 = vld [vmem:[#allocation3 + $0x10] ss:$8 sps:$4 sm:$0xff]   ;;  %5145 = vmatmul.mubr.f32.vlgmr.msra.gmra.mxu1 %v5536_v3  ;;  %v3934_v1 = vld [vmem:[%s7104_s11 + $0x218] sm:$0xff]  ;;  %v3933_v3 = vld [vmem:[%s7104_s11 + $0x210] sm:$0xff] }
 0x459   : > { %v5539_v6 = vld [vmem:[#allocation3 + $0x8] ss:$8 sps:$4 sm:$0xff]   ;;  %5180 = vmatmul.mubr.f32.vlgmr.msra.gmra.mxu0 %v5537_v4  ;;  %5183 = vmatpush3.msra.mxu1 %v3914_v35  ;;  %v5541_v39 = vld [vmem:[#allocation3 + $0x18] ss:$8 sps:$4 sm:$0xff]  }
 0x45a   : > { %5218 = vmatpush3.msra.mxu0 %v3930_v36  ;;  %5184 = vmatprep.subr.mxu1 %v3913_v2  ;;  %v3915_v35 = vld [vmem:[%s7104_s11 + $0x180] sm:$0xff]  ;;  %v3949_v4 = vld [vmem:[%s7104_s11 + $0x290] sm:$0xff] }
 0x45b   : > { %5214 = vmatprep.mubr.f32.mxu1 %v5538_v7  ;;  %5219 = vmatprep.subr.mxu0 %v3929_v5  ;;  %v5540_v36 = vld [vmem:[#allocation3 + $0x12] ss:$8 sps:$4 sm:$0xff]  }
 0x45c   : > { %5249 = vmatprep.mubr.f32.mxu0 %v5539_v6  ;;  %5185 = vmatpush3.msra.mxu1 %v3913_v2  ;;  %v5542_v43 = vld [vmem:[#allocation3 + $0x9] ss:$8 sps:$4 sm:$0xff]   ;;  %v3948_v6 = vld [vmem:[%s7104_s11 + $0x288] sm:$0xff] }
 0x45d   : > { %5220 = vmatpush3.msra.mxu0 %v3929_v5  ;;  %5186 = vmatprep.subr.mxu1 %v3912_v8  ;;  %v5543_v45 = vld [vmem:[#allocation3 + $0xa] ss:$8 sps:$4 sm:$0xff]   ;;  %v3932_v5 = vld [vmem:[%s7104_s11 + $0x208] sm:$0xff] }
 0x45e   : > { %5221 = vmatprep.subr.mxu0 %v3928_v9  ;;  %5187 = vmatpush3.msra.mxu1 %v3912_v8  ;;  %v3950_v2 = vld [vmem:[%s7104_s11 + $0x298] sm:$0xff]  ;;  %v3931_v7 = vld [vmem:[%s7104_s11 + $0x200] sm:$0xff] }
 0x45f   : > { %5222 = vmatpush3.msra.mxu0 %v3928_v9  ;;  %5188 = vmatprep.subr.mxu1 %v3911_v10  ;;  %v3947_v8 = vld [vmem:[%s7104_s11 + $0x280] sm:$0xff]  ;;  %v5544_v9 = vld [vmem:[#allocation3 + $0x19] ss:$8 sps:$4 sm:$0xff]  }
 0x460   : > { %5223 = vmatprep.subr.mxu0 %v3927_v11  ;;  %5189 = vmatpush3.msra.mxu1 %v3911_v10  ;;  %v3978_v10 = vld [vmem:[%s7104_s11 + $0x378] sm:$0xff] }
 0x461   : > { %5224 = vmatpush3.msra.mxu0 %v3927_v11  ;;  %5190 = vmatprep.subr.mxu1 %v3910_v12  ;;  %v5545_v11 = vld [vmem:[#allocation3 + $0x1a] ss:$8 sps:$4 sm:$0xff]  }
 0x462   : > { %5225 = vmatprep.subr.mxu0 %v3926_v13  ;;  %5191 = vmatpush3.msra.mxu1 %v3910_v12  ;;  %v3994_v12 = vld [vmem:[%s7104_s11 + $0x3f8] sm:$0xff] }
 0x463   : > { %5226 = vmatpush3.msra.mxu0 %v3926_v13  ;;  %5192 = vmatprep.subr.mxu1 %v3909_v14  ;;  %v5546_v13 = vld [vmem:[#allocation3 + $0x10] ss:$8 sps:$4 sm:$0xff]  }
 0x464   : > { %5227 = vmatprep.subr.mxu0 %v3925_v15  ;;  %5193 = vmatpush3.msra.mxu1 %v3909_v14  ;;  %v3977_v14 = vld [vmem:[%s7104_s11 + $0x370] sm:$0xff] }
 0x465   : > { %5228 = vmatpush3.msra.mxu0 %v3925_v15  ;;  %5194 = vmatprep.subr.mxu1 %v3908_v16  ;;  %v5547_v15 = vld [vmem:[#allocation3 + $0x11] ss:$8 sps:$4 sm:$0xff]  }
 0x466   : > { %5229 = vmatprep.subr.mxu0 %v3924_v17  ;;  %5195 = vmatpush3.msra.mxu1 %v3908_v16  ;;  %v3993_v16 = vld [vmem:[%s7104_s11 + $0x3f0] sm:$0xff] }
 0x467   : > { %5230 = vmatpush3.msra.mxu0 %v3924_v17  ;;  %5196 = vmatprep.subr.mxu1 %v3907_v18  ;;  %v3976_v17 = vld [vmem:[%s7104_s11 + $0x368] sm:$0xff] }
 0x468   : > { %5231 = vmatprep.subr.mxu0 %v3923_v19  ;;  %5197 = vmatpush3.msra.mxu1 %v3907_v18  ;;  %v3992_v18 = vld [vmem:[%s7104_s11 + $0x3e8] sm:$0xff] }
 0x469   : > { %5232 = vmatpush3.msra.mxu0 %v3923_v19  ;;  %5198 = vmatprep.subr.mxu1 %v3906_v20  ;;  %v3975_v19 = vld [vmem:[%s7104_s11 + $0x360] sm:$0xff] }
 0x46a   : > { %5233 = vmatprep.subr.mxu0 %v3922_v21  ;;  %5199 = vmatpush3.msra.mxu1 %v3906_v20  ;;  %v3991_v20 = vld [vmem:[%s7104_s11 + $0x3e0] sm:$0xff] }
 0x46b   : > { %5234 = vmatpush3.msra.mxu0 %v3922_v21  ;;  %5200 = vmatprep.subr.mxu1 %v3905_v22  ;;  %v3974_v21 = vld [vmem:[%s7104_s11 + $0x358] sm:$0xff] }
 0x46c   : > { %5235 = vmatprep.subr.mxu0 %v3921_v23  ;;  %5201 = vmatpush3.msra.mxu1 %v3905_v22  ;;  %v3990_v22 = vld [vmem:[%s7104_s11 + $0x3d8] sm:$0xff] }
 0x46d   : > { %5236 = vmatpush3.msra.mxu0 %v3921_v23  ;;  %5202 = vmatprep.subr.mxu1 %v3904_v24  ;;  %v3973_v23 = vld [vmem:[%s7104_s11 + $0x350] sm:$0xff] }
 0x46e   : > { %5237 = vmatprep.subr.mxu0 %v3920_v25  ;;  %5203 = vmatpush3.msra.mxu1 %v3904_v24  ;;  %v3989_v24 = vld [vmem:[%s7104_s11 + $0x3d0] sm:$0xff] }
 0x46f   : > { %5238 = vmatpush3.msra.mxu0 %v3920_v25  ;;  %5204 = vmatprep.subr.mxu1 %v3903_v26  ;;  %v3972_v25 = vld [vmem:[%s7104_s11 + $0x348] sm:$0xff] }
 0x470   : > { %5239 = vmatprep.subr.mxu0 %v3919_v27  ;;  %5205 = vmatpush3.msra.mxu1 %v3903_v26  ;;  %v3988_v26 = vld [vmem:[%s7104_s11 + $0x3c8] sm:$0xff] }
 0x471   : > { %5240 = vmatpush3.msra.mxu0 %v3919_v27  ;;  %5206 = vmatprep.subr.mxu1 %v3902_v28  ;;  %v3971_v27 = vld [vmem:[%s7104_s11 + $0x340] sm:$0xff] }
 0x472   : > { %5241 = vmatprep.subr.mxu0 %v3918_v29  ;;  %5207 = vmatpush3.msra.mxu1 %v3902_v28  ;;  %v3987_v28 = vld [vmem:[%s7104_s11 + $0x3c0] sm:$0xff] }
 0x473   : > { %5242 = vmatpush3.msra.mxu0 %v3918_v29  ;;  %5208 = vmatprep.subr.mxu1 %v3901_v30  ;;  %v3970_v29 = vld [vmem:[%s7104_s11 + $0x338] sm:$0xff] }
 0x474   : > { %5243 = vmatprep.subr.mxu0 %v3917_v31  ;;  %5209 = vmatpush3.msra.mxu1 %v3901_v30  ;;  %v3986_v30 = vld [vmem:[%s7104_s11 + $0x3b8] sm:$0xff] }
 0x475   : > { %5244 = vmatpush3.msra.mxu0 %v3917_v31  ;;  %5210 = vmatprep.subr.mxu1 %v3900_v32  ;;  %v3969_v31 = vld [vmem:[%s7104_s11 + $0x330] sm:$0xff] }
 0x476   : > { %5245 = vmatprep.subr.mxu0 %v3916_v33  ;;  %5211 = vmatpush3.msra.mxu1 %v3900_v32  ;;  %v3985_v32 = vld [vmem:[%s7104_s11 + $0x3b0] sm:$0xff] }
 0x477   : > { %5246 = vmatpush3.msra.mxu0 %v3916_v33  ;;  %5212 = vmatprep.subr.mxu1 %v3899_v34  ;;  %v3968_v33 = vld [vmem:[%s7104_s11 + $0x328] sm:$0xff] }
 0x478   : > { %5247 = vmatprep.subr.mxu0 %v3915_v35  ;;  %5213 = vmatpush3.msra.mxu1 %v3899_v34  ;;  %v3984_v34 = vld [vmem:[%s7104_s11 + $0x3a8] sm:$0xff] }
 0x479   : > { %5248 = vmatpush3.msra.mxu0 %v3915_v35  ;;  %5215 = vmatmul.mubr.f32.vlgmr.msra.gmra.mxu1 %v5540_v36  ;;  %v3967_v35 = vld [vmem:[%s7104_s11 + $0x320] sm:$0xff] }
 0x47a   : > { %5250 = vmatmul.mubr.f32.vlgmr.msra.gmra.mxu0 %v5541_v39  ;;  %5252 = vmatprep.subr.mxu1 %v3946_v37  ;;  %v3983_v36 = vld [vmem:[%s7104_s11 + $0x3a0] sm:$0xff]  ;;  %v3982_v39 = vld [vmem:[%s7104_s11 + $0x398] sm:$0xff] }
 0x47b   : > { %5287 = vmatprep.subr.mxu0 %v3962_v41  ;;  %5253 = vmatpush3.msra.mxu1 %v3946_v37  ;;  %v3966_v37 = vld [vmem:[%s7104_s11 + $0x318] sm:$0xff] }
 0x47c   : > { %5284 = vmatprep.mubr.f32.mxu1 %v5542_v43  ;;  %5288 = vmatpush3.msra.mxu0 %v3962_v41  ;;  %v3965_v41 = vld [vmem:[%s7104_s11 + $0x310] sm:$0xff] }
 0x47d   : > { %5319 = vmatprep.mubr.f32.mxu0 %v5543_v45  ;;  %5254 = vmatprep.subr.mxu1 %v3945_v44  ;;  %v3981_v43 = vld [vmem:[%s7104_s11 + $0x390] sm:$0xff]  ;;  %v3980_v45 = vld [vmem:[%s7104_s11 + $0x388] sm:$0xff] }
 0x47e   : > { %5289 = vmatprep.subr.mxu0 %v3961_v46  ;;  %5255 = vmatpush3.msra.mxu1 %v3945_v44  ;;  %v3964_v44 = vld [vmem:[%s7104_s11 + $0x308] sm:$0xff] }
 0x47f   : > { %5290 = vmatpush3.msra.mxu0 %v3961_v46  ;;  %5256 = vmatprep.subr.mxu1 %v3944_v47  ;;  %v3963_v46 = vld [vmem:[%s7104_s11 + $0x300] sm:$0xff] }
 0x480   : > { %5291 = vmatprep.subr.mxu0 %v3960_v48  ;;  %5257 = vmatpush3.msra.mxu1 %v3944_v47  ;;  %v3979_v47 = vld [vmem:[%s7104_s11 + $0x380] sm:$0xff] }
 0x481   : > { %5292 = vmatpush3.msra.mxu0 %v3960_v48  ;;  %5258 = vmatprep.subr.mxu1 %v3943_v49  ;;  %v5548_v48 = vld [vmem:[#allocation3 + $0x20] ss:$8 sps:$4 sm:$0xff]  }
 0x482   : > { %5293 = vmatprep.subr.mxu0 %v3959_v51  ;;  %5259 = vmatpush3.msra.mxu1 %v3943_v49  ;;  %v4010_v49 = vld [vmem:[%s7104_s11 + $0x478] sm:$0xff] }
 0x483   : > { %5294 = vmatpush3.msra.mxu0 %v3959_v51  ;;  %5260 = vmatprep.subr.mxu1 %v3942_v53  ;;  %v5549_v51 = vld [vmem:[#allocation3 + $0x21] ss:$8 sps:$4 sm:$0xff]  }
 0x484   : > { %5295 = vmatprep.subr.mxu0 %v3958_v42  ;;  %5261 = vmatpush3.msra.mxu1 %v3942_v53  ;;  %v5550_v53 = vld [vmem:[#allocation3 + $0x12] ss:$8 sps:$4 sm:$0xff]  }
 0x485   : > { %5296 = vmatpush3.msra.mxu0 %v3958_v42  ;;  %5262 = vmatprep.subr.mxu1 %v3941_v40  ;;  %v4009_v42 = vld [vmem:[%s7104_s11 + $0x470] sm:$0xff] }
 0x486   : > { %5297 = vmatprep.subr.mxu0 %v3957_v54  ;;  %5263 = vmatpush3.msra.mxu1 %v3941_v40  ;;  %v4008_v40 = vld [vmem:[%s7104_s11 + $0x468] sm:$0xff] }
 0x487   : > { %5298 = vmatpush3.msra.mxu0 %v3957_v54  ;;  %5264 = vmatprep.subr.mxu1 %v3940_v55  ;;  %v6947_v54 = vld [vmem:[#allocation2] sm:$0xff] }
 0x488   : > { %5299 = vmatprep.subr.mxu0 %v3956_v56  ;;  %5265 = vmatpush3.msra.mxu1 %v3940_v55  ;;  %v4007_v55 = vld [vmem:[%s7104_s11 + $0x460] sm:$0xff] }
 0x489   : > { %5300 = vmatpush3.msra.mxu0 %v3956_v56  ;;  %5266 = vmatprep.subr.mxu1 %v3939_v57  ;;  %v4006_v56 = vld [vmem:[%s7104_s11 + $0x458] sm:$0xff] }
 0x48a   : > { %5301 = vmatprep.subr.mxu0 %v3955_v58  ;;  %5267 = vmatpush3.msra.mxu1 %v3939_v57  ;;  %v4005_v57 = vld [vmem:[%s7104_s11 + $0x450] sm:$0xff] }
 0x48b   : > { %5302 = vmatpush3.msra.mxu0 %v3955_v58  ;;  %5268 = vmatprep.subr.mxu1 %v3938_v59  ;;  %v4004_v58 = vld [vmem:[%s7104_s11 + $0x448] sm:$0xff] }
 0x48c   : > { %5303 = vmatprep.subr.mxu0 %v3954_v52  ;;  %5269 = vmatpush3.msra.mxu1 %v3938_v59  ;;  %v4003_v59 = vld [vmem:[%s7104_s11 + $0x440] sm:$0xff] }
 0x48d   : > { %5304 = vmatpush3.msra.mxu0 %v3954_v52  ;;  %5270 = vmatprep.subr.mxu1 %v3937_v50  ;;  %v4002_v52 = vld [vmem:[%s7104_s11 + $0x438] sm:$0xff] }
 0x48e   : > { %5305 = vmatprep.subr.mxu0 %v3953_v60  ;;  %5271 = vmatpush3.msra.mxu1 %v3937_v50  ;;  %v4001_v50 = vld [vmem:[%s7104_s11 + $0x430] sm:$0xff] }
 0x48f   : > { %5306 = vmatpush3.msra.mxu0 %v3953_v60  ;;  %5272 = vmatprep.subr.mxu1 %v3936_v61  ;;  %v4000_v60 = vld [vmem:[%s7104_s11 + $0x428] sm:$0xff] }
 0x490   : > { %5307 = vmatprep.subr.mxu0 %v3952_v62  ;;  %5273 = vmatpush3.msra.mxu1 %v3936_v61  ;;  %v3999_v61 = vld [vmem:[%s7104_s11 + $0x420] sm:$0xff] }
 0x491   : > { %5308 = vmatpush3.msra.mxu0 %v3952_v62  ;;  %5274 = vmatprep.subr.mxu1 %v3935_v63  ;;  %v3998_v62 = vld [vmem:[%s7104_s11 + $0x418] sm:$0xff] }
 0x492   : > { %5309 = vmatprep.subr.mxu0 %v3951_v0  ;;  %5275 = vmatpush3.msra.mxu1 %v3935_v63  ;;  %v3997_v63 = vld [vmem:[%s7104_s11 + $0x410] sm:$0xff] }
 0x493   : > { %5310 = vmatpush3.msra.mxu0 %v3951_v0  ;;  %5276 = vmatprep.subr.mxu1 %v3934_v1  ;;  %v3996_v0 = vld [vmem:[%s7104_s11 + $0x408] sm:$0xff] }
 0x494   : > { %5311 = vmatprep.subr.mxu0 %v3950_v2  ;;  %5277 = vmatpush3.msra.mxu1 %v3934_v1  ;;  %v3995_v1 = vld [vmem:[%s7104_s11 + $0x400] sm:$0xff] }
 0x495   : > { %5312 = vmatpush3.msra.mxu0 %v3950_v2  ;;  %5278 = vmatprep.subr.mxu1 %v3933_v3  ;;  %v5551_v2 = vld [vmem:[#allocation3 + $0x22] ss:$8 sps:$4 sm:$0xff]  }
 0x496   : > { %5313 = vmatprep.subr.mxu0 %v3949_v4  ;;  %5279 = vmatpush3.msra.mxu1 %v3933_v3  ;;  %v3424_v3 = vld [vmem:[%s7108_s15 + $0x78] sm:$0xff] }
 0x497   : > { %5314 = vmatpush3.msra.mxu0 %v3949_v4  ;;  %5280 = vmatprep.subr.mxu1 %v3932_v5  ;;  %v3423_v4 = vld [vmem:[%s7108_s15 + $0x70] sm:$0xff] }
 0x498   : > { %5315 = vmatprep.subr.mxu0 %v3948_v6  ;;  %5281 = vmatpush3.msra.mxu1 %v3932_v5  ;;  %v3422_v5 = vld [vmem:[%s7108_s15 + $0x68] sm:$0xff] }
 0x499   : > { %5316 = vmatpush3.msra.mxu0 %v3948_v6  ;;  %5282 = vmatprep.subr.mxu1 %v3931_v7  ;;  %v3421_v6 = vld [vmem:[%s7108_s15 + $0x60] sm:$0xff] }
 0x49a   : > { %5317 = vmatprep.subr.mxu0 %v3947_v8  ;;  %5283 = vmatpush3.msra.mxu1 %v3931_v7  ;;  %v3420_v7 = vld [vmem:[%s7108_s15 + $0x58] sm:$0xff] }
 0x49b   : > { %5318 = vmatpush3.msra.mxu0 %v3947_v8  ;;  %5285 = vmatmul.mubr.f32.vlgmr.msra.gmra.mxu1 %v5544_v9  ;;  %v3419_v8 = vld [vmem:[%s7108_s15 + $0x50] sm:$0xff]  ;;  %v3418_v9 = vld [vmem:[%s7108_s15 + $0x48] sm:$0xff] }
 0x49c   : > { %5320 = vmatmul.mubr.f32.vlgmr.msra.gmra.mxu0 %v5545_v11  ;;  %5322 = vmatprep.subr.mxu1 %v3978_v10  ;;  %v3416_v11 = vld [vmem:[%s7108_s15 + $0x38] sm:$0xff] }
 0x49d   : > { %5357 = vmatprep.subr.mxu0 %v3994_v12  ;;  %5323 = vmatpush3.msra.mxu1 %v3978_v10  ;;  %v3417_v10 = vld [vmem:[%s7108_s15 + $0x40] sm:$0xff] }
 0x49e   : > { %5354 = vmatprep.mubr.f32.mxu1 %v5546_v13  ;;  %5358 = vmatpush3.msra.mxu0 %v3994_v12  ;;  %v3415_v12 = vld [vmem:[%s7108_s15 + $0x30] sm:$0xff]  ;;  %v3414_v13 = vld [vmem:[%s7108_s15 + $0x28] sm:$0xff] }
 0x49f   : > { %5389 = vmatprep.mubr.f32.mxu0 %v5547_v15  ;;  %5324 = vmatprep.subr.mxu1 %v3977_v14  ;;  %v3412_v15 = vld [vmem:[%s7108_s15 + $0x18] sm:$0xff] }
 0x4a0   : > { %5359 = vmatprep.subr.mxu0 %v3993_v16  ;;  %5325 = vmatpush3.msra.mxu1 %v3977_v14  ;;  %v3413_v14 = vld [vmem:[%s7108_s15 + $0x20] sm:$0xff] }
 0x4a1   : > { %5360 = vmatpush3.msra.mxu0 %v3993_v16  ;;  %5326 = vmatprep.subr.mxu1 %v3976_v17  ;;  %v3411_v16 = vld [vmem:[%s7108_s15 + $0x10] sm:$0xff] }
 0x4a2   : > { %5361 = vmatprep.subr.mxu0 %v3992_v18  ;;  %5327 = vmatpush3.msra.mxu1 %v3976_v17  ;;  %v3410_v17 = vld [vmem:[%s7108_s15 + $0x8] sm:$0xff] }
 0x4a3   : > { %5362 = vmatpush3.msra.mxu0 %v3992_v18  ;;  %5328 = vmatprep.subr.mxu1 %v3975_v19  ;;  %v3409_v18 = vld [vmem:[%s7108_s15] sm:$0xff] }
 0x4a4   : > { %5363 = vmatprep.subr.mxu0 %v3991_v20  ;;  %5329 = vmatpush3.msra.mxu1 %v3975_v19 }
 0x4a5   : > { %5364 = vmatpush3.msra.mxu0 %v3991_v20  ;;  %5330 = vmatprep.subr.mxu1 %v3974_v21 }
 0x4a6   : > { %5365 = vmatprep.subr.mxu0 %v3990_v22  ;;  %5331 = vmatpush3.msra.mxu1 %v3974_v21 }
 0x4a7   : > { %5366 = vmatpush3.msra.mxu0 %v3990_v22  ;;  %5332 = vmatprep.subr.mxu1 %v3973_v23 }
 0x4a8   : > { %5367 = vmatprep.subr.mxu0 %v3989_v24  ;;  %5333 = vmatpush3.msra.mxu1 %v3973_v23 }
 0x4a9   : > { %5368 = vmatpush3.msra.mxu0 %v3989_v24  ;;  %5334 = vmatprep.subr.mxu1 %v3972_v25 }
 0x4aa   : > { %5369 = vmatprep.subr.mxu0 %v3988_v26  ;;  %5335 = vmatpush3.msra.mxu1 %v3972_v25 }
 0x4ab   : > { %5370 = vmatpush3.msra.mxu0 %v3988_v26  ;;  %5336 = vmatprep.subr.mxu1 %v3971_v27 }
 0x4ac   : > { %5371 = vmatprep.subr.mxu0 %v3987_v28  ;;  %5337 = vmatpush3.msra.mxu1 %v3971_v27 }
 0x4ad   : > { %5372 = vmatpush3.msra.mxu0 %v3987_v28  ;;  %5338 = vmatprep.subr.mxu1 %v3970_v29 }
 0x4ae   : > { %5373 = vmatprep.subr.mxu0 %v3986_v30  ;;  %5339 = vmatpush3.msra.mxu1 %v3970_v29 }
 0x4af   : > { %5374 = vmatpush3.msra.mxu0 %v3986_v30  ;;  %5340 = vmatprep.subr.mxu1 %v3969_v31 }
 0x4b0   : > { %5375 = vmatprep.subr.mxu0 %v3985_v32  ;;  %5341 = vmatpush3.msra.mxu1 %v3969_v31 }
 0x4b1   : > { %5376 = vmatpush3.msra.mxu0 %v3985_v32  ;;  %5342 = vmatprep.subr.mxu1 %v3968_v33 }
 0x4b2   : > { %5377 = vmatprep.subr.mxu0 %v3984_v34  ;;  %5343 = vmatpush3.msra.mxu1 %v3968_v33 }
 0x4b3   : > { %5378 = vmatpush3.msra.mxu0 %v3984_v34  ;;  %5344 = vmatprep.subr.mxu1 %v3967_v35 }
 0x4b4   : > { %5379 = vmatprep.subr.mxu0 %v3983_v36  ;;  %5345 = vmatpush3.msra.mxu1 %v3967_v35 }
 0x4b5   : > { %5380 = vmatpush3.msra.mxu0 %v3983_v36  ;;  %5346 = vmatprep.subr.mxu1 %v3966_v37 }
 0x4b6   : > { %5381 = vmatprep.subr.mxu0 %v3982_v39  ;;  %5347 = vmatpush3.msra.mxu1 %v3966_v37 }
 0x4b7   : > { %5382 = vmatpush3.msra.mxu0 %v3982_v39  ;;  %5348 = vmatprep.subr.mxu1 %v3965_v41 }
 0x4b8   : > { %5383 = vmatprep.subr.mxu0 %v3981_v43  ;;  %5349 = vmatpush3.msra.mxu1 %v3965_v41 }
 0x4b9   : > { %5384 = vmatpush3.msra.mxu0 %v3981_v43  ;;  %5350 = vmatprep.subr.mxu1 %v3964_v44 }
 0x4ba   : > { %5385 = vmatprep.subr.mxu0 %v3980_v45  ;;  %5351 = vmatpush3.msra.mxu1 %v3964_v44 }
 0x4bb   : > { %5386 = vmatpush3.msra.mxu0 %v3980_v45  ;;  %5352 = vmatprep.subr.mxu1 %v3963_v46 }
 0x4bc   : > { %5387 = vmatprep.subr.mxu0 %v3979_v47  ;;  %5353 = vmatpush3.msra.mxu1 %v3963_v46 }
 0x4bd   : > { %5388 = vmatpush3.msra.mxu0 %v3979_v47  ;;  %5355 = vmatmul.mubr.f32.vlgmr.msra.gmra.mxu1 %v5548_v48 }
 0x4be   : > { %5390 = vmatmul.mubr.f32.vlgmr.msra.gmra.mxu0 %v5549_v51  ;;  %5392 = vmatprep.subr.mxu1 %v4010_v49 }
 0x4bf   : > { %5393 = vmatpush3.msra.mxu1 %v4010_v49  ;;  %5424 = vmatprep.mubr.f32.mxu1 %v5550_v53 }
 0x4c0   : > { %5394 = vmatprep.subr.mxu1 %v4009_v42  ;;  %5427 = vmatprep.subr.mxu0 %v6947_v54 }
 0x4c1   : > { %5395 = vmatpush3.msra.mxu1 %v4009_v42  ;;  %5459 = vmatprep.mubr.msk.f32.mxu0 %vm5569_vm0, %v6947_v54  ;;  %v4011_v42 = vld [vmem:[%s7105_s12] ss:$0 sm:$0xff] }
 0x4c2   : > { %5396 = vmatprep.subr.mxu1 %v4008_v40  ;;  %5428 = vmatpush3.msra.mxu0 %v3424_v3 }
 0x4c3   : > { %5397 = vmatpush3.msra.mxu1 %v4008_v40  ;;  %5429 = vmatprep.subr.mxu0 %v6947_v54 }
 0x4c4   : > { %5398 = vmatprep.subr.mxu1 %v4007_v55  ;;  %5430 = vmatpush3.msra.mxu0 %v3423_v4 }
 0x4c5   : > { %5399 = vmatpush3.msra.mxu1 %v4007_v55  ;;  %5431 = vmatprep.subr.mxu0 %v6947_v54 }
 0x4c6   : > { %5400 = vmatprep.subr.mxu1 %v4006_v56  ;;  %5432 = vmatpush3.msra.mxu0 %v3422_v5 }
 0x4c7   : > { %5401 = vmatpush3.msra.mxu1 %v4006_v56  ;;  %5433 = vmatprep.subr.mxu0 %v6947_v54 }
 0x4c8   : > { %5402 = vmatprep.subr.mxu1 %v4005_v57  ;;  %5434 = vmatpush3.msra.mxu0 %v3421_v6 }
 0x4c9   : > { %5403 = vmatpush3.msra.mxu1 %v4005_v57  ;;  %5435 = vmatprep.subr.mxu0 %v6947_v54 }
 0x4ca   : > { %5404 = vmatprep.subr.mxu1 %v4004_v58  ;;  %5436 = vmatpush3.msra.mxu0 %v3420_v7 }
 0x4cb   : > { %5405 = vmatpush3.msra.mxu1 %v4004_v58  ;;  %5437 = vmatprep.subr.mxu0 %v6947_v54 }
 0x4cc   : > { %5406 = vmatprep.subr.mxu1 %v4003_v59  ;;  %5438 = vmatpush3.msra.mxu0 %v3419_v8 }
 0x4cd   : > { %5407 = vmatpush3.msra.mxu1 %v4003_v59  ;;  %5439 = vmatprep.subr.mxu0 %v6947_v54 }
 0x4ce   : > { %5408 = vmatprep.subr.mxu1 %v4002_v52  ;;  %5440 = vmatpush3.msra.mxu0 %v3418_v9 }
 0x4cf   : > { %5409 = vmatpush3.msra.mxu1 %v4002_v52  ;;  %5441 = vmatprep.subr.mxu0 %v6947_v54 }
 0x4d0   : > { %5410 = vmatprep.subr.mxu1 %v4001_v50  ;;  %5442 = vmatpush3.msra.mxu0 %v3417_v10 }
 0x4d1   : > { %5411 = vmatpush3.msra.mxu1 %v4001_v50  ;;  %5443 = vmatprep.subr.mxu0 %v6947_v54 }
 0x4d2   : > { %5412 = vmatprep.subr.mxu1 %v4000_v60  ;;  %5444 = vmatpush3.msra.mxu0 %v3416_v11 }
 0x4d3   : > { %5413 = vmatpush3.msra.mxu1 %v4000_v60  ;;  %5445 = vmatprep.subr.mxu0 %v6947_v54 }
 0x4d4   : > { %5414 = vmatprep.subr.mxu1 %v3999_v61  ;;  %5446 = vmatpush3.msra.mxu0 %v3415_v12 }
 0x4d5   : > { %5415 = vmatpush3.msra.mxu1 %v3999_v61  ;;  %5447 = vmatprep.subr.mxu0 %v6947_v54 }
 0x4d6   : > { %5416 = vmatprep.subr.mxu1 %v3998_v62  ;;  %5448 = vmatpush3.msra.mxu0 %v3414_v13 }
 0x4d7   : > { %5417 = vmatpush3.msra.mxu1 %v3998_v62  ;;  %5449 = vmatprep.subr.mxu0 %v6947_v54 }
 0x4d8   : > { %5418 = vmatprep.subr.mxu1 %v3997_v63  ;;  %5450 = vmatpush3.msra.mxu0 %v3413_v14 }
 0x4d9   : > { %5419 = vmatpush3.msra.mxu1 %v3997_v63  ;;  %5451 = vmatprep.subr.mxu0 %v6947_v54 }
 0x4da   : > { %5420 = vmatprep.subr.mxu1 %v3996_v0  ;;  %5452 = vmatpush3.msra.mxu0 %v3412_v15 }
 0x4db   : > { %5421 = vmatpush3.msra.mxu1 %v3996_v0  ;;  %5453 = vmatprep.subr.mxu0 %v6947_v54 }
 0x4dc   : > { %5422 = vmatprep.subr.mxu1 %v3995_v1  ;;  %5454 = vmatpush3.msra.mxu0 %v3411_v16 }
 0x4dd   : > { %5423 = vmatpush3.msra.mxu1 %v3995_v1  ;;  %5455 = vmatprep.subr.mxu0 %v6947_v54 }
 0x4de   : > { %5425 = vmatmul.mubr.f32.vlgmr.msra.gmra.mxu1 %v5551_v2  ;;  %5462 = vmatprep.subr.mxu1 %v6947_v54 }
 0x4df   : > { %5494 = vmatprep.mubr.msk.f32.mxu1 %vm5569_vm0, %v6947_v54  ;;  %5463 = vmatpush3.msra.mxu1 %v3424_v3 }
 0x4e0   : > { %5464 = vmatprep.subr.mxu1 %v6947_v54  ;;  %5456 = vmatpush3.msra.mxu0 %v3410_v17 }
 0x4e1   : > { %5465 = vmatpush3.msra.mxu1 %v3423_v4  ;;  %5457 = vmatprep.subr.mxu0 %v6947_v54 }
 0x4e2   : > { %5466 = vmatprep.subr.mxu1 %v6947_v54  ;;  %5458 = vmatpush3.msra.mxu0 %v3409_v18 }
 0x4e3   : > { %5467 = vmatpush3.msra.mxu1 %v3422_v5 }
 0x4e4   : > { %5468 = vmatprep.subr.mxu1 %v6947_v54 }
 0x4e5   : > { %5469 = vmatpush3.msra.mxu1 %v3421_v6 }
 0x4e6   : > { %5470 = vmatprep.subr.mxu1 %v6947_v54 }
 0x4e7   : > { %5471 = vmatpush3.msra.mxu1 %v3420_v7 }
 0x4e8   : > { %5472 = vmatprep.subr.mxu1 %v6947_v54 }
 0x4e9   : > { %5473 = vmatpush3.msra.mxu1 %v3419_v8 }
 0x4ea   : > { %5474 = vmatprep.subr.mxu1 %v6947_v54 }
 0x4eb   : > { %5475 = vmatpush3.msra.mxu1 %v3418_v9 }
 0x4ec   : > { %5476 = vmatprep.subr.mxu1 %v6947_v54 }
 0x4ed   : > { %5477 = vmatpush3.msra.mxu1 %v3417_v10 }
 0x4ee   : > { %5478 = vmatprep.subr.mxu1 %v6947_v54 }
 0x4ef   : > { %5479 = vmatpush3.msra.mxu1 %v3416_v11 }
 0x4f0   : > { %5480 = vmatprep.subr.mxu1 %v6947_v54 }
 0x4f1   : > { %5481 = vmatpush3.msra.mxu1 %v3415_v12 }
 0x4f2   : > { %5482 = vmatprep.subr.mxu1 %v6947_v54 }
 0x4f3   : > { %5483 = vmatpush3.msra.mxu1 %v3414_v13 }
 0x4f4   : > { %5484 = vmatprep.subr.mxu1 %v6947_v54 }
 0x4f5   : > { %5485 = vmatpush3.msra.mxu1 %v3413_v14 }
 0x4f6   : > { %5486 = vmatprep.subr.mxu1 %v6947_v54 }
 0x4f7   : > { %5487 = vmatpush3.msra.mxu1 %v3412_v15 }
 0x4f8   : > { %5488 = vmatprep.subr.mxu1 %v6947_v54 }
 0x4f9   : > { %5489 = vmatpush3.msra.mxu1 %v3411_v16 }
 0x4fa   : > { %5490 = vmatprep.subr.mxu1 %v6947_v54 }
 0x4fb   : > { %5491 = vmatpush3.msra.mxu1 %v3410_v17 }
 0x4fc   : > { %5492 = vmatprep.subr.mxu1 %v6947_v54 }
 0x4fd   : > { %5493 = vmatpush3.msra.mxu1 %v3409_v18 }
 0x518   : > { %v5146_v19 = vpop.f32.mrf.mxu1 }
 0x519   : > { %v5181_v20 = vpop.f32.mrf.mxu0 }
 0x51a   : > { %v2549_v21 = vpop.f32.mrf.mxu1  ;;  %v2638_v24 = vadd.f32 %v5181_v20, %v5146_v19 }
 0x51b   : > { %v2632_v23 = vpop.f32.mrf.mxu0 }
 0x51c   : > { %v2633_v26 = vadd.f32 %v2632_v23, %v2549_v21  ;;  %v4012_v21 = vld [vmem:[%s7106_s13] ss:$0 sm:$0xff] }
 0x539   : > { %v5216_v22 = vpop.f32.mrf.mxu1 }
 0x53a   : > { %v2746_v27 = vadd.f32 %v5216_v22, %v2638_v24  ;;  %v5251_v28 = vpop.f32.mrf.mxu0  ;;  %v4013_v24 = vld [vmem:[%s7107_s14] ss:$0 sm:$0xff] }
 0x53b   : > { %v2736_v25 = vpop.f32.mrf.mxu1 }
 0x53c   : > { %v2745_v30 = vadd.f32 %v2736_v25, %v2633_v26  ;;  %v2852_v31 = vadd.f32 %v5251_v28, %v2746_v27  ;;  %v2842_v32 = vpop.f32.mrf.mxu0 }
 0x53e   : > { %v2851_v34 = vadd.f32 %v2842_v32, %v2745_v30 }
 0x55b   : > { %v5286_v29 = vpop.f32.mrf.mxu1 }
 0x55c   : > { %v2958_v35 = vadd.f32 %v5286_v29, %v2852_v31  ;;  %v5321_v36 = vpop.f32.mrf.mxu0  ;;  %v4014_v29 = vld [vmem:[%s7109_s16] ss:$0 sm:$0xff] }
 0x55d   : > { %v2948_v33 = vpop.f32.mrf.mxu1 }
 0x55e   : > { %v2957_v39 = vadd.f32 %v2948_v33, %v2851_v34  ;;  %v3064_v41 = vadd.f32 %v5321_v36, %v2958_v35  ;;  %v3054_v43 = vpop.f32.mrf.mxu0  ;;  %v4015_v35 = vld [vmem:[#allocation4] ss:$0 sm:$0xff] }
 0x560   : > { %v3063_v45 = vadd.f32 %v3054_v43, %v2957_v39 }
 0x57d   : > { %v5356_v37 = vpop.f32.mrf.mxu1 }
 0x57e   : > { %v3171_v46 = vadd.f32 %v5356_v37, %v3064_v41  ;;  %v5391_v47 = vpop.f32.mrf.mxu0 }
 0x57f   : > { %v3161_v44 = vpop.f32.mrf.mxu1 }
 0x580   : > { %v3170_v48 = vadd.f32 %v3161_v44, %v3063_v45  ;;  %v3277_v49 = vadd.f32 %v5391_v47, %v3171_v46  ;;  %v3267_v51 = vpop.f32.mrf.mxu0 }
 0x582   : > { %v3276_v40 = vadd.f32 %v3267_v51, %v3170_v48 }
 0x59e   : > { %v5426_v53 = vpop.f32.mrf.mxu1 }
 0x59f   : > { %v3383_v54 = vadd.f32 %v5426_v53, %v3277_v49 }
 0x5a0   : > { %v3373_v55 = vpop.f32.mrf.mxu1 }
 0x5a1   : > { %v3392_v56 = vadd.f32 %v4011_v42, %v3383_v54  ;;  %v3382_v57 = vadd.f32 %v3373_v55, %v3276_v40 }
 0x5a3   : > { %v3391_v58 = vadd.f32 %v4011_v42, %v3382_v57  ;;  %v3401_v59 = vmul.f32 %v3392_v56, %v3392_v56 }
 0x5a5   : > { %v3393_v52 = vadd.f32 %v3392_v56, %v3391_v58  ;;  %v3400_v50 = vmul.f32 %v3391_v58, %v3391_v58 }
 0x5a7   : > { %v3394_v60 = vrot.slane %v3393_v52, 4  ;;  %v3402_v61 = vadd.f32 %v3401_v59, %v3400_v50 }
 0x5a9   : > { %v3395_v62 = vadd.f32 %v3394_v60, %v3393_v52  ;;  %v3403_v63 = vrot.slane %v3402_v61, 4 }
 0x5ab   : > { %v3396_v0 = vrot.slane %v3395_v62, 2  ;;  %v3404_v1 = vadd.f32 %v3403_v63, %v3402_v61 }
 0x5ad   : > { %v3397_v2 = vadd.f32 %v3396_v0, %v3395_v62  ;;  %v3405_v3 = vrot.slane %v3404_v1, 2 }
 0x5af   : > { %v3398_v4 = vrot.slane %v3397_v2, 1  ;;  %v3406_v5 = vadd.f32 %v3405_v3, %v3404_v1 }
 0x5b1   : > { %v3399_v6 = vadd.f32 %v3398_v4, %v3397_v2  ;;  %v3407_v7 = vrot.slane %v3406_v5, 1 }
 0x5b3   : > { %5460 = vmatmul.mubr.f32.vlgmr.msra.gmra.mxu0 %v3399_v6  ;;  %v3408_v8 = vadd.f32 %v3407_v7, %v3406_v5 }
 0x5b5   : > { %5495 = vmatmul.mubr.f32.vlgmr.msra.gmra.mxu1 %v3408_v8 }
 0x673   : > { %v3491_v9 = vpop.f32.mrf.mxu0 }
 0x674   : > { %v3565_v10 = vmul.f32 %v3491_v9, %v3491_v9  ;;  %v3572_v16 = vrot.slane %v3491_v9, %v6103_v38 }
 0x675   : > { %v5461_v11 = vpop.f32.mrf.mxu0  ;;  %v3561_v12 = vpop.f32.mrf.mxu1 }
 0x676   : > { %v3566_v13 = vsub.f32 %v3561_v12, %v3565_v10  ;;  %v3573_v18 = vsub.f32 %v3391_v58, %v3572_v16  ;;  %v3574_v19 = vsub.f32 %v3392_v56, %v3572_v16 }
 0x677   : > { %v5496_v14 = vpop.f32.mrf.mxu1 }
 0x678   : > { %v3567_v15 = vadd.f32 1e-05, %v3566_v13 }
 0x67a   : > { %5556 = vrsqrt.f32 %v3567_v15 }
 0x687   : > { %v5557_v17 = vpop.eup %5556 }
 0x688   : > { %v3578_v20 = vrot.slane %v5557_v17, %v6103_v38 }
 0x68a   : > { %v3579_v22 = vmul.f32 %v3578_v20, %v3573_v18  ;;  %v3580_v23 = vmul.f32 %v3578_v20, %v3574_v19 }
 0x68c   : > { %v3588_v25 = vmul.f32 %v4012_v21, %v3579_v22  ;;  %v3589_v26 = vmul.f32 %v4012_v21, %v3580_v23 }
 0x68e   : > { %v3597_v27 = vadd.f32 %v4013_v24, %v3588_v25  ;;  %v3598_v28 = vadd.f32 %v4013_v24, %v3589_v26 }
 0x690   : > { %vm3599_vm5 = vcmp.ge.f32.partialorder %v3597_v27, 0.0  ;;  %v3601_v38 = vmul.f32 0.2, %v3597_v27  ;;  %v3602_v30 = vmul.f32 0.2, %v3598_v28  ;;  %vm3600_vm6 = vcmp.ge.f32.partialorder %v3598_v28, 0.0 }
 0x692   : > { %v3603_v31 = vsel %vm3599_vm5, %v3597_v27, %v3601_v38  ;;  %v3604_v33 = vsel %vm3600_vm6, %v3598_v28, %v3602_v30 }
 0x693   : > { %v3612_v32 = vmul.f32 %v4014_v29, %v3603_v31  ;;  %v3613_v34 = vmul.f32 %v4014_v29, %v3604_v33 }
 0x695   : > { %3614 = vadd.xlane.f32.xlu0 %v3612_v32 }
 0x699   : > { %3616 = vadd.xlane.f32.xlu0 %v3613_v34 }
 0x71e   : > { %v3615_v36 = vpop.xlane.xlu0 %3614 }
 0x71f   : > { %v3625_v37 = vadd.f32 %v4015_v35, %v3615_v36 }
 0x721   : > { %3628 = vst.msk [vmem:[%s577_s2] sm:$0xff] %vm3627_vm7, %v3625_v37 }
 0x722   : > { %v3617_v39 = vpop.xlane.xlu0 %3616 }
 0x723   : > { %v3626_v41 = vadd.f32 %v4015_v35, %v3617_v39 }
 0x725   : > { %3629 = vst.msk [vmem:[%s577_s2 + $0x8] sm:$0xff] %vm3627_vm7, %v3626_v41 }
 0x726 PF: > { %s30_s29 = sadd.s32 1, %s5566_s29  }
 0x727   : > { %p27_p4 = scmp.ge.s32.totalorder %s30_s29, 4  }
 0x729   :  { %29 = sbr.rel (!%p27_p4) target bundleno = 4 (0x4), region = 148 }

</bundles_post_ra>
